<compile_context>
chip_gen: v6e
topology: v6e:2x2x1
jax: 0.10.0
libtpu: 0.0.40
codegen_flags: <defaults>
</compile_context>

<pallas_src>
import functools

import jax
import jax.numpy as jnp
from jax import lax
from jax.experimental import pallas as pl
from jax.experimental.pallas import tpu as pltpu


def edge_attention_kernel(
    x_ref,      # [T, R*C]       R edge rows folded into lanes
    w1_ref,     # [R*C, 2*R*H]   block-diag fused (transform | attention) layer 1
    b1_ref,     # [1, 2*R*H]
    s_ref,      # [R*H, R]       0/1 segment-sum matrix
    sb_ref,     # [R, R*H]       0/1 segment-broadcast matrix
    w2s_ref,    # [R*H, R]       per-segment attention-head weights
    b2_ref,     # [1, R]         attention-head bias (tiled)
    gamma_ref,  # [1, R*H]       LayerNorm scale (tiled)
    beta_ref,   # [1, R*H]       LayerNorm shift (tiled)
    out_ref,    # [T, R*H]       attended features (lane-dense)
    score_ref,  # [T, R]         attention scores
    *,
    precision,  # precision of the big fused matmul
):
    hi = lax.Precision.HIGHEST          # structural matmuls replace exact VPU math
    rh = out_ref.shape[-1]              # R*H
    r = score_ref.shape[-1]             # R
    inv_h = 1.0 / (rh // r)

    x = x_ref[...].astype(jnp.float32)

    # Both branches' first Linear (+ReLU) as one lane-dense MXU matmul.
    h = jnp.dot(x, w1_ref[...], precision=precision,
                preferred_element_type=jnp.float32)
    h = jnp.maximum(h + b1_ref[...], 0.0)
    h_t = h[:, :rh]                     # transform hidden (128-lane aligned slice)
    h_a = h[:, rh:]                     # attention hidden

    # LayerNorm over each H-lane segment (torch eps = 1e-5): segmented mean/var
    # via tiny resident matmuls; all VPU elementwise work stays lane-dense.
    mean_seg = jnp.dot(h_t, s_ref[...], precision=hi,
                       preferred_element_type=jnp.float32) * inv_h       # [T, R]
    mean_b = jnp.dot(mean_seg, sb_ref[...], precision=hi,
                     preferred_element_type=jnp.float32)                 # [T, R*H]
    d = h_t - mean_b
    var_seg = jnp.dot(d * d, s_ref[...], precision=hi,
                      preferred_element_type=jnp.float32) * inv_h        # [T, R]
    rstd_b = jnp.dot(lax.rsqrt(var_seg + 1e-5), sb_ref[...], precision=hi,
                     preferred_element_type=jnp.float32)                 # [T, R*H]
    normed = d * rstd_b * gamma_ref[...] + beta_ref[...]

    # Attention head: per-segment hidden -> 1 logit, sigmoid via EUP tanh
    # (no VALU divide, no exp overflow), then broadcast back to the lane slab.
    logit = jnp.dot(h_a, w2s_ref[...], precision=hi,
                    preferred_element_type=jnp.float32) + b2_ref[...]    # [T, R]
    score = 0.5 * (jnp.tanh(0.5 * logit) + 1.0)
    score_b = jnp.dot(score, sb_ref[...], precision=hi,
                      preferred_element_type=jnp.float32)                # [T, R*H]

    out_ref[...] = (normed * score_b).astype(out_ref.dtype)
    score_ref[...] = score.astype(score_ref.dtype)


def _round_up(v, m):
    return -(-v // m) * m


def edge_attention(x, params, *, tile_n=8192, precision=None, out_dtype=None):
    """EdgeAttention forward.  x: [N, in_channels] -> (attended [N, H], scores [N, 1])."""
    N, C = x.shape
    H = params["gamma"].shape[-1]
    out_dtype = out_dtype or x.dtype

    # Fold R logical rows into the 128-lane dimension (R = 4 for H = 32).
    R = 128 // H if (H <= 128 and 128 % H == 0) else 1

    n = N
    if N % R:
        # TODO(synk): mask the tail in-kernel instead of this small pad copy.
        n = _round_up(N, R)
        x = jnp.pad(x, ((0, n - N), (0, 0)))
    n_pack = n // R
    xp = x.reshape(n_pack, R * C)       # free: identical row-major layout

    # One-off packed parameters (fold into init_params in production).
    eye = jnp.eye(R, dtype=jnp.float32)
    bd = lambda w: jnp.kron(eye, w)                             # block-diagonal
    w1p = jnp.concatenate([bd(params["w1t"]), bd(params["w1a"])], axis=1)
    b1p = jnp.concatenate([jnp.tile(params["b1t"], (1, R)),
                           jnp.tile(params["b1a"], (1, R))], axis=1)
    sp = bd(jnp.ones((H, 1), jnp.float32))                      # [R*H, R]
    sbp = bd(jnp.ones((1, H), jnp.float32))                     # [R, R*H]
    w2sp = bd(params["w2a"].reshape(H, 1))                      # [R*H, R]
    b2p = jnp.tile(params["b2a"].reshape(1, 1), (1, R))         # [1, R]
    gp = jnp.tile(params["gamma"], (1, R))                      # [1, R*H]
    bp = jnp.tile(params["beta"], (1, R))                       # [1, R*H]

    # Packed-row tile: >=8 sublanes, big enough to amortise the ~0.35 us/step
    # grid overhead, ~10 MiB at the default (fits v7x's 32 MiB scoped VMEM).
    tile_pack = max(1, min(tile_n // R, n_pack))
    tile_pack = max(8, _round_up(tile_pack, 8))
    grid = (pl.cdiv(n_pack, tile_pack),)

    resident = lambda shape: pl.BlockSpec(shape, lambda i: (0, 0))

    out_p, score_p = pl.pallas_call(
        functools.partial(edge_attention_kernel, precision=precision),
        grid=grid,
        in_specs=[
            pl.BlockSpec((tile_pack, R * C), lambda i: (i, 0)),  # x (row-tiled)
            resident((R * C, 2 * R * H)),                        # w1 block-diag
            resident((1, 2 * R * H)),                            # b1
            resident((R * H, R)),                                # segment sum
            resident((R, R * H)),                                # segment bcast
            resident((R * H, R)),                                # w2 per segment
            resident((1, R)),                                    # b2
            resident((1, R * H)),                                # gamma
            resident((1, R * H)),                                # beta
        ],
        out_specs=(
            pl.BlockSpec((tile_pack, R * H), lambda i: (i, 0)),
            pl.BlockSpec((tile_pack, R), lambda i: (i, 0)),
        ),
        out_shape=(
            jax.ShapeDtypeStruct((n_pack, R * H), out_dtype),
            jax.ShapeDtypeStruct((n_pack, R), out_dtype),
        ),
        compiler_params=pltpu.CompilerParams(
            dimension_semantics=("parallel",),    # megacore sharding on v7x
        ),
    )(xp, w1p, b1p, sp, sbp, w2sp, b2p, gp, bp)

    out = out_p.reshape(n, H)           # free reshapes (same row-major layout)
    score = score_p.reshape(n, 1)
    if n != N:
        out, score = out[:N], score[:N]
    return out, score


def init_params(key, in_channels, hidden_channels):
    """Deterministic init mimicking torch.nn.Linear defaults (U(-1/sqrt(fan_in), +))."""
    ks = jax.random.split(key, 6)

    def linear(kw, kb, fan_in, fan_out):
        bound = 1.0 / (fan_in ** 0.5)
        w = jax.random.uniform(kw, (fan_in, fan_out), jnp.float32, -bound, bound)
        b = jax.random.uniform(kb, (1, fan_out), jnp.float32, -bound, bound)
        return w, b

    w1a, b1a = linear(ks[0], ks[1], in_channels, hidden_channels)
    w2a, b2a = linear(ks[2], ks[3], hidden_channels, 1)
    w1t, b1t = linear(ks[4], ks[5], in_channels, hidden_channels)
    gamma = jnp.ones((1, hidden_channels), jnp.float32)
    beta = jnp.zeros((1, hidden_channels), jnp.float32)
    return dict(w1a=w1a, b1a=b1a, w2a=w2a, b2a=b2a,
                w1t=w1t, b1t=b1t, gamma=gamma, beta=beta)


def edge_attention_ref(x, p, precision=None):
    """Pure-JAX reference of the PyTorch forward."""
    hi = lax.Precision.HIGHEST
    h_att = jnp.maximum(jnp.dot(x, p["w1a"], precision=precision) + p["b1a"], 0.0)
    score = jax.nn.sigmoid(jnp.dot(h_att, p["w2a"], precision=hi) + p["b2a"])
    h_t = jnp.maximum(jnp.dot(x, p["w1t"], precision=precision) + p["b1t"], 0.0)
    mean = jnp.mean(h_t, axis=-1, keepdims=True)
    var = jnp.mean((h_t - mean) ** 2, axis=-1, keepdims=True)
    normed = (h_t - mean) * lax.rsqrt(var + 1e-5) * p["gamma"] + p["beta"]
    return normed * score, score


if __name__ == "__main__":
    C, H = 16, 32                       # in_channels, hidden_channels
    key = jax.random.PRNGKey(0)
    kx1, kx2, kp = jax.random.split(key, 3)
    params = init_params(kp, C, H)

    # Exact-f32 matmuls on BOTH sides so the numeric check is unambiguous.
    hi = lax.Precision.HIGHEST

    # Case 1: divisible shapes -> 2-step pipelined "parallel" grid.
    N1 = 256
    x1 = jax.random.normal(kx1, (N1, C), jnp.float32)
    out1, sc1 = edge_attention(x1, params, tile_n=128, precision=hi)
    jax.block_until_ready((out1, sc1))
    ref_o1, ref_s1 = edge_attention_ref(x1, params, precision=hi)
    assert out1.shape == (N1, H) and sc1.shape == (N1, 1)
    assert jnp.allclose(out1, ref_o1, atol=1e-4, rtol=1e-4)
    assert jnp.allclose(sc1, ref_s1, atol=1e-4, rtol=1e-4)

    # Case 2: ragged last tile (N % 4 == 0 so no pad / slice; Pallas masks the
    # partial block).
    N2 = 200
    x2 = jax.random.normal(kx2, (N2, C), jnp.float32)
    out2, sc2 = edge_attention(x2, params, tile_n=128, precision=hi)
    jax.block_until_ready((out2, sc2))
    ref_o2, ref_s2 = edge_attention_ref(x2, params, precision=hi)
    assert out2.shape == (N2, H) and sc2.shape == (N2, 1)
    assert jnp.allclose(out2, ref_o2, atol=1e-4, rtol=1e-4)
    assert jnp.allclose(sc2, ref_s2, atol=1e-4, rtol=1e-4)

    print("KERNEL_OK")
</pallas_src>

<mosaic_0001>
module attributes {stable_mosaic.version = 11 : i64} {
  func.func @edge_attention_kernel(%arg0: i32, %arg1: memref<32x64xf32, #tpu.memory_space<vmem>>, %arg2: memref<64x256xf32, #tpu.memory_space<vmem>>, %arg3: memref<1x256xf32, #tpu.memory_space<vmem>>, %arg4: memref<128x4xf32, #tpu.memory_space<vmem>>, %arg5: memref<4x128xf32, #tpu.memory_space<vmem>>, %arg6: memref<128x4xf32, #tpu.memory_space<vmem>>, %arg7: memref<1x4xf32, #tpu.memory_space<vmem>>, %arg8: memref<1x128xf32, #tpu.memory_space<vmem>>, %arg9: memref<1x128xf32, #tpu.memory_space<vmem>>, %arg10: memref<32x128xf32, #tpu.memory_space<vmem>>, %arg11: memref<32x4xf32, #tpu.memory_space<vmem>>) attributes {dimension_semantics = [#tpu.dimension_semantics<parallel>], iteration_bounds = array<i64: 2>, scalar_prefetch = 0 : i64, scratch_operands = 0 : i64, tpu.core_type = #tpu.core_type<tc>, window_params = [{transform_indices = @transform_0, window_bounds = array<i64: 32, 64>}, {pipeline_mode = #tpu.pipeline_mode<synchronous>, transform_indices = @transform_1, window_bounds = array<i64: 64, 256>}, {pipeline_mode = #tpu.pipeline_mode<synchronous>, transform_indices = @transform_2, window_bounds = array<i64: 1, 256>}, {pipeline_mode = #tpu.pipeline_mode<synchronous>, transform_indices = @transform_3, window_bounds = array<i64: 128, 4>}, {pipeline_mode = #tpu.pipeline_mode<synchronous>, transform_indices = @transform_4, window_bounds = array<i64: 4, 128>}, {pipeline_mode = #tpu.pipeline_mode<synchronous>, transform_indices = @transform_5, window_bounds = array<i64: 128, 4>}, {pipeline_mode = #tpu.pipeline_mode<synchronous>, transform_indices = @transform_6, window_bounds = array<i64: 1, 4>}, {pipeline_mode = #tpu.pipeline_mode<synchronous>, transform_indices = @transform_7, window_bounds = array<i64: 1, 128>}, {pipeline_mode = #tpu.pipeline_mode<synchronous>, transform_indices = @transform_8, window_bounds = array<i64: 1, 128>}, {transform_indices = @transform_9, window_bounds = array<i64: 32, 128>}, {transform_indices = @transform_10, window_bounds = array<i64: 32, 4>}]} {
    %c0 = arith.constant 0 : index
    %c0_0 = arith.constant 0 : index
    %0 = vector.load %arg1[%c0, %c0_0] : memref<32x64xf32, #tpu.memory_space<vmem>>, vector<32x64xf32>
    %c0_1 = arith.constant 0 : index
    %c0_2 = arith.constant 0 : index
    %1 = vector.load %arg2[%c0_1, %c0_2] : memref<64x256xf32, #tpu.memory_space<vmem>>, vector<64x256xf32>
    %cst = arith.constant dense<0.000000e+00> : vector<32x256xf32>
    %2 = tpu.matmul %0, %1, %cst {dimension_numbers = #tpu.dot_dimension_numbers<[1], [0], [0], [1], [0, 0, 1, 1], [], []>, precision = #tpu.contract_precision<fp32>} : vector<32x64xf32>, vector<64x256xf32>, vector<32x256xf32> -> vector<32x256xf32>
    %c0_3 = arith.constant 0 : index
    %c0_4 = arith.constant 0 : index
    %3 = vector.load %arg3[%c0_3, %c0_4] : memref<1x256xf32, #tpu.memory_space<vmem>>, vector<1x256xf32>
    %4 = vector.broadcast %3 : vector<1x256xf32> to vector<32x256xf32>
    %5 = arith.addf %2, %4 : vector<32x256xf32>
    %cst_5 = arith.constant 0.000000e+00 : f32
    %6 = vector.broadcast %cst_5 : f32 to vector<32x256xf32>
    %7 = arith.maximumf %5, %6 : vector<32x256xf32>
    %8 = vector.extract_strided_slice %7 {offsets = [0, 0], sizes = [32, 128], strides = [1, 1]} : vector<32x256xf32> to vector<32x128xf32>
    %9 = vector.extract_strided_slice %7 {offsets = [0, 128], sizes = [32, 128], strides = [1, 1]} : vector<32x256xf32> to vector<32x128xf32>
    %c0_6 = arith.constant 0 : index
    %c0_7 = arith.constant 0 : index
    %10 = vector.load %arg4[%c0_6, %c0_7] : memref<128x4xf32, #tpu.memory_space<vmem>>, vector<128x4xf32>
    %cst_8 = arith.constant dense<0.000000e+00> : vector<32x4xf32>
    %11 = tpu.matmul %8, %10, %cst_8 {dimension_numbers = #tpu.dot_dimension_numbers<[1], [0], [0], [1], [0, 0, 1, 1], [], []>, precision = #tpu.contract_precision<fp32>} : vector<32x128xf32>, vector<128x4xf32>, vector<32x4xf32> -> vector<32x4xf32>
    %cst_9 = arith.constant 3.125000e-02 : f32
    %12 = vector.broadcast %cst_9 : f32 to vector<32x4xf32>
    %13 = arith.mulf %11, %12 : vector<32x4xf32>
    %c0_10 = arith.constant 0 : index
    %c0_11 = arith.constant 0 : index
    %14 = vector.load %arg5[%c0_10, %c0_11] : memref<4x128xf32, #tpu.memory_space<vmem>>, vector<4x128xf32>
    %cst_12 = arith.constant dense<0.000000e+00> : vector<32x128xf32>
    %15 = tpu.matmul %13, %14, %cst_12 {dimension_numbers = #tpu.dot_dimension_numbers<[1], [0], [0], [1], [0, 0, 1, 1], [], []>, precision = #tpu.contract_precision<fp32>} : vector<32x4xf32>, vector<4x128xf32>, vector<32x128xf32> -> vector<32x128xf32>
    %16 = arith.subf %8, %15 : vector<32x128xf32>
    %17 = arith.mulf %16, %16 : vector<32x128xf32>
    %c0_13 = arith.constant 0 : index
    %c0_14 = arith.constant 0 : index
    %18 = vector.load %arg4[%c0_13, %c0_14] : memref<128x4xf32, #tpu.memory_space<vmem>>, vector<128x4xf32>
    %cst_15 = arith.constant dense<0.000000e+00> : vector<32x4xf32>
    %19 = tpu.matmul %17, %18, %cst_15 {dimension_numbers = #tpu.dot_dimension_numbers<[1], [0], [0], [1], [0, 0, 1, 1], [], []>, precision = #tpu.contract_precision<fp32>} : vector<32x128xf32>, vector<128x4xf32>, vector<32x4xf32> -> vector<32x4xf32>
    %cst_16 = arith.constant 3.125000e-02 : f32
    %20 = vector.broadcast %cst_16 : f32 to vector<32x4xf32>
    %21 = arith.mulf %19, %20 : vector<32x4xf32>
    %cst_17 = arith.constant 9.99999974E-6 : f32
    %22 = vector.broadcast %cst_17 : f32 to vector<32x4xf32>
    %23 = arith.addf %21, %22 : vector<32x4xf32>
    %24 = math.rsqrt %23 : vector<32x4xf32>
    %c0_18 = arith.constant 0 : index
    %c0_19 = arith.constant 0 : index
    %25 = vector.load %arg5[%c0_18, %c0_19] : memref<4x128xf32, #tpu.memory_space<vmem>>, vector<4x128xf32>
    %cst_20 = arith.constant dense<0.000000e+00> : vector<32x128xf32>
    %26 = tpu.matmul %24, %25, %cst_20 {dimension_numbers = #tpu.dot_dimension_numbers<[1], [0], [0], [1], [0, 0, 1, 1], [], []>, precision = #tpu.contract_precision<fp32>} : vector<32x4xf32>, vector<4x128xf32>, vector<32x128xf32> -> vector<32x128xf32>
    %27 = arith.mulf %16, %26 : vector<32x128xf32>
    %c0_21 = arith.constant 0 : index
    %c0_22 = arith.constant 0 : index
    %28 = vector.load %arg8[%c0_21, %c0_22] : memref<1x128xf32, #tpu.memory_space<vmem>>, vector<1x128xf32>
    %29 = vector.broadcast %28 : vector<1x128xf32> to vector<32x128xf32>
    %30 = arith.mulf %27, %29 : vector<32x128xf32>
    %c0_23 = arith.constant 0 : index
    %c0_24 = arith.constant 0 : index
    %31 = vector.load %arg9[%c0_23, %c0_24] : memref<1x128xf32, #tpu.memory_space<vmem>>, vector<1x128xf32>
    %32 = vector.broadcast %31 : vector<1x128xf32> to vector<32x128xf32>
    %33 = arith.addf %30, %32 : vector<32x128xf32>
    %c0_25 = arith.constant 0 : index
    %c0_26 = arith.constant 0 : index
    %34 = vector.load %arg6[%c0_25, %c0_26] : memref<128x4xf32, #tpu.memory_space<vmem>>, vector<128x4xf32>
    %cst_27 = arith.constant dense<0.000000e+00> : vector<32x4xf32>
    %35 = tpu.matmul %9, %34, %cst_27 {dimension_numbers = #tpu.dot_dimension_numbers<[1], [0], [0], [1], [0, 0, 1, 1], [], []>, precision = #tpu.contract_precision<fp32>} : vector<32x128xf32>, vector<128x4xf32>, vector<32x4xf32> -> vector<32x4xf32>
    %c0_28 = arith.constant 0 : index
    %c0_29 = arith.constant 0 : index
    %36 = vector.load %arg7[%c0_28, %c0_29] : memref<1x4xf32, #tpu.memory_space<vmem>>, vector<1x4xf32>
    %37 = vector.broadcast %36 : vector<1x4xf32> to vector<32x4xf32>
    %38 = arith.addf %35, %37 : vector<32x4xf32>
    %cst_30 = arith.constant 5.000000e-01 : f32
    %39 = vector.broadcast %cst_30 : f32 to vector<32x4xf32>
    %40 = arith.mulf %39, %38 : vector<32x4xf32>
    %41 = math.tanh %40 : vector<32x4xf32>
    %cst_31 = arith.constant 1.000000e+00 : f32
    %42 = vector.broadcast %cst_31 : f32 to vector<32x4xf32>
    %43 = arith.addf %41, %42 : vector<32x4xf32>
    %cst_32 = arith.constant 5.000000e-01 : f32
    %44 = vector.broadcast %cst_32 : f32 to vector<32x4xf32>
    %45 = arith.mulf %44, %43 : vector<32x4xf32>
    %c0_33 = arith.constant 0 : index
    %c0_34 = arith.constant 0 : index
    %46 = vector.load %arg5[%c0_33, %c0_34] : memref<4x128xf32, #tpu.memory_space<vmem>>, vector<4x128xf32>
    %cst_35 = arith.constant dense<0.000000e+00> : vector<32x128xf32>
    %47 = tpu.matmul %45, %46, %cst_35 {dimension_numbers = #tpu.dot_dimension_numbers<[1], [0], [0], [1], [0, 0, 1, 1], [], []>, precision = #tpu.contract_precision<fp32>} : vector<32x4xf32>, vector<4x128xf32>, vector<32x128xf32> -> vector<32x128xf32>
    %48 = arith.mulf %33, %47 : vector<32x128xf32>
    %c0_36 = arith.constant 0 : index
    %c0_37 = arith.constant 0 : index
    %49 = vector.load %arg10[%c0_36, %c0_37] : memref<32x128xf32, #tpu.memory_space<vmem>>, vector<32x128xf32>
    tpu.vector_store %arg10[%c0_36, %c0_37], %48 {strides = array<i32>} : memref<32x128xf32, #tpu.memory_space<vmem>>, vector<32x128xf32>,
    %c0_38 = arith.constant 0 : index
    %c0_39 = arith.constant 0 : index
    %50 = vector.load %arg11[%c0_38, %c0_39] : memref<32x4xf32, #tpu.memory_space<vmem>>, vector<32x4xf32>
    tpu.vector_store %arg11[%c0_38, %c0_39], %45 {strides = array<i32>} : memref<32x4xf32, #tpu.memory_space<vmem>>, vector<32x4xf32>,
    return
  }
  func.func @transform_0(%arg0: i32) -> (i32, i32) {
    %c0_i32 = arith.constant 0 : i32
    %c0_i32_0 = arith.constant 0 : i32
    return %arg0, %c0_i32 : i32, i32
  }
  func.func @transform_1(%arg0: i32) -> (i32, i32) {
    %c0_i32 = arith.constant 0 : i32
    %c0_i32_0 = arith.constant 0 : i32
    %c0_i32_1 = arith.constant 0 : i32
    return %c0_i32, %c0_i32_0 : i32, i32
  }
  func.func @transform_2(%arg0: i32) -> (i32, i32) {
    %c0_i32 = arith.constant 0 : i32
    %c0_i32_0 = arith.constant 0 : i32
    %c0_i32_1 = arith.constant 0 : i32
    return %c0_i32, %c0_i32_0 : i32, i32
  }
  func.func @transform_3(%arg0: i32) -> (i32, i32) {
    %c0_i32 = arith.constant 0 : i32
    %c0_i32_0 = arith.constant 0 : i32
    %c0_i32_1 = arith.constant 0 : i32
    return %c0_i32, %c0_i32_0 : i32, i32
  }
  func.func @transform_4(%arg0: i32) -> (i32, i32) {
    %c0_i32 = arith.constant 0 : i32
    %c0_i32_0 = arith.constant 0 : i32
    %c0_i32_1 = arith.constant 0 : i32
    return %c0_i32, %c0_i32_0 : i32, i32
  }
  func.func @transform_5(%arg0: i32) -> (i32, i32) {
    %c0_i32 = arith.constant 0 : i32
    %c0_i32_0 = arith.constant 0 : i32
    %c0_i32_1 = arith.constant 0 : i32
    return %c0_i32, %c0_i32_0 : i32, i32
  }
  func.func @transform_6(%arg0: i32) -> (i32, i32) {
    %c0_i32 = arith.constant 0 : i32
    %c0_i32_0 = arith.constant 0 : i32
    %c0_i32_1 = arith.constant 0 : i32
    return %c0_i32, %c0_i32_0 : i32, i32
  }
  func.func @transform_7(%arg0: i32) -> (i32, i32) {
    %c0_i32 = arith.constant 0 : i32
    %c0_i32_0 = arith.constant 0 : i32
    %c0_i32_1 = arith.constant 0 : i32
    return %c0_i32, %c0_i32_0 : i32, i32
  }
  func.func @transform_8(%arg0: i32) -> (i32, i32) {
    %c0_i32 = arith.constant 0 : i32
    %c0_i32_0 = arith.constant 0 : i32
    %c0_i32_1 = arith.constant 0 : i32
    return %c0_i32, %c0_i32_0 : i32, i32
  }
  func.func @transform_9(%arg0: i32) -> (i32, i32) {
    %c0_i32 = arith.constant 0 : i32
    %c0_i32_0 = arith.constant 0 : i32
    return %arg0, %c0_i32 : i32, i32
  }
  func.func @transform_10(%arg0: i32) -> (i32, i32) {
    %c0_i32 = arith.constant 0 : i32
    %c0_i32_0 = arith.constant 0 : i32
    return %arg0, %c0_i32 : i32, i32
  }
}

</mosaic_0001>

<bundles_post_ra>
// kernel: tpu_custom_call.1
= control target key start
LH: loop header
LB: loop body
LE: loop exit
PB: predicated region body
PF: predicated region fallthrough
CT: control target
= control target key end

     0   :  { %16 = vsyncpa [#allocation3], 0  ;;  %s8886_s0 = inlined_call_operand.vmem [shape: f32[64,64], index: 0, kind: input, shape index: {}]   ;;  %s8887_s1 = inlined_call_operand.vmem [shape: f32[64,256], index: 1, kind: input, shape index: {}]   ;;  %s8888_s2 = inlined_call_operand.vmem [shape: f32[1,256], index: 2, kind: input, shape index: {}]   ;;  %s8889_s3 = inlined_call_operand.vmem [shape: f32[128,4], index: 3, kind: input, shape index: {}]   ;;  %s8890_s4 = inlined_call_operand.vmem [shape: f32[4,128], index: 4, kind: input, shape index: {}]   ;;  %s8891_s5 = inlined_call_operand.vmem [shape: f32[128,4], index: 5, kind: input, shape index: {}]   ;;  %s8892_s6 = inlined_call_operand.vmem [shape: f32[1,4], index: 6, kind: input, shape index: {}]   ;;  %s8893_s7 = inlined_call_operand.vmem [shape: f32[1,128], index: 7, kind: input, shape index: {}]   ;;  %s8894_s8 = inlined_call_operand.vmem [shape: f32[1,128], index: 8, kind: input, shape index: {}]   ;;  %s8895_s9 = inlined_call_operand.hbm [shape: f32[64,128], index: 9, kind: output, shape index: {0}]   ;;  %s8896_s10 = inlined_call_operand.vmem [shape: f32[64,4], index: 10, kind: output, shape index: {1}]  }
   0x1   :  { %18 = vsyncpa [#allocation3 + $0x1], 0  ;;  %s7001_s13 = smov 0   ;;  %s7003_s14 = smov 0  }
   0x2   :  { %s7005_s15 = smov 0   ;;  %s7007_s16 = smov 0  }
   0x3 LB: > { %s7022_s17 = sadd.s32 4294967295, %s6940_s16   ;;  %s5526_s18 = sadd.s32 4294967294, %s6940_s16   ;;  %s6940_s16 = sphi %s7007_s16, %s9180_s16   ;;  %s6936_s15 = sphi %s7005_s15, %s9179_s15   ;;  %s6932_s14 = sphi %s7003_s14, %s9178_s14   ;;  %s6928_s13 = sphi %s7001_s13, %s9177_s13  }
   0x4   : > { %s7026_s19 = sadd.s32 1, %s6940_s16   ;;  %s225_s20 = sadd.s32 1, %s6936_s15 }
   0x5   : > { %s222_s21 = ssub.s32 %s6940_s16, %s7026_s19  ;;  %p235_p0 = scmp.ne.s32.totalorder %s6936_s15, %s6932_s14 }
   0x6   : > { %p223_p1 = scmp.eq.s32.totalorder %s222_s21, 0  ;;  %p236_p2 = scmp.eq.s32.totalorder %s7022_s17, 1 }
   0x7   : > { %p241_p3 = scmp.ne.s32.totalorder %s6932_s14, %s6928_s13  ;;  %p242_p4 = scmp.eq.s32.totalorder %s5526_s18, 1 }
   0x8   : > { %s7037_s22 = scalar_select %p223_p1, %s6936_s15, %s225_s20  }
   0x9   : > { %p7039_p5 = por %p236_p2, %p235_p0  ;;  %p7043_p6 = por %p242_p4, %p241_p3 }
   0xa   : > { %p5529_p7 = scmp.ge.s32.totalorder %s6940_s16, 1  ;;  %p319_p8 = scmp.lt.s32.totalorder %s6940_s16, 3 }
   0xc   : > { %p320_p9 = pnand %p5529_p7, %p319_p8 }
   0xe   : > { %323 = sbr.rel (%p320_p9) target bundleno = 1704 (0x6a8), region = 56 }
  0x13   : > { %v394_v0 = vld [vmem:[%s8887_s1 + $0x78] sm:$0xff]  ;;  %v393_v1 = vld [vmem:[%s8887_s1 + $0x70] sm:$0xff]  ;;  %v392_v2 = vld [vmem:[%s8887_s1 + $0x68] sm:$0xff]  ;;  %s5531_s11 = sshll.u32 %s7022_s17, 2  ;;  %vm407_vm0 = vcmask 523264   ;;  %v6942_v9 = vmov 0.0  }
  0x14   : > { %v7059_v3 = vand.u32 4294901760, %v394_v0  ;;  %v7061_v4 = vand.u32 4294901760, %v393_v1  ;;  %v7063_v5 = vand.u32 4294901760, %v392_v2  ;;  %v391_v6 = vld [vmem:[%s8887_s1 + $0x60] sm:$0xff]  ;;  %v390_v7 = vld [vmem:[%s8887_s1 + $0x58] sm:$0xff]  ;;  %v389_v8 = vld [vmem:[%s8887_s1 + $0x50] sm:$0xff]  ;;  %500 = vmatprep.mubr.f32.mxu0 %v6942_v9  ;;  %689 = vmatprep.mubr.f32.mxu1 %v6942_v9 }
  0x15   : > { %v7076_v10 = vand.u32 4294901760, %v391_v6  ;;  %v7078_v11 = vand.u32 4294901760, %v390_v7  ;;  %v7080_v12 = vand.u32 4294901760, %v389_v8  ;;  %v388_v13 = vld [vmem:[%s8887_s1 + $0x48] sm:$0xff]  ;;  %v387_v14 = vld [vmem:[%s8887_s1 + $0x40] sm:$0xff]  ;;  %v7091_v15 = vld [vmem:[%s8887_s1 + $0x38] sm:$0xff] }
  0x16   : > { %437 = vmatprep.subr.mxu0 %v7059_v3  ;;  %v7094_v16 = vand.u32 4294901760, %v388_v13  ;;  %v7096_v17 = vand.u32 4294901760, %v387_v14  ;;  %v7099_v18 = vand.u32 4294901760, %v7091_v15  ;;  %v7102_v19 = vsub.f32 %v394_v0, %v7059_v3  ;;  %v7107_v20 = vld [vmem:[%s8887_s1 + $0x30] sm:$0xff]  ;;  %v7112_v21 = vld [vmem:[%s8887_s1 + $0x28] sm:$0xff]  ;;  %v7117_v22 = vld [vmem:[%s8887_s1 + $0x20] sm:$0xff] }
  0x17   : > { %439 = vmatpush1.msra.mxu0 %v7061_v4  ;;  %v7121_v23 = vand.u32 4294901760, %v7107_v20  ;;  %v7124_v24 = vsub.f32 %v393_v1, %v7061_v4  ;;  %v7127_v25 = vand.u32 4294901760, %v7112_v21  ;;  %v7130_v26 = vsub.f32 %v392_v2, %v7063_v5  ;;  %v7135_v27 = vld [vmem:[%s8887_s1 + $0x18] sm:$0xff]  ;;  %v7140_v28 = vld [vmem:[%s8887_s1 + $0x10] sm:$0xff]  ;;  %v7145_v29 = vld [vmem:[%s8887_s1 + $0x8] sm:$0xff]  ;;  %p363_p10 = scmp.lt.s32.totalorder %s5531_s11, 7 }
  0x18   : > { %441 = vmatprep.subr.mxu0 %v7063_v5  ;;  %v563_v30 = vand.u32 4294901760, %v7102_v19  ;;  %v7152_v31 = vand.u32 4294901760, %v7117_v22  ;;  %v7155_v32 = vsub.f32 %v391_v6, %v7076_v10  ;;  %v7158_v33 = vand.u32 4294901760, %v7135_v27  ;;  %v7172_v38 = vld [vmem:[%s8887_s1] sm:$0xff]  ;;  %s352_s18 = sand.u32 1, %s6932_s14   ;;  %s5543_s29 = sshll.u32 %s7022_s17, 9 }
  0x19   : > { %443 = vmatpush1.msra.mxu0 %v7076_v10  ;;  %v569_v34 = vand.u32 4294901760, %v7124_v24  ;;  %v575_v35 = vand.u32 4294901760, %v7130_v26  ;;  %v7164_v36 = vsub.f32 %v390_v7, %v7078_v11  ;;  %v7167_v37 = vand.u32 4294901760, %v7140_v28  ;;  %s9182_s11 = smov (!%p363_p10, %s5531_s11), 7  ;;  %s5530_s25 = sshll.u32 %s352_s18, 5 }
  0x1a   : > { %445 = vmatprep.subr.mxu0 %v7078_v11  ;;  %v564_v39 = vsub.f32 %v7102_v19, %v563_v30  ;;  %v581_v40 = vand.u32 4294901760, %v7155_v32  ;;  %v7184_v41 = vsub.f32 %v389_v8, %v7080_v12  ;;  %v7187_v42 = vand.u32 4294901760, %v7145_v29  ;;  %s5532_s27 = sshll.u32 %s9182_s11, 3  ;;  %s354_s26 = scalar_lea.vmem [#allocation2], %s5530_s25 }
  0x1b   : > { %447 = vmatpush1.msra.mxu0 %v7080_v12  ;;  %v570_v43 = vsub.f32 %v7124_v24, %v569_v34  ;;  %v576_v44 = vsub.f32 %v7130_v26, %v575_v35  ;;  %v587_v45 = vand.u32 4294901760, %v7164_v36  ;;  %v7198_v46 = vsub.f32 %v388_v13, %v7094_v16  ;;  %s7214_s30 = scalar_lea.vmem %s8886_s0, %s5532_s27  ;;  %s373_s12 = scalar_lea.vmem %s8896_s10, %s5532_s27 }
  0x1c   : > { %449 = vmatprep.subr.mxu0 %v7094_v16  ;;  %v565_v47 = vand.u32 4294901760, %v564_v39  ;;  %v582_v48 = vsub.f32 %v7155_v32, %v581_v40  ;;  %v593_v49 = vand.u32 4294901760, %v7184_v41  ;;  %v7207_v50 = vand.u32 4294901760, %v7172_v38  ;;  %v375_v55 = vld [vmem:[%s7214_s30] sm:$0xff]  ;;  %v376_v0 = vld [vmem:[%s7214_s30 + $0x8] sm:$0xff]  ;;  %s5435_s28 = sshll.u32 %s354_s26, 4  ;;  %s8842_s11 = scalar_lea.hbm %s8895_s9, %s5543_s29  ;;  %s8837_s28 = int_to_ptr.vmem [resolvable:$true] %s5435_s28 }
  0x1d   : > { %451 = vmatpush1.msra.mxu0 %v7096_v17  ;;  %v571_v51 = vand.u32 4294901760, %v570_v43  ;;  %v577_v52 = vand.u32 4294901760, %v576_v44  ;;  %v588_v53 = vsub.f32 %v7164_v36, %v587_v45  ;;  %v599_v54 = vand.u32 4294901760, %v7198_v46  ;;  %s8846_s27 = scalar_lea.sflag [#allocation3], %s352_s18  ;;  %s6880_s17 = scalar_lea.vmem %s8837_s28, 512 }
  0x1e   : > { %453 = vmatprep.subr.mxu0 %v7099_v18  ;;  %566 = vmatprep.subr.mxu1 %v565_v47  ;;  %v583_v56 = vand.u32 4294901760, %v582_v48  ;;  %v594_v57 = vsub.f32 %v7184_v41, %v593_v49  ;;  %v7227_v58 = vsub.f32 %v387_v14, %v7096_v17  ;;  %v409_v59 = vsel %vm407_vm0, %v375_v55, 0  ;;  %p6881_p11 = scmp.ne.s32.totalorder %s8837_s28, %s6880_s17  ;;  %s6943_s20 = smov [#allocation2]  }
  0x1f   : > { %455 = vmatpush1.msra.mxu0 %v7121_v23  ;;  %572 = vmatpush1.msra.mxu1 %v571_v51  ;;  %v589_v60 = vand.u32 4294901760, %v588_v53  ;;  %v600_v61 = vsub.f32 %v7198_v46, %v599_v54  ;;  %v7234_v62 = vand.u32 4294901760, %v409_v59  ;;  %v7238_v63 = vsub.f32 %v7091_v15, %v7099_v18  ;;  %s6884_s21 = sshll.u32 %s6943_s20, 4  ;;  %s6885_s21 = int_to_ptr.vmem [resolvable:$false] %s6884_s21 }
  0x20   : > { %457 = vmatprep.subr.mxu0 %v7127_v25  ;;  %578 = vmatprep.subr.mxu1 %v577_v52  ;;  %v595_v1 = vand.u32 4294901760, %v594_v57  ;;  %v605_v2 = vand.u32 4294901760, %v7227_v58  ;;  %v7245_v6 = vsub.f32 %v7107_v20, %v7121_v23  ;;  %v7249_v7 = vsub.f32 %v7112_v21, %v7127_v25  ;;  %p6882_p12 = pnand %p6881_p11, %p7039_p5  ;;  %s6886_s25 = scalar_lea.vmem %s6885_s21, 1024 }
  0x21   : > { %459 = vmatpush1.msra.mxu0 %v7152_v31  ;;  %584 = vmatpush1.msra.mxu1 %v583_v56  ;;  %v601_v8 = vand.u32 4294901760, %v600_v61  ;;  %v7253_v13 = vsub.f32 %v409_v59, %v7234_v62  ;;  %v611_v14 = vand.u32 4294901760, %v7238_v63  ;;  %v7258_v15 = vsub.f32 %v7117_v22, %v7152_v31  ;;  %v377_v61 = vld [vmem:[%s7214_s30 + $0x10] sm:$0xff]  ;;  %p6887_p0 = scmp.lt.s32.totalorder %s8837_s28, %s6885_s21  ;;  %p6888_p1 = scmp.lt.s32.totalorder %s6886_s25, %s6880_s17 }
  0x22   : > { %461 = vmatprep.subr.mxu0 %v7158_v33  ;;  %590 = vmatprep.subr.mxu1 %v589_v60  ;;  %v606_v20 = vsub.f32 %v7227_v58, %v605_v2  ;;  %v617_v21 = vand.u32 4294901760, %v7245_v6  ;;  %v8897_v39 = vand.u32 4294901760, %v7249_v7  ;;  %v412_v43 = vsel %vm407_vm0, %v376_v0, 0  ;;  %p6883_p13 = pneg %p6882_p12 }
  0x23   : > { %463 = vmatpush1.msra.mxu0 %v7167_v37  ;;  %596 = vmatpush1.msra.mxu1 %v595_v1  ;;  %v503_v22 = vand.u32 4294901760, %v7253_v13  ;;  %v612_v44 = vsub.f32 %v7238_v63, %v611_v14  ;;  %v8898_v47 = vand.u32 4294901760, %v7258_v15  ;;  %v7273_v48 = vand.u32 4294901760, %v412_v43  ;;  %p6889_p2 = por %p6888_p1, %p6887_p0 }
  0x24   : > { %465 = vmatprep.subr.mxu0 %v7187_v42  ;;  %602 = vmatprep.subr.mxu1 %v601_v8  ;;  %v607_v51 = vand.u32 4294901760, %v606_v20  ;;  %v618_v52 = vsub.f32 %v7245_v6, %v617_v21  ;;  %v624_v53 = vsub.f32 %v7249_v7, %v8897_v39  ;;  %v7284_v55 = vsub.f32 %v7135_v27, %v7158_v33  ;;  %v378_v20 = vld [vmem:[%s7214_s30 + $0x18] sm:$0xff] }
  0x25   : > { %467 = vmatpush1.msra.mxu0 %v7207_v50  ;;  %v504_v56 = vsub.f32 %v7253_v13, %v503_v22  ;;  %v613_v57 = vand.u32 4294901760, %v612_v44  ;;  %v630_v59 = vsub.f32 %v7258_v15, %v8898_v47  ;;  %v7294_v60 = vsub.f32 %v412_v43, %v7273_v48  ;;  %p6890_p3 = pnand %p6889_p2, %p6883_p13 }
  0x26   : > { %608 = vmatpush1.msra.mxu1 %v607_v51  ;;  %736 = vmatprep.subr.mxu0 %v7102_v19  ;;  %v619_v27 = vand.u32 4294901760, %v618_v52  ;;  %v625_v0 = vand.u32 4294901760, %v624_v53  ;;  %v8899_v1 = vand.u32 4294901760, %v7284_v55  ;;  %v7301_v8 = vsub.f32 %v7140_v28, %v7167_v37 }
  0x27   : > { %v505_v44 = vand.u32 4294901760, %v504_v56  ;;  %614 = vmatprep.subr.mxu1 %v613_v57  ;;  %v631_v39 = vand.u32 4294901760, %v630_v59  ;;  %v8901_v47 = vand.u32 4294901760, %v7294_v60  ;;  %v7307_v43 = vsub.f32 %v7145_v29, %v7187_v42 }
  0x28   : > { %620 = vmatpush1.msra.mxu1 %v619_v27  ;;  %v636_v51 = vsub.f32 %v7284_v55, %v8899_v1  ;;  %v8900_v52 = vand.u32 4294901760, %v7301_v8  ;;  %v7315_v28 = vsub.f32 %v7172_v38, %v7207_v50  ;;  %v415_v53 = vsel %vm407_vm0, %v377_v61, 0 }
  0x29   : > { %506 = vmatmul.mubr.f32.vlgmr.msra.gmra.mxu0 %v505_v44  ;;  %626 = vmatprep.subr.mxu1 %v625_v0  ;;  %v515_v29 = vsub.f32 %v7294_v60, %v8901_v47  ;;  %v647_v56 = vand.u32 4294901760, %v7307_v43  ;;  %v7322_v57 = vand.u32 4294901760, %v415_v53  ;;  %v418_v59 = vsel %vm407_vm0, %v378_v20, 0 }
  0x2a   : > { %739 = vmatpush1.msra.mxu0 %v7124_v24  ;;  %511 = vmatprep.mubr.f32.mxu0 %v6942_v9  ;;  %v637_v38 = vand.u32 4294901760, %v636_v51  ;;  %v642_v61 = vsub.f32 %v7301_v8, %v8900_v52  ;;  %v653_v27 = vand.u32 4294901760, %v7315_v28  ;;  %v7331_v0 = vand.u32 4294901760, %v418_v59 }
  0x2b   : > { %742 = vmatprep.subr.mxu0 %v7130_v26  ;;  %632 = vmatpush1.msra.mxu1 %v631_v39  ;;  %v516_v44 = vand.u32 4294901760, %v515_v29  ;;  %v648_v20 = vsub.f32 %v7307_v43, %v647_v56  ;;  %v7338_v1 = vsub.f32 %v415_v53, %v7322_v57  ;;  %v9030_v19 = vand.u32 4294901760, %v7249_v7 }
  0x2c   : > { %745 = vmatpush1.msra.mxu0 %v7155_v32  ;;  %638 = vmatprep.subr.mxu1 %v637_v38  ;;  %v643_v51 = vand.u32 4294901760, %v642_v61  ;;  %v654_v52 = vsub.f32 %v7315_v28, %v653_v27  ;;  %v7345_v47 = vsub.f32 %v418_v59, %v7331_v0  ;;  %v9031_v24 = vand.u32 4294901760, %v7258_v15 }
  0x2d   : > { %517 = vmatmul.mubr.f32.gmra.mxu0 %v516_v44  ;;  %748 = vmatprep.subr.mxu0 %v7164_v36  ;;  %v649_v39 = vand.u32 4294901760, %v648_v20  ;;  %v525_v29 = vand.u32 4294901760, %v7338_v1  ;;  %v1228_v20 = vld [vmem:[%s8889_s3 + $0x30] sm:$0xff]  ;;  %vm2026_vm1 = vcmask 1043456   ;;  %vm2013_vm2 = vcmask 31744  }
  0x2e   : > { %644 = vmatpush1.msra.mxu1 %v643_v51  ;;  %751 = vmatpush1.msra.mxu0 %v7184_v41  ;;  %v655_v53 = vand.u32 4294901760, %v654_v52  ;;  %v536_v38 = vand.u32 4294901760, %v7345_v47  ;;  %v1233_v41 = vld [vmem:[%s8889_s3 + $0x58] sm:$0xff] }
  0x2f   : > { %650 = vmatprep.subr.mxu1 %v649_v39  ;;  %754 = vmatprep.subr.mxu0 %v7198_v46  ;;  %v526_v59 = vsub.f32 %v7338_v1, %v525_v29 }
  0x30   : > { %522 = vmatprep.mubr.f32.mxu0 %v6942_v9  ;;  %656 = vmatpush1.msra.mxu1 %v655_v53  ;;  %v537_v61 = vsub.f32 %v7345_v47, %v536_v38 }
  0x31   : > { %757 = vmatpush1.msra.mxu0 %v7227_v58  ;;  %v527_v44 = vand.u32 4294901760, %v526_v59  ;;  %691 = vmatmul.mubr.f32.vlgmr.msra.gmra.mxu1 %v7234_v62  ;;  %v1227_v59 = vld [vmem:[%s8889_s3 + $0x28] sm:$0xff] }
  0x32   : > { %760 = vmatprep.subr.mxu0 %v7238_v63  ;;  %864 = vmatprep.subr.mxu1 %v7059_v3  ;;  %v538_v52 = vand.u32 4294901760, %v537_v61 }
  0x33   : > { %528 = vmatmul.mubr.f32.gmra.mxu0 %v527_v44  ;;  %866 = vmatpush1.msra.mxu1 %v7061_v4 }
  0x34   : > { %763 = vmatpush1.msra.mxu0 %v7245_v6  ;;  %868 = vmatprep.subr.mxu1 %v7063_v5 }
  0x35   : > { %766 = vmatprep.subr.mxu0 %v7249_v7  ;;  %533 = vmatprep.mubr.f32.mxu0 %v6942_v9  ;;  %v1231_v7 = vld [vmem:[%s8889_s3 + $0x48] sm:$0xff] }
  0x36   : > { %696 = vmatprep.mubr.f32.mxu1 %v6942_v9  ;;  %769 = vmatpush1.msra.mxu0 %v7258_v15 }
  0x37   : > { %870 = vmatpush1.msra.mxu1 %v7076_v10  ;;  %539 = vmatmul.mubr.f32.gmra.mxu0 %v538_v52 }
  0x38   : > { %698 = vmatmul.mubr.f32.gmra.mxu1 %v7273_v48  ;;  %772 = vmatprep.subr.mxu0 %v7284_v55 }
  0x39   : > { %872 = vmatprep.subr.mxu1 %v7078_v11  ;;  %775 = vmatpush1.msra.mxu0 %v7301_v8 }
  0x3a   : > { %874 = vmatpush1.msra.mxu1 %v7080_v12  ;;  %778 = vmatprep.subr.mxu0 %v7307_v43  ;;  %v1229_v43 = vld [vmem:[%s8889_s3 + $0x38] sm:$0xff] }
  0x3b   : > { %876 = vmatprep.subr.mxu1 %v7094_v16  ;;  %703 = vmatprep.mubr.f32.mxu1 %v6942_v9 }
  0x3c   : > { %781 = vmatpush1.msra.mxu0 %v7315_v28  ;;  %814 = vmatprep.mubr.f32.mxu0 %v6942_v9 }
  0x3d   : > { %878 = vmatpush1.msra.mxu1 %v7096_v17  ;;  %817 = vmatmul.mubr.f32.vlgmr.msra.gmra.mxu0 %v7253_v13 }
  0x3e   : > { %705 = vmatmul.mubr.f32.gmra.mxu1 %v7322_v57  ;;  %880 = vmatprep.subr.mxu1 %v7099_v18 }
  0x3f   : > { %983 = vmatprep.subr.mxu0 %v563_v30  ;;  %882 = vmatpush1.msra.mxu1 %v7121_v23  ;;  %v1235_v30 = vld [vmem:[%s8889_s3 + $0x68] sm:$0xff] }
  0x40   : > { %987 = vmatpush1.msra.mxu0 %v569_v34  ;;  %884 = vmatprep.subr.mxu1 %v7127_v25  ;;  %v1234_v34 = vld [vmem:[%s8889_s3 + $0x60] sm:$0xff] }
  0x41   : > { %991 = vmatprep.subr.mxu0 %v575_v35  ;;  %710 = vmatprep.mubr.f32.mxu1 %v6942_v9 }
  0x42   : > { %822 = vmatprep.mubr.f32.mxu0 %v6942_v9  ;;  %886 = vmatpush1.msra.mxu1 %v7152_v31 }
  0x43   : > { %995 = vmatpush1.msra.mxu0 %v581_v40  ;;  %712 = vmatmul.mubr.f32.gmra.mxu1 %v7331_v0  ;;  %v7526_v40 = vand.u32 4294901760, %v1234_v34 }
  0x44   : > { %825 = vmatmul.mubr.f32.gmra.mxu0 %v7294_v60  ;;  %888 = vmatprep.subr.mxu1 %v7158_v33 }
  0x45   : > { %999 = vmatprep.subr.mxu0 %v587_v45  ;;  %890 = vmatpush1.msra.mxu1 %v7167_v37 }
  0x46   : > { %1003 = vmatpush1.msra.mxu0 %v593_v49  ;;  %892 = vmatprep.subr.mxu1 %v7187_v42  ;;  %v7541_v49 = vsub.f32 %v1234_v34, %v7526_v40 }
  0x47   : > { %1007 = vmatprep.subr.mxu0 %v599_v54  ;;  %830 = vmatprep.mubr.f32.mxu0 %v6942_v9  ;;  %v1232_v54 = vld [vmem:[%s8889_s3 + $0x50] sm:$0xff] }
  0x48   : > { %894 = vmatpush1.msra.mxu1 %v7207_v50  ;;  %927 = vmatprep.mubr.f32.mxu1 %v6942_v9  ;;  %v7556_v63 = vand.u32 4294901760, %v7541_v49 }
  0x49   : > { %1011 = vmatpush1.msra.mxu0 %v605_v2  ;;  %931 = vmatmul.mubr.f32.vlgmr.msra.gmra.mxu1 %v503_v22  ;;  %v7558_v2 = vand.u32 4294901760, %v1232_v54 }
  0x4a   : > { %833 = vmatmul.mubr.f32.gmra.mxu0 %v7338_v1  ;;  %1015 = vmatprep.subr.mxu0 %v611_v14  ;;  %9040 = vst [vmem:[#allocation10_spill] sm:$0xff] %v7556_v63  ;;  %v1384_v14 = vsub.f32 %v7541_v49, %v7556_v63 }
  0x4b   : > { %1122 = vmatprep.subr.mxu1 %v7059_v3  ;;  %1019 = vmatpush1.msra.mxu0 %v617_v21  ;;  %v9032_v3 = vand.u32 4294901760, %v7294_v60  ;;  %v7574_v15 = vsub.f32 %v1232_v54, %v7558_v2  ;;  %v7576_v21 = vand.u32 4294901760, %v1231_v7  ;;  %v1224_v54 = vld [vmem:[%s8889_s3 + $0x10] sm:$0xff] }
  0x4c   : > { %1124 = vmatpush1.msra.mxu1 %v7061_v4  ;;  %1023 = vmatprep.subr.mxu0 %v9030_v19  ;;  %v9033_v4 = vand.u32 4294901760, %v7284_v55  ;;  %v7651_v19 = vand.u32 4294901760, %v1227_v59 }
  0x4d   : > { %1126 = vmatprep.subr.mxu1 %v7063_v5  ;;  %838 = vmatprep.mubr.f32.mxu0 %v6942_v9  ;;  %v9034_v5 = vand.u32 4294901760, %v7301_v8  ;;  %v7591_v55 = vand.u32 4294901760, %v7574_v15  ;;  %v7594_v60 = vsub.f32 %v1231_v7, %v7576_v21 }
  0x4e   : > { %936 = vmatprep.mubr.f32.mxu1 %v6942_v9  ;;  %1027 = vmatpush1.msra.mxu0 %v9031_v24 }
  0x4f   : > { %1128 = vmatpush1.msra.mxu1 %v7076_v10  ;;  %841 = vmatmul.mubr.f32.gmra.mxu0 %v7345_v47  ;;  %v397_v10 = vlaneseq  ;;  %v1230_v47 = vld [vmem:[%s8889_s3 + $0x40] sm:$0xff]  ;;  %9044 = vst [vmem:[#allocation14_spill] sm:$0xff] %v7591_v55  ;;  %v1398_v28 = vsub.f32 %v7574_v15, %v7591_v55 }
  0x50   : > { %940 = vmatmul.mubr.f32.gmra.mxu1 %v9032_v3  ;;  %1031 = vmatprep.subr.mxu0 %v9033_v4  ;;  %v7596_v1 = vand.u32 4294901760, %v1230_v47  ;;  %v1226_v3 = vld [vmem:[%s8889_s3 + $0x20] sm:$0xff] }
  0x51   : > { %1130 = vmatprep.subr.mxu1 %v7078_v11  ;;  %1035 = vmatpush1.msra.mxu0 %v9034_v5  ;;  %v7474_v11 = vshrl.u32 %v397_v10, 7  ;;  %v7625_v51 = vand.u32 4294901760, %v1398_v28  ;;  %v7668_v10 = vsub.f32 %v1227_v59, %v7651_v19 }
  0x52   : > { %1132 = vmatpush1.msra.mxu1 %v7080_v12  ;;  %1039 = vmatprep.subr.mxu0 %v647_v56  ;;  %v7480_v12 = vld [vmem:[%s8888_s2] sm:$0x3]  ;;  %v7610_v56 = vand.u32 4294901760, %v7594_v60 }
  0x53   : > { %1134 = vmatprep.subr.mxu1 %v7094_v16  ;;  %945 = vmatprep.mubr.f32.mxu1 %v6942_v9  ;;  %v403_v16 = vsub.s32 1, %v7474_v11  ;;  %9047 = vst [vmem:[#allocation17_spill] sm:$0xff] %v7625_v51  ;;  %9054 = vst [vmem:[#allocation24_spill] sm:$0xff] %v7668_v10  ;;  %v7685_v34 = vand.u32 4294901760, %v7668_v10 }
  0x54   : > { %1043 = vmatpush1.msra.mxu0 %v653_v27  ;;  %1076 = vmatprep.mubr.f32.mxu0 %v6942_v9  ;;  %9045 = vst [vmem:[#allocation15_spill] sm:$0xff] %v7610_v56  ;;  %v7615_v27 = vand.u32 4294901760, %v1229_v43  ;;  %v1405_v39 = vsub.f32 %v7594_v60, %v7610_v56 }
  0x55   : > { %1136 = vmatpush1.msra.mxu1 %v7096_v17  ;;  %1078 = vmatmul.mubr.f32.vlgmr.msra.gmra.mxu0 %v7234_v62  ;;  %v7485_v17 = vrot.slane %v7480_v12, %v403_v16  ;;  %v7670_v16 = vand.u32 4294901760, %v1226_v3  ;;  %9057 = vst [vmem:[#allocation27_spill] sm:$0xff] %v7685_v34 }
  0x56   : > { %949 = vmatmul.mubr.f32.gmra.mxu1 %v525_v29  ;;  %1138 = vmatprep.subr.mxu1 %v7099_v18  ;;  %v1237_v18 = vld [vmem:[%s8889_s3 + $0x78] sm:$0xff]  ;;  %v7633_v53 = vsub.f32 %v1229_v43, %v7615_v27  ;;  %v7644_v61 = vand.u32 4294901760, %v1405_v39  ;;  %v1223_v43 = vld [vmem:[%s8889_s3 + $0x8] sm:$0xff] }
  0x57   : > { %1140 = vmatpush1.msra.mxu1 %v7121_v23  ;;  %954 = vmatprep.mubr.f32.mxu1 %v6942_v9  ;;  %v7490_v23 = vand.u32 4294901760, %v1237_v18 }
  0x58   : > { %1142 = vmatprep.subr.mxu1 %v7127_v25  ;;  %1083 = vmatprep.mubr.f32.mxu0 %v6942_v9  ;;  %9049 = vst [vmem:[#allocation19_spill] sm:$0xff] %v7633_v53  ;;  %9050 = vst [vmem:[#allocation20_spill] sm:$0xff] %v7644_v61  ;;  %v7649_v52 = vand.u32 4294901760, %v7633_v53 }
  0x59   : > { %1144 = vmatpush1.msra.mxu1 %v7152_v31  ;;  %1085 = vmatmul.mubr.f32.gmra.mxu0 %v7273_v48  ;;  %v7496_v25 = vsub.f32 %v1237_v18, %v7490_v23 }
  0x5a   : > { %958 = vmatmul.mubr.f32.gmra.mxu1 %v536_v38  ;;  %1146 = vmatprep.subr.mxu1 %v7158_v33  ;;  %v7511_v33 = vand.u32 4294901760, %v1235_v30  ;;  %v7637_v38 = vand.u32 4294901760, %v1228_v20  ;;  %9051 = vst [vmem:[#allocation21_spill] sm:$0xff] %v7649_v52  ;;  %v1419_v5 = vsub.f32 %v7633_v53, %v7649_v52 }
  0x5b   : > { %1148 = vmatpush1.msra.mxu1 %v7167_v37  ;;  %1090 = vmatprep.mubr.f32.mxu0 %v6942_v9  ;;  %v7506_v31 = vand.u32 4294901760, %v7496_v25 }
  0x5c   : > { %1150 = vmatprep.subr.mxu1 %v7187_v42  ;;  %1185 = vmatprep.mubr.f32.mxu1 %v6942_v9  ;;  %v7524_v37 = vsub.f32 %v1235_v30, %v7511_v33  ;;  %v7656_v24 = vsub.f32 %v1228_v20, %v7637_v38  ;;  %v7682_v30 = vand.u32 4294901760, %v1419_v5 }
  0x5d   : > { %1152 = vmatpush1.msra.mxu1 %v7207_v50  ;;  %1092 = vmatmul.mubr.f32.gmra.mxu0 %v7322_v57  ;;  %9035 = vst [vmem:[#allocation5_spill] sm:$0xff] %v7506_v31  ;;  %v1363_v35 = vsub.f32 %v7496_v25, %v7506_v31  ;;  %v7544_v50 = vand.u32 4294901760, %v1233_v41 }
  0x5e   : > { %1187 = vmatmul.mubr.f32.vlgmr.msra.gmra.mxu1 %v7234_v62  ;;  %1097 = vmatprep.mubr.f32.mxu0 %v6942_v9  ;;  %v7538_v46 = vand.u32 4294901760, %v7524_v37  ;;  %9052 = vst [vmem:[#allocation22_spill] sm:$0xff] %v7656_v24  ;;  %v7675_v18 = vand.u32 4294901760, %v7656_v24  ;;  %9056 = vst [vmem:[#allocation26_spill] sm:$0xff] %v7682_v30 }
  0x5f   : > { %1192 = vmatprep.mubr.f32.mxu1 %v6942_v9  ;;  %5994 = vmatprep.subr.mxu0 %v7490_v23  ;;  %v7533_v42 = vand.u32 4294901760, %v1363_v35  ;;  %v7562_v6 = vsub.f32 %v1233_v41, %v7544_v50  ;;  %v7688_v35 = vsub.f32 %v1226_v3, %v7670_v16  ;;  %v1222_v3 = vld [vmem:[%s8889_s3] sm:$0xff] }
  0x60   : > { %5995 = vmatpush3.msra.mxu0 %v7490_v23  ;;  %9038 = vst [vmem:[#allocation8_spill] sm:$0xff] %v7538_v46  ;;  %v1377_v62 = vsub.f32 %v7524_v37, %v7538_v46  ;;  %9055 = vst [vmem:[#allocation25_spill] sm:$0xff] %v7675_v18 }
  0x61   : > { %1099 = vmatmul.mubr.f32.gmra.mxu0 %v7331_v0  ;;  %9037 = vst [vmem:[#allocation7_spill] sm:$0xff] %v7533_v42  ;;  %6032 = vmatprep.subr.mxu1 %v7533_v42  ;;  %v7581_v22 = vand.u32 4294901760, %v7562_v6  ;;  %9058 = vst [vmem:[#allocation28_spill] sm:$0xff] %v7688_v35  ;;  %v7704_v7 = vand.u32 4294901760, %v7688_v35 }
  0x62   : > { %1194 = vmatmul.mubr.f32.gmra.mxu1 %v7273_v48  ;;  %v7569_v13 = vand.u32 4294901760, %v1377_v62  ;;  %v7588_v48 = vand.u32 4294901760, %v1384_v14  ;;  %v1433_v62 = vsub.f32 %v7668_v10, %v7685_v34 }
  0x63   : > { %1199 = vmatprep.mubr.f32.mxu1 %v6942_v9  ;;  %6033 = vmatpush3.msra.mxu1 %v7533_v42  ;;  %9042 = vst [vmem:[#allocation12_spill] sm:$0xff] %v7581_v22  ;;  %v1391_v8 = vsub.f32 %v7562_v6, %v7581_v22  ;;  %9059 = vst [vmem:[#allocation29_spill] sm:$0xff] %v7704_v7  ;;  %v1440_v20 = vsub.f32 %v7688_v35, %v7704_v7 }
  0x64   : > { %9041 = vst [vmem:[#allocation11_spill] sm:$0xff] %v7569_v13  ;;  %9043 = vst [vmem:[#allocation13_spill] sm:$0xff] %v7588_v48  ;;  %v7720_v28 = vand.u32 4294901760, %v1433_v62 }
  0x65   : > { %v7739_v5 = vand.u32 4294901760, %v1440_v20 }
  0x66   : > { %1201 = vmatmul.mubr.f32.gmra.mxu1 %v7322_v57  ;;  %v7613_v57 = vsub.f32 %v1230_v47, %v7596_v1  ;;  %v7709_v47 = vand.u32 4294901760, %v1224_v54  ;;  %9063 = vst [vmem:[#allocation33_spill] sm:$0xff] %v7720_v28 }
  0x67   : > { %1206 = vmatprep.mubr.f32.mxu1 %v6942_v9  ;;  %v1236_v9 = vld [vmem:[%s8889_s3 + $0x70] sm:$0xff]  ;;  %9067 = vst [vmem:[#allocation37_spill] sm:$0xff] %v7739_v5 }
  0x68   : > { %v7498_v26 = vand.u32 4294901760, %v1236_v9  ;;  %v7630_v29 = vand.u32 4294901760, %v7613_v57  ;;  %9061 = vst [vmem:[#allocation31_spill] sm:$0xff] %v7709_v47  ;;  %v7728_v59 = vsub.f32 %v1224_v54, %v7709_v47  ;;  %v7746_v54 = vand.u32 4294901760, %v1222_v3 }
  0x6a   : > { %1208 = vmatmul.mubr.f32.gmra.mxu1 %v7331_v0  ;;  %v7509_v32 = vsub.f32 %v1236_v9, %v7498_v26  ;;  %5996 = vmatprep.subr.mxu0 %v7498_v26  ;;  %v7619_v0 = vand.u32 4294901760, %v1391_v8  ;;  %9048 = vst [vmem:[#allocation18_spill] sm:$0xff] %v7630_v29  ;;  %v1412_v44 = vsub.f32 %v7613_v57, %v7630_v29  ;;  %v1225_v9 = vld [vmem:[%s8889_s3 + $0x18] sm:$0xff]  ;;  %9065 = vst [vmem:[#allocation35_spill] sm:$0xff] %v7728_v59 }
  0x6b   : > { %5997 = vmatpush3.msra.mxu0 %v7498_v26  ;;  %v7690_v41 = vand.u32 4294901760, %v1225_v9  ;;  %9069 = vst [vmem:[#allocation39_spill] sm:$0xff] %v7746_v54 }
  0x6c   : > { %v7521_v36 = vand.u32 4294901760, %v7509_v32  ;;  %5998 = vmatprep.subr.mxu0 %v7511_v33  ;;  %9046 = vst [vmem:[#allocation16_spill] sm:$0xff] %v7619_v0  ;;  %v7663_v4 = vand.u32 4294901760, %v1412_v44  ;;  %v7732_v44 = vand.u32 4294901760, %v1223_v43 }
  0x6d   : > { %5999 = vmatpush3.msra.mxu0 %v7511_v33  ;;  %v7707_v14 = vsub.f32 %v1225_v9, %v7690_v41 }
  0x6e   : > { %9036 = vst [vmem:[#allocation6_spill] sm:$0xff] %v7521_v36  ;;  %v1370_v45 = vsub.f32 %v7509_v32, %v7521_v36  ;;  %6000 = vmatprep.subr.mxu0 %v7526_v40  ;;  %9053 = vst [vmem:[#allocation23_spill] sm:$0xff] %v7663_v4  ;;  %v7751_v62 = vsub.f32 %v1223_v43, %v7732_v44  ;;  %v399_v36 = vsub.s32 0, %v7474_v11 }
  0x6f   : > { %6001 = vmatpush3.msra.mxu0 %v7526_v40  ;;  %9060 = vst [vmem:[#allocation30_spill] sm:$0xff] %v7707_v14  ;;  %v7725_v39 = vand.u32 4294901760, %v7707_v14  ;;  %9066 = vst [vmem:[#allocation36_spill] sm:$0xff] %v7732_v44 }
  0x70   : > { %v7551_v58 = vand.u32 4294901760, %v1370_v45  ;;  %6002 = vmatprep.subr.mxu0 %v7544_v50  ;;  %v1426_v45 = vsub.f32 %v7656_v24, %v7675_v18  ;;  %9070 = vst [vmem:[#allocation40_spill] sm:$0xff] %v7751_v62 }
  0x71   : > { %6003 = vmatpush3.msra.mxu0 %v7544_v50  ;;  %9064 = vst [vmem:[#allocation34_spill] sm:$0xff] %v7725_v39  ;;  %v1447_v9 = vsub.f32 %v7707_v14, %v7725_v39 }
  0x72   : > { %9039 = vst [vmem:[#allocation9_spill] sm:$0xff] %v7551_v58  ;;  %6034 = vmatprep.subr.mxu1 %v7551_v58  ;;  %6004 = vmatprep.subr.mxu0 %v7558_v2  ;;  %v7713_v8 = vand.u32 4294901760, %v1426_v45  ;;  %v7744_v45 = vand.u32 4294901760, %v7728_v59 }
  0x73   : > { %6035 = vmatpush3.msra.mxu1 %v7551_v58  ;;  %6005 = vmatpush3.msra.mxu0 %v7558_v2  ;;  %v7755_v20 = vand.u32 4294901760, %v1447_v9 }
  0x74   : > { %6036 = vmatprep.subr.mxu1 %v7569_v13  ;;  %6006 = vmatprep.subr.mxu0 %v7576_v21  ;;  %9062 = vst [vmem:[#allocation32_spill] sm:$0xff] %v7713_v8  ;;  %9068 = vst [vmem:[#allocation38_spill] sm:$0xff] %v7744_v45 }
  0x75   : > { %6037 = vmatpush3.msra.mxu1 %v7569_v13  ;;  %6007 = vmatpush3.msra.mxu0 %v7576_v21  ;;  %9071 = vst [vmem:[#allocation41_spill] sm:$0xff] %v7755_v20 }
  0x76   : > { %6038 = vmatprep.subr.mxu1 %v7588_v48  ;;  %6008 = vmatprep.subr.mxu0 %v7596_v1 }
  0x77   : > { %6039 = vmatpush3.msra.mxu1 %v7588_v48  ;;  %6009 = vmatpush3.msra.mxu0 %v7596_v1 }
  0x78   : > { %6040 = vmatprep.subr.mxu1 %v7619_v0  ;;  %6010 = vmatprep.subr.mxu0 %v7615_v27 }
  0x79   : > { %6041 = vmatpush3.msra.mxu1 %v7619_v0  ;;  %6011 = vmatpush3.msra.mxu0 %v7615_v27 }
  0x7a   : > { %6042 = vmatprep.subr.mxu1 %v7625_v51  ;;  %6012 = vmatprep.subr.mxu0 %v7637_v38 }
  0x7b   : > { %6043 = vmatpush3.msra.mxu1 %v7625_v51  ;;  %6013 = vmatpush3.msra.mxu0 %v7637_v38 }
  0x7c   : > { %6044 = vmatprep.subr.mxu1 %v7644_v61  ;;  %6014 = vmatprep.subr.mxu0 %v7651_v19 }
  0x7d   : > { %6045 = vmatpush3.msra.mxu1 %v7644_v61  ;;  %6015 = vmatpush3.msra.mxu0 %v7651_v19 }
  0x7e   : > { %6046 = vmatprep.subr.mxu1 %v7663_v4  ;;  %6016 = vmatprep.subr.mxu0 %v7670_v16 }
  0x7f   : > { %6047 = vmatpush3.msra.mxu1 %v7663_v4  ;;  %6017 = vmatpush3.msra.mxu0 %v7670_v16  ;;  %v7765_v4 = vand.u32 4294901760, %v7751_v62 }
  0x80   : > { %6048 = vmatprep.subr.mxu1 %v7682_v30  ;;  %6018 = vmatprep.subr.mxu0 %v7690_v41 }
  0x81   : > { %6049 = vmatpush3.msra.mxu1 %v7682_v30  ;;  %6019 = vmatpush3.msra.mxu0 %v7690_v41  ;;  %v7760_v30 = vsub.f32 %v1222_v3, %v7746_v54  ;;  %9073 = vst [vmem:[#allocation43_spill] sm:$0xff] %v7765_v4  ;;  %v1461_v3 = vsub.f32 %v7751_v62, %v7765_v4 }
  0x82   : > { %6050 = vmatprep.subr.mxu1 %v7713_v8  ;;  %6020 = vmatprep.subr.mxu0 %v7709_v47 }
  0x83   : > { %6051 = vmatpush3.msra.mxu1 %v7713_v8  ;;  %6021 = vmatpush3.msra.mxu0 %v7709_v47  ;;  %v1454_v8 = vsub.f32 %v7728_v59, %v7744_v45  ;;  %9072 = vst [vmem:[#allocation42_spill] sm:$0xff] %v7760_v30  ;;  %v7772_v9 = vand.u32 4294901760, %v7760_v30 }
  0x84   : > { %6052 = vmatprep.subr.mxu1 %v7720_v28  ;;  %6022 = vmatprep.subr.mxu0 %v7732_v44 }
  0x85   : > { %6053 = vmatpush3.msra.mxu1 %v7720_v28  ;;  %6023 = vmatpush3.msra.mxu0 %v7732_v44  ;;  %v7769_v43 = vand.u32 4294901760, %v1454_v8  ;;  %9075 = vst [vmem:[#allocation45_spill] sm:$0xff] %v7772_v9  ;;  %v1468_v28 = vsub.f32 %v7760_v30, %v7772_v9  ;;  %v7783_v8 = vand.u32 4294901760, %v1461_v3 }
  0x86   : > { %6054 = vmatprep.subr.mxu1 %v7739_v5  ;;  %6024 = vmatprep.subr.mxu0 %v7746_v54 }
  0x87   : > { %6055 = vmatpush3.msra.mxu1 %v7739_v5  ;;  %9074 = vst [vmem:[#allocation44_spill] sm:$0xff] %v7769_v43  ;;  %6025 = vmatpush3.msra.mxu0 %v7746_v54  ;;  %9076 = vst [vmem:[#allocation46_spill] sm:$0xff] %v7783_v8  ;;  %v7786_v5 = vand.u32 4294901760, %v1468_v28 }
  0x88   : > { %6056 = vmatprep.subr.mxu1 %v7755_v20  ;;  %6070 = vmatprep.subr.mxu0 %v7496_v25 }
  0x89   : > { %6057 = vmatpush3.msra.mxu1 %v7755_v20  ;;  %9077 = vst [vmem:[#allocation47_spill] sm:$0xff] %v7786_v5 }
  0x8a   : > { %6058 = vmatprep.subr.mxu1 %v7769_v43 }
  0x8b   : > { %6059 = vmatpush3.msra.mxu1 %v7769_v43 }
  0x8c   : > { %6060 = vmatprep.subr.mxu1 %v7783_v8 }
  0x8d   : > { %6061 = vmatpush3.msra.mxu1 %v7783_v8 }
  0x8e   : > { %6062 = vmatprep.subr.mxu1 %v7786_v5 }
  0x8f   : > { %6063 = vmatpush3.msra.mxu1 %v7786_v5 }
  0x90   : > { %6108 = vmatprep.subr.mxu1 %v7490_v23 }
  0xe9   : > { %v507_v20 = vpop.f32.mrf.mxu0 }
  0xeb   : > { %v509_v61 = vpop.f32.mrf.mxu0 }
  0xec   : > { %v510_v51 = vadd.f32 %v509_v61, %v7485_v17 }
  0xed   : > { %v518_v3 = vpop.f32.mrf.mxu0 }
  0xef   : > { %v520_v0 = vpop.f32.mrf.mxu0 }
  0xf0   : > { %v521_v43 = vadd.f32 %v520_v0, %v7485_v17 }
  0xf1   : > { %v692_v28 = vpop.f32.mrf.mxu1 }
  0xf3   : > { %v529_v48 = vpop.f32.mrf.mxu0  ;;  %v694_v13 = vpop.f32.mrf.mxu1 }
  0xf4   : > { %v695_v58 = vadd.f32 %v694_v13, %v510_v51 }
  0xf5   : > { %v531_v42 = vpop.f32.mrf.mxu0 }
  0xf6   : > { %v532_v8 = vadd.f32 %v531_v42, %v7485_v17 }
  0xf7   : > { %v540_v9 = vpop.f32.mrf.mxu0 }
  0xf8   : > { %v699_v4 = vpop.f32.mrf.mxu1 }
  0xf9   : > { %v542_v5 = vpop.f32.mrf.mxu0 }
  0xfa   : > { %v543_v45 = vadd.f32 %v542_v5, %v7485_v17  ;;  %v701_v39 = vpop.f32.mrf.mxu1 }
  0xfb   : > { %v702_v7 = vadd.f32 %v701_v39, %v521_v43  ;;  %v400_v43 = vrot.slane %v7480_v12, %v399_v36 }
  0xfd   : > { %v818_v34 = vpop.f32.mrf.mxu0 }
  0xfe   : > { %v706_v61 = vpop.f32.mrf.mxu1 }
  0xff   : > { %v820_v18 = vpop.f32.mrf.mxu0 }
 0x100   : > { %v708_v52 = vpop.f32.mrf.mxu1  ;;  %v821_v29 = vadd.f32 %v820_v18, %v695_v58 }
 0x101   : > { %v709_v0 = vadd.f32 %v708_v52, %v532_v8  ;;  %v508_v8 = vadd.f32 %v507_v20, %v400_v43 }
 0x103   : > { %v713_v56 = vpop.f32.mrf.mxu1 }
 0x104   : > { %v826_v55 = vpop.f32.mrf.mxu0 }
 0x105   : > { %v715_v22 = vpop.f32.mrf.mxu1 }
 0x106   : > { %v716_v13 = vadd.f32 %v715_v22, %v543_v45  ;;  %v828_v51 = vpop.f32.mrf.mxu0 }
 0x107   : > { %v829_v63 = vadd.f32 %v828_v51, %v702_v7  ;;  %v519_v7 = vadd.f32 %v518_v3, %v400_v43  ;;  %v693_v51 = vadd.f32 %v692_v28, %v508_v8 }
 0x109   : > { %v932_v42 = vpop.f32.mrf.mxu1  ;;  %v819_v35 = vadd.f32 %v818_v34, %v693_v51  ;;  %v700_v12 = vadd.f32 %v699_v4, %v519_v7  ;;  %v541_v34 = vadd.f32 %v540_v9, %v400_v43 }
 0x10a   : > { %v834_v46 = vpop.f32.mrf.mxu0 }
 0x10b   : > { %v934_v31 = vpop.f32.mrf.mxu1  ;;  %v933_v36 = vadd.f32 %v932_v42, %v819_v35 }
 0x10c   : > { %v836_v17 = vpop.f32.mrf.mxu0  ;;  %v935_v5 = vadd.f32 %v934_v31, %v821_v29 }
 0x10d   : > { %v837_v39 = vadd.f32 %v836_v17, %v709_v0  ;;  %v530_v0 = vadd.f32 %v529_v48, %v400_v43 }
 0x10f   : > { %v842_v30 = vpop.f32.mrf.mxu0  ;;  %v707_v28 = vadd.f32 %v706_v61, %v530_v0 }
 0x110   : > { %v941_v62 = vpop.f32.mrf.mxu1 }
 0x111   : > { %v844_v58 = vpop.f32.mrf.mxu0 }
 0x112   : > { %v845_v52 = vadd.f32 %v844_v58, %v716_v13  ;;  %v943_v18 = vpop.f32.mrf.mxu1  ;;  %v827_v58 = vadd.f32 %v826_v55, %v700_v12 }
 0x113   : > { %v944_v59 = vadd.f32 %v943_v18, %v829_v63 }
 0x114   : > { %v942_v8 = vadd.f32 %v941_v62, %v827_v58 }
 0x115   : > { %v1079_v22 = vpop.f32.mrf.mxu0 }
 0x116   : > { %v950_v45 = vpop.f32.mrf.mxu1  ;;  %v1080_v20 = vadd.f32 %v1079_v22, %v933_v36 }
 0x117   : > { %v1081_v14 = vpop.f32.mrf.mxu0 }
 0x118   : > { %v952_v54 = vpop.f32.mrf.mxu1  ;;  %v1082_v11 = vadd.f32 %v1081_v14, %v935_v5 }
 0x119   : > { %v953_v44 = vadd.f32 %v952_v54, %v837_v39  ;;  %v1086_v31 = vpop.f32.mrf.mxu0  ;;  %v835_v39 = vadd.f32 %v834_v46, %v707_v28 }
 0x11a   : > { %v959_v29 = vpop.f32.mrf.mxu1  ;;  %v1087_v48 = vadd.f32 %v1086_v31, %v942_v8 }
 0x11b   : > { %v1088_v17 = vpop.f32.mrf.mxu0  ;;  %v951_v55 = vadd.f32 %v950_v45, %v835_v39 }
 0x11c   : > { %v961_v10 = vpop.f32.mrf.mxu1  ;;  %v1089_v13 = vadd.f32 %v1088_v17, %v944_v59 }
 0x11d   : > { %v7799_v63 = vadd.f32 %v961_v10, %v845_v52  ;;  %v1093_v18 = vpop.f32.mrf.mxu0  ;;  %v714_v52 = vadd.f32 %v713_v56, %v541_v34 }
 0x11e   : > { %v1188_v3 = vpop.f32.mrf.mxu1  ;;  %v1094_v62 = vadd.f32 %v1093_v18, %v951_v55 }
 0x11f   : > { %9078 = vst [vmem:[#allocation48_spill] sm:$0xff] %v7799_v63  ;;  %v1189_v47 = vadd.f32 %v1188_v3, %v1080_v20  ;;  %v1095_v14 = vpop.f32.mrf.mxu0 }
 0x120   : > { %v1096_v54 = vadd.f32 %v1095_v14, %v953_v44  ;;  %v1190_v5 = vpop.f32.mrf.mxu1 }
 0x121   : > { %v7801_v4 = vmax.f32 %v1189_v47, 0.0  ;;  %v7803_v35 = vadd.f32 %v1190_v5, %v1082_v11  ;;  %v843_v47 = vadd.f32 %v842_v30, %v714_v52  ;;  %v1100_v22 = vpop.f32.mrf.mxu0  ;;  %v9083_v52 = vld [vmem:[#allocation24_spill] sm:$0xff] }
 0x122   : > { %v1195_v59 = vpop.f32.mrf.mxu1 }
 0x123   : > { %9079 = vst [vmem:[#allocation49_spill] sm:$0xff] %v7803_v35  ;;  %v7806_v10 = vand.u32 4294901760, %v7801_v4  ;;  %v1196_v42 = vadd.f32 %v1195_v59, %v1087_v48  ;;  %v960_v56 = vadd.f32 %v959_v29, %v843_v47  ;;  %v9087_v47 = vld [vmem:[#allocation30_spill] sm:$0xff] }
 0x124   : > { %v1197_v61 = vpop.f32.mrf.mxu1 }
 0x125   : > { %v7810_v9 = vsub.f32 %v7801_v4, %v7806_v10  ;;  %v7812_v44 = vmax.f32 %v1196_v42, 0.0  ;;  %v7814_v46 = vadd.f32 %v1197_v61, %v1089_v13  ;;  %6064 = vmatprep.mubr.f32.mxu1 %v7806_v10  ;;  %v1101_v30 = vadd.f32 %v1100_v22, %v960_v56  ;;  %v9082_v42 = vld [vmem:[#allocation31_spill] sm:$0xff]  ;;  %v9084_v61 = vld [vmem:[#allocation36_spill] sm:$0xff]  ;;  %v9091_v56 = vld [vmem:[#allocation5_spill] sm:$0xff] }
 0x126   : > { %v1202_v43 = vpop.f32.mrf.mxu1  ;;  %v9089_v22 = vld [vmem:[#allocation40_spill] sm:$0xff] }
 0x127   : > { %9080 = vst [vmem:[#allocation50_spill] sm:$0xff] %v7814_v46  ;;  %v7818_v45 = vand.u32 4294901760, %v7812_v44  ;;  %v1203_v7 = vadd.f32 %v1202_v43, %v1094_v62  ;;  %v1321_v11 = vand.u32 4294901760, %v7810_v9  ;;  %v9085_v62 = vld [vmem:[#allocation28_spill] sm:$0xff]  ;;  %v9088_v43 = vld [vmem:[#allocation35_spill] sm:$0xff] }
 0x128   : > { %v1204_v51 = vpop.f32.mrf.mxu1 }
 0x129   : > { %v7823_v31 = vsub.f32 %v7812_v44, %v7818_v45  ;;  %v7825_v0 = vmax.f32 %v1203_v7, 0.0  ;;  %v7827_v12 = vadd.f32 %v1204_v51, %v1096_v54  ;;  %6065 = vmatmul.mubr.f32.vlgmr.msra.gmra.mxu1 %v7818_v45  ;;  %v1322_v17 = vsub.f32 %v7810_v9, %v1321_v11  ;;  %v9090_v7 = vld [vmem:[#allocation42_spill] sm:$0xff] }
 0x12a   : > { %6109 = vmatpush3.msra.mxu1 %v7490_v23  ;;  %v1209_v36 = vpop.f32.mrf.mxu1  ;;  %v9092_v51 = vld [vmem:[#allocation6_spill] sm:$0xff] }
 0x12b   : > { %9081 = vst [vmem:[#allocation51_spill] sm:$0xff] %v7827_v12  ;;  %v1331_v29 = vand.u32 4294901760, %v7823_v31  ;;  %v7834_v13 = vand.u32 4294901760, %v7825_v0  ;;  %6110 = vmatprep.subr.mxu1 %v7498_v26  ;;  %v1210_v58 = vadd.f32 %v1209_v36, %v1101_v30  ;;  %v1323_v20 = vand.u32 4294901760, %v1322_v17  ;;  %v9095_v30 = vld [vmem:[#allocation12_spill] sm:$0xff]  ;;  %v9096_v36 = vld [vmem:[#allocation14_spill] sm:$0xff] }
 0x12c   : > { %6111 = vmatpush3.msra.mxu1 %v7498_v26  ;;  %v9098_v17 = vld [vmem:[#allocation18_spill] sm:$0xff] }
 0x12d   : > { %v1332_v18 = vsub.f32 %v7823_v31, %v1331_v29  ;;  %v7843_v3 = vsub.f32 %v7825_v0, %v7834_v13  ;;  %6112 = vmatprep.subr.mxu1 %v7511_v33  ;;  %6067 = vmatprep.mubr.f32.mxu1 %v7834_v13  ;;  %v7847_v28 = vmax.f32 %v1210_v58, 0.0  ;;  %v9100_v58 = vld [vmem:[#allocation25_spill] sm:$0xff] }
 0x12e   : > { %6026 = vmatprep.mubr.f32.mxu0 %v1323_v20  ;;  %6113 = vmatpush3.msra.mxu1 %v7511_v33  ;;  %v9101_v20 = vld [vmem:[#allocation27_spill] sm:$0xff] }
 0x12f   : > { %v1333_v8 = vand.u32 4294901760, %v1332_v18  ;;  %6114 = vmatprep.subr.mxu1 %v7526_v40  ;;  %v1341_v14 = vand.u32 4294901760, %v7843_v3  ;;  %v7853_v34 = vand.u32 4294901760, %v7847_v28  ;;  %v9102_v18 = vld [vmem:[#allocation29_spill] sm:$0xff] }
 0x130   : > { %6115 = vmatpush3.msra.mxu1 %v7526_v40 }
 0x131   : > { %6116 = vmatprep.subr.mxu1 %v7544_v50  ;;  %6027 = vmatmul.mubr.f32.vlgmr.msra.gmra.mxu0 %v1333_v8  ;;  %v1342_v54 = vsub.f32 %v7843_v3, %v1341_v14  ;;  %v7862_v5 = vsub.f32 %v7847_v28, %v7853_v34  ;;  %v9104_v8 = vld [vmem:[#allocation38_spill] sm:$0xff] }
 0x132   : > { %6068 = vmatmul.mubr.f32.gmra.mxu1 %v7853_v34  ;;  %6071 = vmatpush3.msra.mxu0 %v7496_v25 }
 0x133   : > { %6117 = vmatpush3.msra.mxu1 %v7544_v50  ;;  %6072 = vmatprep.subr.mxu0 %v7509_v32  ;;  %v1343_v39 = vand.u32 4294901760, %v1342_v54  ;;  %v1351_v48 = vand.u32 4294901760, %v7862_v5  ;;  %v9106_v54 = vld [vmem:[#allocation45_spill] sm:$0xff] }
 0x134   : > { %6118 = vmatprep.subr.mxu1 %v7558_v2  ;;  %6140 = vmatprep.mubr.f32.mxu1 %v1321_v11  ;;  %v9093_v11 = vld [vmem:[#allocation8_spill] sm:$0xff] }
 0x135   : > { %6073 = vmatpush3.msra.mxu0 %v7509_v32  ;;  %6119 = vmatpush3.msra.mxu1 %v7558_v2  ;;  %v1352_v59 = vsub.f32 %v7862_v5, %v1351_v48 }
 0x136   : > { %6074 = vmatprep.subr.mxu0 %v7524_v37  ;;  %6120 = vmatprep.subr.mxu1 %v7576_v21 }
 0x137   : > { %6029 = vmatprep.mubr.f32.mxu0 %v1343_v39  ;;  %6075 = vmatpush3.msra.mxu0 %v7524_v37  ;;  %v1353_v55 = vand.u32 4294901760, %v1352_v59 }
 0x138   : > { %6121 = vmatpush3.msra.mxu1 %v7576_v21  ;;  %6076 = vmatprep.subr.mxu0 %v7541_v49 }
 0x139   : > { %6122 = vmatprep.subr.mxu1 %v7596_v1  ;;  %6077 = vmatpush3.msra.mxu0 %v7541_v49 }
 0x13a   : > { %6123 = vmatpush3.msra.mxu1 %v7596_v1  ;;  %6078 = vmatprep.subr.mxu0 %v7562_v6 }
 0x13b   : > { %6124 = vmatprep.subr.mxu1 %v7615_v27  ;;  %6030 = vmatmul.mubr.f32.gmra.mxu0 %v1353_v55  ;;  %v8022_v55 = vpop.f32.mrf.mxu1 }
 0x13c   : > { %6079 = vmatpush3.msra.mxu0 %v7562_v6  ;;  %6125 = vmatpush3.msra.mxu1 %v7615_v27  ;;  %9111 = vst [vmem:[#allocation53_spill] sm:$0xff] %v8022_v55 }
 0x13d   : > { %6080 = vmatprep.subr.mxu0 %v7574_v15  ;;  %6102 = vmatprep.mubr.f32.mxu0 %v7810_v9  ;;  %v9086_v9 = vld [vmem:[#allocation39_spill] sm:$0xff] }
 0x13e   : > { %6126 = vmatprep.subr.mxu1 %v7637_v38  ;;  %6081 = vmatpush3.msra.mxu0 %v7574_v15 }
 0x13f   : > { %6127 = vmatpush3.msra.mxu1 %v7637_v38  ;;  %6082 = vmatprep.subr.mxu0 %v7594_v60 }
 0x140   : > { %6128 = vmatprep.subr.mxu1 %v7651_v19  ;;  %6083 = vmatpush3.msra.mxu0 %v7594_v60 }
 0x141   : > { %6129 = vmatpush3.msra.mxu1 %v7651_v19  ;;  %6084 = vmatprep.subr.mxu0 %v7613_v57 }
 0x142   : > { %6130 = vmatprep.subr.mxu1 %v7670_v16  ;;  %6085 = vmatpush3.msra.mxu0 %v7613_v57 }
 0x143   : > { %6131 = vmatpush3.msra.mxu1 %v7670_v16  ;;  %6086 = vmatprep.subr.mxu0 %v7633_v53 }
 0x144   : > { %6132 = vmatprep.subr.mxu1 %v7690_v41  ;;  %6087 = vmatpush3.msra.mxu0 %v7633_v53 }
 0x145   : > { %6133 = vmatpush3.msra.mxu1 %v7690_v41  ;;  %6088 = vmatprep.subr.mxu0 %v7656_v24 }
 0x146   : > { %6134 = vmatprep.subr.mxu1 %v9082_v42  ;;  %6089 = vmatpush3.msra.mxu0 %v7656_v24 }
 0x147   : > { %6135 = vmatpush3.msra.mxu1 %v9082_v42  ;;  %6090 = vmatprep.subr.mxu0 %v9083_v52 }
 0x148   : > { %6136 = vmatprep.subr.mxu1 %v9084_v61  ;;  %6091 = vmatpush3.msra.mxu0 %v9083_v52 }
 0x149   : > { %6137 = vmatpush3.msra.mxu1 %v9084_v61  ;;  %6092 = vmatprep.subr.mxu0 %v9085_v62 }
 0x14a   : > { %6138 = vmatprep.subr.mxu1 %v9086_v9  ;;  %6093 = vmatpush3.msra.mxu0 %v9085_v62 }
 0x14b   : > { %6139 = vmatpush3.msra.mxu1 %v9086_v9  ;;  %6094 = vmatprep.subr.mxu0 %v9087_v47 }
 0x14c   : > { %6141 = vmatmul.mubr.f32.vlgmr.msra.gmra.mxu1 %v1331_v29  ;;  %6184 = vmatprep.subr.mxu1 %v7490_v23  ;;  %v9099_v29 = vld [vmem:[#allocation21_spill] sm:$0xff] }
 0x14d   : > { %6095 = vmatpush3.msra.mxu0 %v9087_v47  ;;  %6143 = vmatprep.mubr.f32.mxu1 %v1341_v14  ;;  %v9105_v14 = vld [vmem:[#allocation43_spill] sm:$0xff] }
 0x14e   : > { %6185 = vmatpush3.msra.mxu1 %v7490_v23  ;;  %6096 = vmatprep.subr.mxu0 %v9088_v43 }
 0x14f   : > { %6186 = vmatprep.subr.mxu1 %v7498_v26  ;;  %6097 = vmatpush3.msra.mxu0 %v9088_v43 }
 0x150   : > { %6187 = vmatpush3.msra.mxu1 %v7498_v26  ;;  %6098 = vmatprep.subr.mxu0 %v9089_v22 }
 0x151   : > { %6144 = vmatmul.mubr.f32.gmra.mxu1 %v1351_v48  ;;  %6188 = vmatprep.subr.mxu1 %v7511_v33 }
 0x152   : > { %6099 = vmatpush3.msra.mxu0 %v9089_v22  ;;  %6189 = vmatpush3.msra.mxu1 %v7511_v33 }
 0x153   : > { %6216 = vmatprep.mubr.f32.mxu1 %v7806_v10  ;;  %6100 = vmatprep.subr.mxu0 %v9090_v7 }
 0x154   : > { %6190 = vmatprep.subr.mxu1 %v7526_v40  ;;  %6101 = vmatpush3.msra.mxu0 %v9090_v7 }
 0x155   : > { %6191 = vmatpush3.msra.mxu1 %v7526_v40  ;;  %6103 = vmatmul.mubr.f32.vlgmr.msra.gmra.mxu0 %v7823_v31  ;;  %v9094_v31 = vld [vmem:[#allocation10_spill] sm:$0xff] }
 0x156   : > { %6146 = vmatprep.subr.mxu0 %v9091_v56  ;;  %6192 = vmatprep.subr.mxu1 %v7544_v50 }
 0x157   : > { %6105 = vmatprep.mubr.f32.mxu0 %v7843_v3  ;;  %6147 = vmatpush3.msra.mxu0 %v9091_v56  ;;  %v9103_v3 = vld [vmem:[#allocation34_spill] sm:$0xff] }
 0x158   : > { %6193 = vmatpush3.msra.mxu1 %v7544_v50  ;;  %6148 = vmatprep.subr.mxu0 %v9092_v51 }
 0x159   : > { %6194 = vmatprep.subr.mxu1 %v7558_v2  ;;  %6149 = vmatpush3.msra.mxu0 %v9092_v51 }
 0x15a   : > { %6195 = vmatpush3.msra.mxu1 %v7558_v2  ;;  %6106 = vmatmul.mubr.f32.gmra.mxu0 %v7862_v5  ;;  %v2012_v5 = vld [vmem:[%s8890_s4] sm:$0xf] }
 0x15b   : > { %6150 = vmatprep.subr.mxu0 %v9093_v11  ;;  %6196 = vmatprep.subr.mxu1 %v7576_v21  ;;  %v2028_v39 = vsel %vm2026_vm1, %v2012_v5, 0 }
 0x15c   : > { %6151 = vmatpush3.msra.mxu0 %v9093_v11  ;;  %6178 = vmatprep.mubr.f32.mxu0 %v7806_v10  ;;  %v9097_v10 = vld [vmem:[#allocation15_spill] sm:$0xff]  ;;  %v8004_v48 = vand.u32 4294901760, %v2028_v39 }
 0x15d   : > { %6197 = vmatpush3.msra.mxu1 %v7576_v21  ;;  %6152 = vmatprep.subr.mxu0 %v9094_v31 }
 0x15e   : > { %6198 = vmatprep.subr.mxu1 %v7596_v1  ;;  %6153 = vmatpush3.msra.mxu0 %v9094_v31  ;;  %9107 = vst [vmem:[#allocation31_spill] sm:$0xff] %v8004_v48  ;;  %v8007_v59 = vsub.f32 %v2028_v39, %v8004_v48  ;;  %v8024_v39 = vpop.f32.mrf.mxu0 }
 0x15f   : > { %6199 = vmatpush3.msra.mxu1 %v7596_v1  ;;  %6154 = vmatprep.subr.mxu0 %v9095_v30  ;;  %9112 = vst [vmem:[#allocation54_spill] sm:$0xff] %v8024_v39 }
 0x160   : > { %6200 = vmatprep.subr.mxu1 %v7615_v27  ;;  %6155 = vmatpush3.msra.mxu0 %v9095_v30  ;;  %9108 = vst [vmem:[#allocation36_spill] sm:$0xff] %v8007_v59 }
 0x161   : > { %6201 = vmatpush3.msra.mxu1 %v7615_v27  ;;  %6156 = vmatprep.subr.mxu0 %v9096_v36 }
 0x162   : > { %6202 = vmatprep.subr.mxu1 %v7637_v38  ;;  %6157 = vmatpush3.msra.mxu0 %v9096_v36 }
 0x163   : > { %6203 = vmatpush3.msra.mxu1 %v7637_v38  ;;  %6158 = vmatprep.subr.mxu0 %v9097_v10 }
 0x164   : > { %6204 = vmatprep.subr.mxu1 %v7651_v19  ;;  %6159 = vmatpush3.msra.mxu0 %v9097_v10 }
 0x165   : > { %6205 = vmatpush3.msra.mxu1 %v7651_v19  ;;  %6160 = vmatprep.subr.mxu0 %v9098_v17 }
 0x166   : > { %6206 = vmatprep.subr.mxu1 %v7670_v16  ;;  %6161 = vmatpush3.msra.mxu0 %v9098_v17 }
 0x167   : > { %6207 = vmatpush3.msra.mxu1 %v7670_v16  ;;  %6162 = vmatprep.subr.mxu0 %v9099_v29 }
 0x168   : > { %6208 = vmatprep.subr.mxu1 %v7690_v41  ;;  %6163 = vmatpush3.msra.mxu0 %v9099_v29 }
 0x169   : > { %6209 = vmatpush3.msra.mxu1 %v7690_v41  ;;  %6164 = vmatprep.subr.mxu0 %v9100_v58 }
 0x16a   : > { %6210 = vmatprep.subr.mxu1 %v9082_v42  ;;  %6165 = vmatpush3.msra.mxu0 %v9100_v58 }
 0x16b   : > { %6211 = vmatpush3.msra.mxu1 %v9082_v42  ;;  %6166 = vmatprep.subr.mxu0 %v9101_v20 }
 0x16c   : > { %6212 = vmatprep.subr.mxu1 %v9084_v61  ;;  %6167 = vmatpush3.msra.mxu0 %v9101_v20 }
 0x16d   : > { %6213 = vmatpush3.msra.mxu1 %v9084_v61  ;;  %6168 = vmatprep.subr.mxu0 %v9102_v18 }
 0x16e   : > { %6214 = vmatprep.subr.mxu1 %v9086_v9  ;;  %6169 = vmatpush3.msra.mxu0 %v9102_v18 }
 0x16f   : > { %6215 = vmatpush3.msra.mxu1 %v9086_v9  ;;  %6170 = vmatprep.subr.mxu0 %v9103_v3 }
 0x170   : > { %6217 = vmatmul.mubr.f32.vlgmr.msra.gmra.mxu1 %v7818_v45  ;;  %6171 = vmatpush3.msra.mxu0 %v9103_v3 }
 0x171   : > { %6219 = vmatprep.mubr.f32.mxu1 %v7834_v13  ;;  %6172 = vmatprep.subr.mxu0 %v9104_v8 }
 0x172   : > { %6173 = vmatpush3.msra.mxu0 %v9104_v8 }
 0x173   : > { %6174 = vmatprep.subr.mxu0 %v9105_v14 }
 0x174   : > { %6220 = vmatmul.mubr.f32.gmra.mxu1 %v7853_v34  ;;  %6175 = vmatpush3.msra.mxu0 %v9105_v14 }
 0x175   : > { %6176 = vmatprep.subr.mxu0 %v9106_v54 }
 0x176   : > { %6177 = vmatpush3.msra.mxu0 %v9106_v54 }
 0x177   : > { %6179 = vmatmul.mubr.f32.vlgmr.msra.gmra.mxu0 %v7818_v45  ;;  %6222 = vmatprep.subr.mxu0 %v8004_v48  ;;  %v8012_v45 = vand.u32 4294901760, %v8007_v59 }
 0x178   : > { %6181 = vmatprep.mubr.f32.mxu0 %v7834_v13  ;;  %6223 = vmatpush3.msra.mxu0 %v8004_v48 }
 0x179   : > { %9109 = vst [vmem:[#allocation39_spill] sm:$0xff] %v8012_v45  ;;  %6238 = vmatprep.subr.mxu0 %v8007_v59  ;;  %v2170_v13 = vsub.f32 %v8007_v59, %v8012_v45 }
 0x17b   : > { %6182 = vmatmul.mubr.f32.gmra.mxu0 %v7853_v34  ;;  %v8017_v34 = vand.u32 4294901760, %v2170_v13 }
 0x17d   : > { %9110 = vst [vmem:[#allocation52_spill] sm:$0xff] %v8017_v34  ;;  %6230 = vmatprep.subr.mxu1 %v8017_v34 }
 0x17e   : > { %6231 = vmatpush3.msra.mxu1 %v8017_v34 }
 0x17f   : > { %6246 = vmatprep.subr.mxu1 %v8004_v48 }
 0x1e9   : > { %v6066_v5 = vpop.f32.mrf.mxu1 }
 0x1eb   : > { %v1506_v12 = vpop.f32.mrf.mxu1 }
 0x1f1   : > { %v6028_v46 = vpop.f32.mrf.mxu0 }
 0x1f2   : > { %v6069_v63 = vpop.f32.mrf.mxu1  ;;  %v1513_v34 = vadd.f32 %v6066_v5, %v6028_v46 }
 0x1f3   : > { %v1325_v35 = vpop.f32.mrf.mxu0 }
 0x1f4   : > { %v1518_v54 = vpop.f32.mrf.mxu1  ;;  %v1507_v10 = vadd.f32 %v1506_v12, %v1325_v35 }
 0x1fb   : > { %v6031_v14 = vpop.f32.mrf.mxu0 }
 0x1fc   : > { %v1525_v30 = vadd.f32 %v6069_v63, %v6031_v14 }
 0x1fd   : > { %v1345_v13 = vpop.f32.mrf.mxu0 }
 0x1fe   : > { %v1519_v11 = vadd.f32 %v1518_v54, %v1345_v13 }
 0x20c   : > { %v6142_v8 = vpop.f32.mrf.mxu1 }
 0x20e   : > { %v1738_v3 = vpop.f32.mrf.mxu1 }
 0x211   : > { %v6145_v20 = vpop.f32.mrf.mxu1 }
 0x213   : > { %v1754_v29 = vpop.f32.mrf.mxu1 }
 0x215   : > { %v6104_v18 = vpop.f32.mrf.mxu0 }
 0x216   : > { %v1636_v55 = vadd.f32 %v6104_v18, %v1513_v34 }
 0x217   : > { %v1628_v58 = vpop.f32.mrf.mxu0 }
 0x218   : > { %v1629_v39 = vadd.f32 %v1628_v58, %v1507_v10  ;;  %v1747_v56 = vadd.f32 %v6142_v8, %v1636_v55 }
 0x21a   : > { %v6107_v17 = vpop.f32.mrf.mxu0  ;;  %v1739_v62 = vadd.f32 %v1738_v3, %v1629_v39 }
 0x21b   : > { %v1650_v51 = vadd.f32 %v6107_v17, %v1525_v30 }
 0x21c   : > { %v1642_v31 = vpop.f32.mrf.mxu0 }
 0x21d   : > { %v1643_v43 = vadd.f32 %v1642_v31, %v1519_v11  ;;  %v1763_v46 = vadd.f32 %v6145_v20, %v1650_v51 }
 0x21f   : > { %v1755_v10 = vadd.f32 %v1754_v29, %v1643_v43 }
 0x230   : > { %v6218_v36 = vpop.f32.mrf.mxu1 }
 0x232   : > { %v1986_v7 = vpop.f32.mrf.mxu1 }
 0x234   : > { %v6221_v5 = vpop.f32.mrf.mxu1 }
 0x236   : > { %v1998_v11 = vpop.f32.mrf.mxu1 }
 0x237   : > { %v6180_v22 = vpop.f32.mrf.mxu0 }
 0x238   : > { %v1888_v47 = vadd.f32 %v6180_v22, %v1747_v56 }
 0x239   : > { %v1881_v52 = vpop.f32.mrf.mxu0 }
 0x23a   : > { %v1993_v24 = vadd.f32 %v6218_v36, %v1888_v47  ;;  %v1882_v53 = vadd.f32 %v1881_v52, %v1739_v62 }
 0x23b   : > { %v6183_v35 = vpop.f32.mrf.mxu0 }
 0x23c   : > { %v2009_v12 = vmul.f32 0.03125, %v1993_v24  ;;  %v1987_v18 = vadd.f32 %v1986_v7, %v1882_v53  ;;  %v1900_v63 = vadd.f32 %v6183_v35, %v1763_v46 }
 0x23d   : > { %v1893_v58 = vpop.f32.mrf.mxu0 }
 0x23e   : > { %v2018_v30 = vsel %vm2013_vm2, %v2009_v12, 0  ;;  %v2008_v17 = vmul.f32 0.03125, %v1987_v18  ;;  %v2005_v8 = vadd.f32 %v6221_v5, %v1900_v63  ;;  %v1894_v14 = vadd.f32 %v1893_v58, %v1755_v10  ;;  %v9113_v10 = vld [vmem:[#allocation7_spill] sm:$0xff]  ;;  %v9114_v58 = vld [vmem:[#allocation9_spill] sm:$0xff] }
 0x23f   : > { %v2106_v22 = vand.u32 4294901760, %v2018_v30 }
 0x240   : > { %v2015_v56 = vsel %vm2013_vm2, %v2008_v17, 0  ;;  %v2011_v47 = vmul.f32 0.03125, %v2005_v8  ;;  %v1999_v52 = vadd.f32 %v1998_v11, %v1894_v14  ;;  %v9116_v17 = vld [vmem:[#allocation13_spill] sm:$0xff]  ;;  %v9117_v8 = vld [vmem:[#allocation16_spill] sm:$0xff] }
 0x241   : > { %v2107_v62 = vsub.f32 %v2018_v30, %v2106_v22  ;;  %v2096_v51 = vand.u32 4294901760, %v2015_v56  ;;  %v9115_v30 = vld [vmem:[#allocation11_spill] sm:$0xff]  ;;  %v9118_v14 = vld [vmem:[#allocation17_spill] sm:$0xff]  ;;  %v9119_v11 = vld [vmem:[#allocation20_spill] sm:$0xff] }
 0x242   : > { %v2024_v31 = vsel %vm2013_vm2, %v2011_v47, 0  ;;  %v2010_v24 = vmul.f32 0.03125, %v1999_v52  ;;  %v9122_v47 = vld [vmem:[#allocation32_spill] sm:$0xff]  ;;  %v9123_v52 = vld [vmem:[#allocation33_spill] sm:$0xff] }
 0x243   : > { %v2108_v53 = vand.u32 4294901760, %v2107_v62  ;;  %v2097_v7 = vsub.f32 %v2015_v56, %v2096_v51  ;;  %v2126_v43 = vand.u32 4294901760, %v2024_v31  ;;  %6232 = vmatprep.mubr.f32.mxu1 %v2096_v51  ;;  %v9121_v56 = vld [vmem:[#allocation26_spill] sm:$0xff] }
 0x244   : > { %v2021_v36 = vsel %vm2013_vm2, %v2010_v24, 0  ;;  %6233 = vmatmul.mubr.f32.vlgmr.msra.gmra.mxu1 %v2106_v22  ;;  %v9127_v24 = vld [vmem:[#allocation46_spill] sm:$0xff] }
 0x245   : > { %v2127_v29 = vsub.f32 %v2024_v31, %v2126_v43  ;;  %v2116_v20 = vand.u32 4294901760, %v2021_v36  ;;  %v2098_v3 = vand.u32 4294901760, %v2097_v7  ;;  %6247 = vmatpush3.msra.mxu1 %v8004_v48  ;;  %v2109_v54 = vsub.f32 %v2107_v62, %v2108_v53  ;;  %v9126_v31 = vld [vmem:[#allocation44_spill] sm:$0xff] }
 0x246   : > { %6262 = vmatprep.subr.mxu1 %v8004_v48 }
 0x247   : > { %v2117_v34 = vsub.f32 %v2021_v36, %v2116_v20  ;;  %6235 = vmatprep.mubr.f32.mxu1 %v2116_v20  ;;  %v2099_v55 = vsub.f32 %v2097_v7, %v2098_v3  ;;  %v2128_v39 = vand.u32 4294901760, %v2127_v29  ;;  %v2110_v5 = vand.u32 4294901760, %v2109_v54 }
 0x248   : > { %6236 = vmatmul.mubr.f32.gmra.mxu1 %v2126_v43 }
 0x249   : > { %6248 = vmatprep.mubr.f32.mxu1 %v2098_v3  ;;  %v2100_v13 = vand.u32 4294901760, %v2099_v55  ;;  %v2118_v46 = vand.u32 4294901760, %v2117_v34  ;;  %v2129_v35 = vsub.f32 %v2127_v29, %v2128_v39 }
 0x24b   : > { %6224 = vmatprep.mubr.f32.mxu0 %v2100_v13  ;;  %v2119_v12 = vsub.f32 %v2117_v34, %v2118_v46  ;;  %v2130_v63 = vand.u32 4294901760, %v2129_v35 }
 0x24c   : > { %6225 = vmatmul.mubr.f32.vlgmr.msra.gmra.mxu0 %v2110_v5  ;;  %6249 = vmatmul.mubr.f32.vlgmr.msra.gmra.mxu1 %v2108_v53  ;;  %v9128_v53 = vld [vmem:[#allocation47_spill] sm:$0xff] }
 0x24d   : > { %6239 = vmatpush3.msra.mxu0 %v8007_v59  ;;  %6251 = vmatprep.mubr.f32.mxu1 %v2118_v46  ;;  %v2120_v18 = vand.u32 4294901760, %v2119_v12 }
 0x24e   : > { %6263 = vmatpush3.msra.mxu1 %v8004_v48  ;;  %6254 = vmatprep.subr.mxu0 %v8012_v45 }
 0x24f   : > { %6227 = vmatprep.mubr.f32.mxu0 %v2120_v18  ;;  %6308 = vmatprep.subr.mxu1 %v9113_v10 }
 0x250   : > { %6228 = vmatmul.mubr.f32.gmra.mxu0 %v2130_v63  ;;  %6252 = vmatmul.mubr.f32.gmra.mxu1 %v2128_v39 }
 0x251   : > { %6240 = vmatprep.mubr.f32.mxu0 %v2097_v7  ;;  %6264 = vmatprep.mubr.f32.mxu1 %v2096_v51 }
 0x254   : > { %6241 = vmatmul.mubr.f32.vlgmr.msra.gmra.mxu0 %v2107_v62  ;;  %6265 = vmatmul.mubr.f32.vlgmr.msra.gmra.mxu1 %v2106_v22  ;;  %v9124_v62 = vld [vmem:[#allocation37_spill] sm:$0xff] }
 0x255   : > { %6243 = vmatprep.mubr.f32.mxu0 %v2117_v34  ;;  %6255 = vmatpush3.msra.mxu0 %v8012_v45 }
 0x256   : > { %6267 = vmatprep.mubr.f32.mxu1 %v2116_v20  ;;  %6309 = vmatpush3.msra.mxu1 %v9113_v10 }
 0x257   : > { %6310 = vmatprep.subr.mxu1 %v9114_v58  ;;  %6270 = vmatprep.subr.mxu0 %v7490_v23 }
 0x258   : > { %6244 = vmatmul.mubr.f32.gmra.mxu0 %v2127_v29  ;;  %6268 = vmatmul.mubr.f32.gmra.mxu1 %v2126_v43 }
 0x259   : > { %6256 = vmatprep.mubr.f32.mxu0 %v2096_v51  ;;  %6311 = vmatpush3.msra.mxu1 %v9114_v58  ;;  %v9125_v51 = vld [vmem:[#allocation41_spill] sm:$0xff] }
 0x25a   : > { %6312 = vmatprep.subr.mxu1 %v9115_v30 }
 0x25b   : > { %6313 = vmatpush3.msra.mxu1 %v9115_v30 }
 0x25c   : > { %6257 = vmatmul.mubr.f32.vlgmr.msra.gmra.mxu0 %v2106_v22  ;;  %6314 = vmatprep.subr.mxu1 %v9116_v17  ;;  %v9120_v22 = vld [vmem:[#allocation23_spill] sm:$0xff] }
 0x25d   : > { %6259 = vmatprep.mubr.f32.mxu0 %v2116_v20  ;;  %6315 = vmatpush3.msra.mxu1 %v9116_v17 }
 0x25e   : > { %6316 = vmatprep.subr.mxu1 %v9117_v8  ;;  %6271 = vmatpush3.msra.mxu0 %v7490_v23 }
 0x25f   : > { %6317 = vmatpush3.msra.mxu1 %v9117_v8  ;;  %6272 = vmatprep.subr.mxu0 %v7498_v26 }
 0x260   : > { %6260 = vmatmul.mubr.f32.gmra.mxu0 %v2126_v43  ;;  %6318 = vmatprep.subr.mxu1 %v9118_v14 }
 0x261   : > { %6273 = vmatpush3.msra.mxu0 %v7498_v26  ;;  %6319 = vmatpush3.msra.mxu1 %v9118_v14 }
 0x262   : > { %6274 = vmatprep.subr.mxu0 %v7511_v33  ;;  %6320 = vmatprep.subr.mxu1 %v9119_v11 }
 0x263   : > { %6275 = vmatpush3.msra.mxu0 %v7511_v33  ;;  %6321 = vmatpush3.msra.mxu1 %v9119_v11 }
 0x264   : > { %6276 = vmatprep.subr.mxu0 %v7526_v40  ;;  %6322 = vmatprep.subr.mxu1 %v9120_v22 }
 0x265   : > { %6277 = vmatpush3.msra.mxu0 %v7526_v40  ;;  %6323 = vmatpush3.msra.mxu1 %v9120_v22 }
 0x266   : > { %6278 = vmatprep.subr.mxu0 %v7544_v50  ;;  %6324 = vmatprep.subr.mxu1 %v9121_v56 }
 0x267   : > { %6279 = vmatpush3.msra.mxu0 %v7544_v50  ;;  %6325 = vmatpush3.msra.mxu1 %v9121_v56 }
 0x268   : > { %6280 = vmatprep.subr.mxu0 %v7558_v2  ;;  %6326 = vmatprep.subr.mxu1 %v9122_v47 }
 0x269   : > { %6281 = vmatpush3.msra.mxu0 %v7558_v2  ;;  %6327 = vmatpush3.msra.mxu1 %v9122_v47 }
 0x26a   : > { %6282 = vmatprep.subr.mxu0 %v7576_v21  ;;  %6328 = vmatprep.subr.mxu1 %v9123_v52 }
 0x26b   : > { %6283 = vmatpush3.msra.mxu0 %v7576_v21  ;;  %6329 = vmatpush3.msra.mxu1 %v9123_v52 }
 0x26c   : > { %6284 = vmatprep.subr.mxu0 %v7596_v1  ;;  %6330 = vmatprep.subr.mxu1 %v9124_v62 }
 0x26d   : > { %6285 = vmatpush3.msra.mxu0 %v7596_v1  ;;  %6331 = vmatpush3.msra.mxu1 %v9124_v62 }
 0x26e   : > { %6286 = vmatprep.subr.mxu0 %v7615_v27  ;;  %6332 = vmatprep.subr.mxu1 %v9125_v51 }
 0x26f   : > { %6287 = vmatpush3.msra.mxu0 %v7615_v27  ;;  %6333 = vmatpush3.msra.mxu1 %v9125_v51 }
 0x270   : > { %6288 = vmatprep.subr.mxu0 %v7637_v38  ;;  %6334 = vmatprep.subr.mxu1 %v9126_v31 }
 0x271   : > { %6289 = vmatpush3.msra.mxu0 %v7637_v38  ;;  %6335 = vmatpush3.msra.mxu1 %v9126_v31 }
 0x272   : > { %6290 = vmatprep.subr.mxu0 %v7651_v19  ;;  %6336 = vmatprep.subr.mxu1 %v9127_v24 }
 0x273   : > { %6291 = vmatpush3.msra.mxu0 %v7651_v19  ;;  %6337 = vmatpush3.msra.mxu1 %v9127_v24 }
 0x274   : > { %6292 = vmatprep.subr.mxu0 %v7670_v16  ;;  %6338 = vmatprep.subr.mxu1 %v9128_v53 }
 0x275   : > { %6293 = vmatpush3.msra.mxu0 %v7670_v16  ;;  %6339 = vmatpush3.msra.mxu1 %v9128_v53 }
 0x276   : > { %6294 = vmatprep.subr.mxu0 %v7690_v41  ;;  %6384 = vmatprep.subr.mxu1 %v7490_v23 }
 0x277   : > { %6295 = vmatpush3.msra.mxu0 %v7690_v41 }
 0x278   : > { %6296 = vmatprep.subr.mxu0 %v9082_v42 }
 0x279   : > { %6297 = vmatpush3.msra.mxu0 %v9082_v42 }
 0x27a   : > { %6298 = vmatprep.subr.mxu0 %v9084_v61 }
 0x27b   : > { %6299 = vmatpush3.msra.mxu0 %v9084_v61 }
 0x27c   : > { %6300 = vmatprep.subr.mxu0 %v9086_v9 }
 0x27d   : > { %6301 = vmatpush3.msra.mxu0 %v9086_v9 }
 0x27e   : > { %6346 = vmatprep.subr.mxu0 %v7496_v25 }
 0x304   : > { %v6234_v7 = vpop.f32.mrf.mxu1 }
 0x306   : > { %v2208_v43 = vpop.f32.mrf.mxu1 }
 0x308   : > { %v6237_v36 = vpop.f32.mrf.mxu1 }
 0x30a   : > { %v2220_v29 = vpop.f32.mrf.mxu1 }
 0x30c   : > { %v6226_v20 = vpop.f32.mrf.mxu0  ;;  %v6250_v3 = vpop.f32.mrf.mxu1 }
 0x30d   : > { %v2215_v35 = vadd.f32 %v6234_v7, %v6226_v20 }
 0x30e   : > { %v2102_v54 = vpop.f32.mrf.mxu0  ;;  %v2395_v34 = vpop.f32.mrf.mxu1 }
 0x30f   : > { %v2209_v18 = vadd.f32 %v2208_v43, %v2102_v54 }
 0x310   : > { %v6229_v55 = vpop.f32.mrf.mxu0  ;;  %v6253_v39 = vpop.f32.mrf.mxu1 }
 0x311   : > { %v2227_v30 = vadd.f32 %v6237_v36, %v6229_v55 }
 0x312   : > { %v2122_v13 = vpop.f32.mrf.mxu0  ;;  %v2411_v46 = vpop.f32.mrf.mxu1 }
 0x313   : > { %v2221_v14 = vadd.f32 %v2220_v29, %v2122_v13 }
 0x314   : > { %v6242_v5 = vpop.f32.mrf.mxu0  ;;  %v6266_v10 = vpop.f32.mrf.mxu1 }
 0x315   : > { %v2308_v63 = vadd.f32 %v6242_v5, %v2215_v35 }
 0x316   : > { %v2300_v12 = vpop.f32.mrf.mxu0  ;;  %v2583_v56 = vpop.f32.mrf.mxu1 }
 0x317   : > { %v2301_v17 = vadd.f32 %v2300_v12, %v2209_v18  ;;  %v2404_v22 = vadd.f32 %v6250_v3, %v2308_v63 }
 0x318   : > { %v6245_v58 = vpop.f32.mrf.mxu0  ;;  %v6269_v20 = vpop.f32.mrf.mxu1 }
 0x319   : > { %v2322_v11 = vadd.f32 %v6245_v58, %v2227_v30  ;;  %v2396_v51 = vadd.f32 %v2395_v34, %v2301_v17 }
 0x31a   : > { %v2314_v8 = vpop.f32.mrf.mxu0  ;;  %v2595_v12 = vpop.f32.mrf.mxu1 }
 0x31b   : > { %v2315_v52 = vadd.f32 %v2314_v8, %v2221_v14  ;;  %v2420_v7 = vadd.f32 %v6253_v39, %v2322_v11 }
 0x31c   : > { %v6258_v47 = vpop.f32.mrf.mxu0 }
 0x31d   : > { %v2500_v62 = vadd.f32 %v6258_v47, %v2404_v22  ;;  %v2412_v5 = vadd.f32 %v2411_v46, %v2315_v52 }
 0x31e   : > { %v2493_v31 = vpop.f32.mrf.mxu0 }
 0x31f   : > { %v2590_v24 = vadd.f32 %v6266_v10, %v2500_v62  ;;  %v2494_v53 = vadd.f32 %v2493_v31, %v2396_v51 }
 0x320   : > { %v6261_v43 = vpop.f32.mrf.mxu0 }
 0x321   : > { %v8103_v54 = vsub.f32 %v7812_v44, %v2590_v24  ;;  %v2584_v36 = vadd.f32 %v2583_v56, %v2494_v53  ;;  %v2512_v55 = vadd.f32 %v6261_v43, %v2420_v7  ;;  %v9156_v43 = vld [vmem:[#allocation43_spill] sm:$0xff] }
 0x322   : > { %v2505_v29 = vpop.f32.mrf.mxu0 }
 0x323   : > { %9129 = vst [vmem:[#allocation7_spill] sm:$0xff] %v8103_v54  ;;  %v2610_v3 = vmul.f32 %v8103_v54, %v8103_v54  ;;  %v8108_v13 = vsub.f32 %v7801_v4, %v2584_v36  ;;  %v2602_v34 = vadd.f32 %v6269_v20, %v2512_v55  ;;  %v2506_v35 = vadd.f32 %v2505_v29, %v2412_v5 }
 0x325   : > { %9130 = vst [vmem:[#allocation9_spill] sm:$0xff] %v8108_v13  ;;  %v8110_v18 = vand.u32 4294901760, %v2610_v3  ;;  %v2609_v39 = vmul.f32 %v8108_v13, %v8108_v13  ;;  %v8115_v44 = vsub.f32 %v7847_v28, %v2602_v34  ;;  %v2596_v63 = vadd.f32 %v2595_v12, %v2506_v35  ;;  %v9162_v13 = vld [vmem:[#allocation54_spill] sm:$0xff] }
 0x327   : > { %9131 = vst [vmem:[#allocation11_spill] sm:$0xff] %v8115_v44  ;;  %v8118_v46 = vsub.f32 %v2610_v3, %v8110_v18  ;;  %v2612_v10 = vmul.f32 %v8115_v44, %v8115_v44  ;;  %v8123_v4 = vsub.f32 %v7825_v0, %v2596_v63  ;;  %v8125_v58 = vand.u32 4294901760, %v2609_v39 }
 0x329   : > { %9132 = vst [vmem:[#allocation13_spill] sm:$0xff] %v8123_v4  ;;  %v2706_v30 = vand.u32 4294901760, %v8118_v46  ;;  %v2611_v17 = vmul.f32 %v8123_v4, %v8123_v4  ;;  %6340 = vmatprep.mubr.f32.mxu1 %v8125_v58  ;;  %v8131_v28 = vand.u32 4294901760, %v2612_v10  ;;  %v2695_v8 = vsub.f32 %v2609_v39, %v8125_v58 }
 0x32a   : > { %6341 = vmatmul.mubr.f32.vlgmr.msra.gmra.mxu1 %v8110_v18 }
 0x32b   : > { %6385 = vmatpush3.msra.mxu1 %v7490_v23  ;;  %v8136_v14 = vand.u32 4294901760, %v2611_v17  ;;  %v2696_v0 = vand.u32 4294901760, %v2695_v8  ;;  %v8139_v11 = vsub.f32 %v2612_v10, %v8131_v28  ;;  %v2707_v22 = vsub.f32 %v8118_v46, %v2706_v30 }
 0x32c   : > { %6386 = vmatprep.subr.mxu1 %v7498_v26 }
 0x32d   : > { %6387 = vmatpush3.msra.mxu1 %v7498_v26  ;;  %6343 = vmatprep.mubr.f32.mxu1 %v8136_v14  ;;  %v2697_v56 = vsub.f32 %v2695_v8, %v2696_v0  ;;  %v8148_v47 = vsub.f32 %v2611_v17, %v8136_v14  ;;  %v2726_v52 = vand.u32 4294901760, %v8139_v11  ;;  %v2708_v31 = vand.u32 4294901760, %v2707_v22 }
 0x32e   : > { %6388 = vmatprep.subr.mxu1 %v7511_v33  ;;  %6344 = vmatmul.mubr.f32.gmra.mxu1 %v8131_v28 }
 0x32f   : > { %6389 = vmatpush3.msra.mxu1 %v7511_v33  ;;  %6416 = vmatprep.mubr.f32.mxu1 %v2696_v0  ;;  %v2698_v62 = vand.u32 4294901760, %v2697_v56  ;;  %v2716_v51 = vand.u32 4294901760, %v8148_v47  ;;  %v2727_v53 = vsub.f32 %v8139_v11, %v2726_v52 }
 0x330   : > { %6390 = vmatprep.subr.mxu1 %v7526_v40 }
 0x331   : > { %6391 = vmatpush3.msra.mxu1 %v7526_v40  ;;  %6302 = vmatprep.mubr.f32.mxu0 %v2698_v62  ;;  %v2717_v24 = vsub.f32 %v8148_v47, %v2716_v51  ;;  %v2728_v20 = vand.u32 4294901760, %v2727_v53 }
 0x332   : > { %6392 = vmatprep.subr.mxu1 %v7544_v50  ;;  %6303 = vmatmul.mubr.f32.vlgmr.msra.gmra.mxu0 %v2708_v31 }
 0x333   : > { %6347 = vmatpush3.msra.mxu0 %v7496_v25  ;;  %6393 = vmatpush3.msra.mxu1 %v7544_v50  ;;  %v2718_v7 = vand.u32 4294901760, %v2717_v24  ;;  %v9133_v25 = vld [vmem:[#allocation19_spill] sm:$0xff] }
 0x334   : > { %6348 = vmatprep.subr.mxu0 %v7509_v32  ;;  %6394 = vmatprep.subr.mxu1 %v7558_v2 }
 0x335   : > { %6349 = vmatpush3.msra.mxu0 %v7509_v32  ;;  %6395 = vmatpush3.msra.mxu1 %v7558_v2  ;;  %v9134_v32 = vld [vmem:[#allocation22_spill] sm:$0xff] }
 0x336   : > { %6305 = vmatprep.mubr.f32.mxu0 %v2718_v7  ;;  %6350 = vmatprep.subr.mxu0 %v7524_v37 }
 0x337   : > { %6396 = vmatprep.subr.mxu1 %v7576_v21  ;;  %6306 = vmatmul.mubr.f32.gmra.mxu0 %v2728_v20 }
 0x338   : > { %6351 = vmatpush3.msra.mxu0 %v7524_v37  ;;  %6397 = vmatpush3.msra.mxu1 %v7576_v21  ;;  %v9135_v37 = vld [vmem:[#allocation24_spill] sm:$0xff] }
 0x339   : > { %6352 = vmatprep.subr.mxu0 %v7541_v49  ;;  %6378 = vmatprep.mubr.f32.mxu0 %v2695_v8 }
 0x33a   : > { %6398 = vmatprep.subr.mxu1 %v7596_v1  ;;  %6353 = vmatpush3.msra.mxu0 %v7541_v49  ;;  %v9136_v49 = vld [vmem:[#allocation28_spill] sm:$0xff] }
 0x33b   : > { %6399 = vmatpush3.msra.mxu1 %v7596_v1  ;;  %6354 = vmatprep.subr.mxu0 %v7562_v6 }
 0x33c   : > { %6400 = vmatprep.subr.mxu1 %v7615_v27  ;;  %6355 = vmatpush3.msra.mxu0 %v7562_v6  ;;  %v9137_v6 = vld [vmem:[#allocation30_spill] sm:$0xff] }
 0x33d   : > { %6401 = vmatpush3.msra.mxu1 %v7615_v27  ;;  %6356 = vmatprep.subr.mxu0 %v7574_v15 }
 0x33e   : > { %6402 = vmatprep.subr.mxu1 %v7637_v38  ;;  %6357 = vmatpush3.msra.mxu0 %v7574_v15  ;;  %v9138_v15 = vld [vmem:[#allocation35_spill] sm:$0xff] }
 0x33f   : > { %6403 = vmatpush3.msra.mxu1 %v7637_v38  ;;  %6358 = vmatprep.subr.mxu0 %v7594_v60 }
 0x340   : > { %6404 = vmatprep.subr.mxu1 %v7651_v19  ;;  %6359 = vmatpush3.msra.mxu0 %v7594_v60  ;;  %v9139_v60 = vld [vmem:[#allocation40_spill] sm:$0xff] }
 0x341   : > { %6405 = vmatpush3.msra.mxu1 %v7651_v19  ;;  %6360 = vmatprep.subr.mxu0 %v7613_v57 }
 0x342   : > { %6406 = vmatprep.subr.mxu1 %v7670_v16  ;;  %6361 = vmatpush3.msra.mxu0 %v7613_v57  ;;  %v9146_v57 = vld [vmem:[#allocation14_spill] sm:$0xff] }
 0x343   : > { %6407 = vmatpush3.msra.mxu1 %v7670_v16  ;;  %6362 = vmatprep.subr.mxu0 %v9133_v25 }
 0x344   : > { %6408 = vmatprep.subr.mxu1 %v7690_v41  ;;  %6363 = vmatpush3.msra.mxu0 %v9133_v25 }
 0x345   : > { %6409 = vmatpush3.msra.mxu1 %v7690_v41  ;;  %6364 = vmatprep.subr.mxu0 %v9134_v32 }
 0x346   : > { %6410 = vmatprep.subr.mxu1 %v9082_v42  ;;  %6365 = vmatpush3.msra.mxu0 %v9134_v32 }
 0x347   : > { %6411 = vmatpush3.msra.mxu1 %v9082_v42  ;;  %6366 = vmatprep.subr.mxu0 %v9135_v37 }
 0x348   : > { %6412 = vmatprep.subr.mxu1 %v9084_v61  ;;  %6367 = vmatpush3.msra.mxu0 %v9135_v37 }
 0x349   : > { %6413 = vmatpush3.msra.mxu1 %v9084_v61  ;;  %6368 = vmatprep.subr.mxu0 %v9136_v49 }
 0x34a   : > { %6414 = vmatprep.subr.mxu1 %v9086_v9  ;;  %6369 = vmatpush3.msra.mxu0 %v9136_v49 }
 0x34b   : > { %6415 = vmatpush3.msra.mxu1 %v9086_v9  ;;  %6370 = vmatprep.subr.mxu0 %v9137_v6 }
 0x34c   : > { %6417 = vmatmul.mubr.f32.vlgmr.msra.gmra.mxu1 %v2706_v30  ;;  %6460 = vmatprep.subr.mxu1 %v7490_v23 }
 0x34d   : > { %6371 = vmatpush3.msra.mxu0 %v9137_v6  ;;  %6419 = vmatprep.mubr.f32.mxu1 %v2716_v51 }
 0x34e   : > { %6461 = vmatpush3.msra.mxu1 %v7490_v23  ;;  %6372 = vmatprep.subr.mxu0 %v9138_v15  ;;  %v9140_v23 = vld [vmem:[#allocation42_spill] sm:$0xff] }
 0x34f   : > { %6462 = vmatprep.subr.mxu1 %v7498_v26  ;;  %6373 = vmatpush3.msra.mxu0 %v9138_v15 }
 0x350   : > { %6463 = vmatpush3.msra.mxu1 %v7498_v26  ;;  %6374 = vmatprep.subr.mxu0 %v9139_v60  ;;  %v9141_v26 = vld [vmem:[#allocation5_spill] sm:$0xff] }
 0x351   : > { %6420 = vmatmul.mubr.f32.gmra.mxu1 %v2726_v52  ;;  %6464 = vmatprep.subr.mxu1 %v7511_v33 }
 0x352   : > { %6375 = vmatpush3.msra.mxu0 %v9139_v60  ;;  %6465 = vmatpush3.msra.mxu1 %v7511_v33  ;;  %v9142_v33 = vld [vmem:[#allocation6_spill] sm:$0xff] }
 0x353   : > { %6492 = vmatprep.mubr.f32.mxu1 %v8125_v58  ;;  %6376 = vmatprep.subr.mxu0 %v9140_v23 }
 0x354   : > { %6466 = vmatprep.subr.mxu1 %v7526_v40  ;;  %6377 = vmatpush3.msra.mxu0 %v9140_v23 }
 0x355   : > { %6467 = vmatpush3.msra.mxu1 %v7526_v40  ;;  %6379 = vmatmul.mubr.f32.vlgmr.msra.gmra.mxu0 %v8118_v46  ;;  %v9143_v40 = vld [vmem:[#allocation8_spill] sm:$0xff] }
 0x356   : > { %6422 = vmatprep.subr.mxu0 %v9141_v26  ;;  %6468 = vmatprep.subr.mxu1 %v7544_v50 }
 0x357   : > { %6381 = vmatprep.mubr.f32.mxu0 %v8148_v47  ;;  %6423 = vmatpush3.msra.mxu0 %v9141_v26 }
 0x358   : > { %6469 = vmatpush3.msra.mxu1 %v7544_v50  ;;  %6424 = vmatprep.subr.mxu0 %v9142_v33  ;;  %v9144_v50 = vld [vmem:[#allocation10_spill] sm:$0xff] }
 0x359   : > { %6470 = vmatprep.subr.mxu1 %v7558_v2  ;;  %6425 = vmatpush3.msra.mxu0 %v9142_v33 }
 0x35a   : > { %6471 = vmatpush3.msra.mxu1 %v7558_v2  ;;  %6382 = vmatmul.mubr.f32.gmra.mxu0 %v8139_v11  ;;  %v9145_v2 = vld [vmem:[#allocation12_spill] sm:$0xff] }
 0x35b   : > { %6426 = vmatprep.subr.mxu0 %v9143_v40  ;;  %6472 = vmatprep.subr.mxu1 %v7576_v21 }
 0x35c   : > { %6427 = vmatpush3.msra.mxu0 %v9143_v40  ;;  %6454 = vmatprep.mubr.f32.mxu0 %v8125_v58 }
 0x35d   : > { %6473 = vmatpush3.msra.mxu1 %v7576_v21  ;;  %6428 = vmatprep.subr.mxu0 %v9144_v50  ;;  %v9147_v21 = vld [vmem:[#allocation15_spill] sm:$0xff] }
 0x35e   : > { %6474 = vmatprep.subr.mxu1 %v7596_v1  ;;  %6429 = vmatpush3.msra.mxu0 %v9144_v50 }
 0x35f   : > { %6475 = vmatpush3.msra.mxu1 %v7596_v1  ;;  %6430 = vmatprep.subr.mxu0 %v9145_v2  ;;  %v9148_v1 = vld [vmem:[#allocation18_spill] sm:$0xff] }
 0x360   : > { %6476 = vmatprep.subr.mxu1 %v7615_v27  ;;  %6431 = vmatpush3.msra.mxu0 %v9145_v2 }
 0x361   : > { %6477 = vmatpush3.msra.mxu1 %v7615_v27  ;;  %6432 = vmatprep.subr.mxu0 %v9146_v57  ;;  %v9149_v27 = vld [vmem:[#allocation21_spill] sm:$0xff] }
 0x362   : > { %6478 = vmatprep.subr.mxu1 %v7637_v38  ;;  %6433 = vmatpush3.msra.mxu0 %v9146_v57 }
 0x363   : > { %6479 = vmatpush3.msra.mxu1 %v7637_v38  ;;  %6434 = vmatprep.subr.mxu0 %v9147_v21  ;;  %v9150_v38 = vld [vmem:[#allocation25_spill] sm:$0xff] }
 0x364   : > { %6480 = vmatprep.subr.mxu1 %v7651_v19  ;;  %6435 = vmatpush3.msra.mxu0 %v9147_v21 }
 0x365   : > { %6481 = vmatpush3.msra.mxu1 %v7651_v19  ;;  %6436 = vmatprep.subr.mxu0 %v9148_v1  ;;  %v9151_v19 = vld [vmem:[#allocation27_spill] sm:$0xff] }
 0x366   : > { %6482 = vmatprep.subr.mxu1 %v7670_v16  ;;  %6437 = vmatpush3.msra.mxu0 %v9148_v1 }
 0x367   : > { %6483 = vmatpush3.msra.mxu1 %v7670_v16  ;;  %6438 = vmatprep.subr.mxu0 %v9149_v27  ;;  %v9152_v16 = vld [vmem:[#allocation29_spill] sm:$0xff] }
 0x368   : > { %6484 = vmatprep.subr.mxu1 %v7690_v41  ;;  %6439 = vmatpush3.msra.mxu0 %v9149_v27 }
 0x369   : > { %6485 = vmatpush3.msra.mxu1 %v7690_v41  ;;  %6440 = vmatprep.subr.mxu0 %v9150_v38  ;;  %v9153_v41 = vld [vmem:[#allocation34_spill] sm:$0xff] }
 0x36a   : > { %6486 = vmatprep.subr.mxu1 %v9082_v42  ;;  %6441 = vmatpush3.msra.mxu0 %v9150_v38 }
 0x36b   : > { %6487 = vmatpush3.msra.mxu1 %v9082_v42  ;;  %6442 = vmatprep.subr.mxu0 %v9151_v19  ;;  %v9154_v42 = vld [vmem:[#allocation38_spill] sm:$0xff] }
 0x36c   : > { %6488 = vmatprep.subr.mxu1 %v9084_v61  ;;  %6443 = vmatpush3.msra.mxu0 %v9151_v19 }
 0x36d   : > { %6489 = vmatpush3.msra.mxu1 %v9084_v61  ;;  %6444 = vmatprep.subr.mxu0 %v9152_v16  ;;  %v9155_v61 = vld [vmem:[#allocation52_spill] sm:$0xff] }
 0x36e   : > { %6490 = vmatprep.subr.mxu1 %v9086_v9  ;;  %6445 = vmatpush3.msra.mxu0 %v9152_v16 }
 0x36f   : > { %6491 = vmatpush3.msra.mxu1 %v9086_v9  ;;  %6446 = vmatprep.subr.mxu0 %v9153_v41  ;;  %v9157_v9 = vld [vmem:[#allocation45_spill] sm:$0xff] }
 0x370   : > { %6493 = vmatmul.mubr.f32.vlgmr.msra.gmra.mxu1 %v8110_v18  ;;  %6447 = vmatpush3.msra.mxu0 %v9153_v41  ;;  %v4023_v41 = vld [vmem:[%s8891_s5 + $0x78] sm:$0xff] }
 0x371   : > { %6495 = vmatprep.mubr.f32.mxu1 %v8136_v14  ;;  %6448 = vmatprep.subr.mxu0 %v9154_v42 }
 0x372   : > { %6449 = vmatpush3.msra.mxu0 %v9154_v42  ;;  %6506 = vmatprep.subr.mxu1 %v9155_v61  ;;  %v8308_v42 = vand.u32 4294901760, %v4023_v41 }
 0x373   : > { %6450 = vmatprep.subr.mxu0 %v9156_v43  ;;  %6507 = vmatpush3.msra.mxu1 %v9155_v61 }
 0x374   : > { %6496 = vmatmul.mubr.f32.gmra.mxu1 %v8131_v28  ;;  %6451 = vmatpush3.msra.mxu0 %v9156_v43 }
 0x375   : > { %6452 = vmatprep.subr.mxu0 %v9157_v9  ;;  %6522 = vmatprep.subr.mxu1 %v8004_v48 }
 0x376   : > { %6453 = vmatpush3.msra.mxu0 %v9157_v9 }
 0x377   : > { %6455 = vmatmul.mubr.f32.vlgmr.msra.gmra.mxu0 %v8110_v18  ;;  %6498 = vmatprep.subr.mxu0 %v8004_v48 }
 0x378   : > { %6457 = vmatprep.mubr.f32.mxu0 %v8136_v14  ;;  %6499 = vmatpush3.msra.mxu0 %v8004_v48 }
 0x379   : > { %6514 = vmatprep.subr.mxu0 %v8007_v59 }
 0x37b   : > { %6458 = vmatmul.mubr.f32.gmra.mxu0 %v8131_v28 }
 0x3ea   : > { %v6342_v36 = vpop.f32.mrf.mxu1 }
 0x3ec   : > { %v2881_v55 = vpop.f32.mrf.mxu1 }
 0x3ee   : > { %v6345_v29 = vpop.f32.mrf.mxu1 }
 0x3f0   : > { %v2893_v34 = vpop.f32.mrf.mxu1 }
 0x3f2   : > { %v6304_v5 = vpop.f32.mrf.mxu0 }
 0x3f3   : > { %v2888_v58 = vadd.f32 %v6342_v36, %v6304_v5  ;;  %v8312_v36 = vsub.f32 %v4023_v41, %v8308_v42 }
 0x3f4   : > { %v2700_v3 = vpop.f32.mrf.mxu0 }
 0x3f5   : > { %v2882_v8 = vadd.f32 %v2881_v55, %v2700_v3 }
 0x3f7   : > { %v6307_v35 = vpop.f32.mrf.mxu0 }
 0x3f8   : > { %v2900_v28 = vadd.f32 %v6345_v29, %v6307_v35  ;;  %v4022_v29 = vld [vmem:[%s8891_s5 + $0x70] sm:$0xff] }
 0x3f9   : > { %v2720_v39 = vpop.f32.mrf.mxu0 }
 0x3fa   : > { %v2894_v56 = vadd.f32 %v2893_v34, %v2720_v39 }
 0x40c   : > { %v6418_v12 = vpop.f32.mrf.mxu1 }
 0x40e   : > { %v3113_v18 = vpop.f32.mrf.mxu1 }
 0x411   : > { %v6421_v46 = vpop.f32.mrf.mxu1 }
 0x413   : > { %v3129_v30 = vpop.f32.mrf.mxu1 }
 0x415   : > { %v6380_v63 = vpop.f32.mrf.mxu0 }
 0x416   : > { %v3011_v14 = vadd.f32 %v6380_v63, %v2888_v58  ;;  %v8329_v63 = vand.u32 4294901760, %v4022_v29 }
 0x417   : > { %v3003_v10 = vpop.f32.mrf.mxu0 }
 0x418   : > { %v3004_v11 = vadd.f32 %v3003_v10, %v2882_v8  ;;  %v3122_v52 = vadd.f32 %v6418_v12, %v3011_v14  ;;  %v4020_v14 = vld [vmem:[%s8891_s5 + $0x60] sm:$0xff] }
 0x41a   : > { %v6383_v17 = vpop.f32.mrf.mxu0  ;;  %v3114_v53 = vadd.f32 %v3113_v18, %v3004_v11  ;;  %v8327_v18 = vand.u32 4294901760, %v8312_v36 }
 0x41b   : > { %v3025_v47 = vadd.f32 %v6383_v17, %v2900_v28 }
 0x41c   : > { %v3017_v22 = vpop.f32.mrf.mxu0 }
 0x41d   : > { %v3018_v31 = vadd.f32 %v3017_v22, %v2894_v56  ;;  %v3138_v32 = vadd.f32 %v6421_v46, %v3025_v47  ;;  %v4021_v46 = vld [vmem:[%s8891_s5 + $0x68] sm:$0xff]  ;;  %v4156_v47 = vsub.f32 %v8312_v36, %v8327_v18 }
 0x41e   : > { %v8350_v22 = vand.u32 4294901760, %v4021_v46 }
 0x41f   : > { %v3130_v23 = vadd.f32 %v3129_v30, %v3018_v31 }
 0x430   : > { %v6494_v0 = vpop.f32.mrf.mxu1 }
 0x432   : > { %v3361_v62 = vpop.f32.mrf.mxu1 }
 0x434   : > { %v6497_v37 = vpop.f32.mrf.mxu1 }
 0x436   : > { %v3373_v57 = vpop.f32.mrf.mxu1 }
 0x437   : > { %v6456_v51 = vpop.f32.mrf.mxu0 }
 0x438   : > { %v3263_v24 = vadd.f32 %v6456_v51, %v3122_v52  ;;  %v8357_v52 = vsub.f32 %v4022_v29, %v8329_v63 }
 0x439   : > { %v3256_v7 = vpop.f32.mrf.mxu0 }
 0x43a   : > { %v3368_v20 = vadd.f32 %v6494_v0, %v3263_v24  ;;  %v3257_v25 = vadd.f32 %v3256_v7, %v3114_v53  ;;  %v8365_v53 = vand.u32 4294901760, %v4020_v14  ;;  %v4018_v7 = vld [vmem:[%s8891_s5 + $0x50] sm:$0xff] }
 0x43b   : > { %v6459_v49 = vpop.f32.mrf.mxu0 }
 0x43c   : > { %v3384_v6 = vmul.f32 0.03125, %v3368_v20  ;;  %v3362_v15 = vadd.f32 %v3361_v62, %v3257_v25  ;;  %v3275_v60 = vadd.f32 %v6459_v49, %v3138_v32  ;;  %v4019_v62 = vld [vmem:[%s8891_s5 + $0x58] sm:$0xff]  ;;  %v8372_v32 = vsub.f32 %v4021_v46, %v8350_v22  ;;  %v4014_v46 = vld [vmem:[%s8891_s5 + $0x30] sm:$0xff] }
 0x43d   : > { %v3268_v26 = vpop.f32.mrf.mxu0 }
 0x43e   : > { %v3388_v33 = vadd.f32 1e-05, %v3384_v6  ;;  %v3383_v40 = vmul.f32 0.03125, %v3362_v15  ;;  %v3380_v50 = vadd.f32 %v6497_v37, %v3275_v60  ;;  %v3269_v2 = vadd.f32 %v3268_v26, %v3130_v23  ;;  %v4017_v60 = vld [vmem:[%s8891_s5 + $0x48] sm:$0xff] }
 0x43f   : > { %v8374_v37 = vand.u32 4294901760, %v4019_v62  ;;  %v8378_v15 = vand.u32 4294901760, %v8357_v52  ;;  %v4157_v26 = vand.u32 4294901760, %v4156_v47 }
 0x440   : > { %6864 = vrsqrt.f32 %v3388_v33  ;;  %v3387_v21 = vadd.f32 1e-05, %v3383_v40  ;;  %v3386_v1 = vmul.f32 0.03125, %v3380_v50  ;;  %v3374_v27 = vadd.f32 %v3373_v57, %v3269_v2  ;;  %v9158_v50 = vld [vmem:[#allocation49_spill] sm:$0xff] }
 0x441   : > { %v8384_v33 = vsub.f32 %v4020_v14, %v8365_v53  ;;  %v8386_v40 = vand.u32 4294901760, %v4018_v7  ;;  %v1215_v2 = vmax.f32 %v9158_v50, 0.0  ;;  %v4016_v57 = vld [vmem:[%s8891_s5 + $0x40] sm:$0xff] }
 0x442   : > { %6866 = vrsqrt.f32 %v3387_v21  ;;  %v3390_v38 = vadd.f32 1e-05, %v3386_v1  ;;  %v3385_v19 = vmul.f32 0.03125, %v3374_v27  ;;  %v8394_v1 = vand.u32 4294901760, %v8372_v32 }
 0x443   : > { %v8397_v27 = vsub.f32 %v4019_v62, %v8374_v37  ;;  %v8406_v41 = vand.u32 4294901760, %v8384_v33  ;;  %v8416_v29 = vand.u32 4294901760, %v1215_v2 }
 0x444   : > { %6868 = vrsqrt.f32 %v3390_v38  ;;  %v3389_v16 = vadd.f32 1e-05, %v3385_v19  ;;  %v8399_v38 = vand.u32 4294901760, %v4017_v60 }
 0x445   : > { %v8448_v47 = vsub.f32 %v1215_v2, %v8416_v29 }
 0x446   : > { %6870 = vrsqrt.f32 %v3389_v16  ;;  %v4163_v16 = vsub.f32 %v8357_v52, %v8378_v15 }
 0x447   : > { %v9012_v2 = vand.u32 4294901760, %v8448_v47 }
 0x44d   : > { %v6865_v43 = vpop.eup %6864 }
 0x44e   : > { %v3399_v9 = vsel %vm2013_vm2, %v6865_v43, 0  ;;  %v8409_v43 = vsub.f32 %v4018_v7, %v8386_v40 }
 0x44f   : > { %v6867_v55 = vpop.eup %6866  ;;  %v8314_v5 = vand.u32 4294901760, %v3399_v9 }
 0x450   : > { %v3396_v3 = vsel %vm2013_vm2, %v6867_v55, 0  ;;  %v4015_v55 = vld [vmem:[%s8891_s5 + $0x38] sm:$0xff] }
 0x451   : > { %v6869_v34 = vpop.eup %6868  ;;  %v8320_v35 = vand.u32 4294901760, %v3396_v3  ;;  %v8323_v12 = vsub.f32 %v3399_v9, %v8314_v5  ;;  %v8411_v9 = vand.u32 4294901760, %v4016_v57 }
 0x452   : > { %v3405_v39 = vsel %vm2013_vm2, %v6869_v34, 0  ;;  %v8422_v34 = vand.u32 4294901760, %v8397_v27 }
 0x453   : > { %v6871_v10 = vpop.eup %6870  ;;  %6508 = vmatprep.mubr.f32.mxu1 %v8320_v35  ;;  %v8335_v58 = vand.u32 4294901760, %v3405_v39  ;;  %v3474_v30 = vsub.f32 %v3396_v3, %v8320_v35  ;;  %v3485_v17 = vand.u32 4294901760, %v8323_v12  ;;  %v4170_v3 = vsub.f32 %v8372_v32, %v8394_v1 }
 0x454   : > { %6509 = vmatmul.mubr.f32.vlgmr.msra.gmra.mxu1 %v8314_v5  ;;  %v3402_v8 = vsel %vm2013_vm2, %v6871_v10, 0  ;;  %v8430_v10 = vand.u32 4294901760, %v4015_v55  ;;  %v8438_v14 = vsub.f32 %v4016_v57, %v8411_v9  ;;  %v4010_v57 = vld [vmem:[%s8891_s5 + $0x10] sm:$0xff] }
 0x455   : > { %v8344_v0 = vand.u32 4294901760, %v3402_v8  ;;  %v3475_v28 = vand.u32 4294901760, %v3474_v30  ;;  %6523 = vmatpush3.msra.mxu1 %v8004_v48  ;;  %v8348_v11 = vsub.f32 %v3405_v39, %v8335_v58  ;;  %v3486_v56 = vsub.f32 %v8323_v12, %v3485_v17 }
 0x456   : > { %6538 = vmatprep.subr.mxu1 %v8004_v48  ;;  %v8425_v39 = vsub.f32 %v4017_v60, %v8399_v38  ;;  %v4171_v62 = vand.u32 4294901760, %v4170_v3  ;;  %v8461_v7 = vsub.f32 %v4015_v55, %v8430_v10  ;;  %v4009_v3 = vld [vmem:[%s8891_s5 + $0x8] sm:$0xff] }
 0x457   : > { %6511 = vmatprep.mubr.f32.mxu1 %v8344_v0  ;;  %v3476_v51 = vsub.f32 %v3474_v30, %v3475_v28  ;;  %v3494_v31 = vsub.f32 %v3402_v8, %v8344_v0  ;;  %v3505_v24 = vand.u32 4294901760, %v8348_v11  ;;  %v3487_v49 = vand.u32 4294901760, %v3486_v56 }
 0x458   : > { %6512 = vmatmul.mubr.f32.gmra.mxu1 %v8335_v58  ;;  %v8435_v8 = vand.u32 4294901760, %v8409_v43  ;;  %v8445_v56 = vand.u32 4294901760, %v4014_v46 }
 0x459   : > { %6524 = vmatprep.mubr.f32.mxu1 %v3475_v28  ;;  %v3477_v20 = vand.u32 4294901760, %v3476_v51  ;;  %v3495_v25 = vand.u32 4294901760, %v3494_v31  ;;  %v3506_v6 = vsub.f32 %v8348_v11, %v3505_v24  ;;  %v4013_v28 = vld [vmem:[%s8891_s5 + $0x28] sm:$0xff]  ;;  %v4184_v51 = vsub.f32 %v8397_v27, %v8422_v34 }
 0x45a   : > { %v8476_v60 = vsub.f32 %v4014_v46, %v8445_v56 }
 0x45b   : > { %6500 = vmatprep.mubr.f32.mxu0 %v3477_v20  ;;  %v3496_v23 = vsub.f32 %v3494_v31, %v3495_v25  ;;  %v3507_v19 = vand.u32 4294901760, %v3506_v6  ;;  %v8463_v20 = vand.u32 4294901760, %v4013_v28  ;;  %v4011_v6 = vld [vmem:[%s8891_s5 + $0x18] sm:$0xff] }
 0x45c   : > { %6501 = vmatmul.mubr.f32.vlgmr.msra.gmra.mxu0 %v3487_v49  ;;  %6525 = vmatmul.mubr.f32.vlgmr.msra.gmra.mxu1 %v3485_v17  ;;  %v4164_v17 = vand.u32 4294901760, %v4163_v16  ;;  %v8469_v49 = vand.u32 4294901760, %v8438_v14 }
 0x45d   : > { %6515 = vmatpush3.msra.mxu0 %v8007_v59  ;;  %6527 = vmatprep.mubr.f32.mxu1 %v3495_v25  ;;  %v3497_v21 = vand.u32 4294901760, %v3496_v23  ;;  %v4191_v25 = vsub.f32 %v8409_v43, %v8435_v8 }
 0x45e   : > { %6539 = vmatpush3.msra.mxu1 %v8004_v48  ;;  %6530 = vmatprep.subr.mxu0 %v8012_v45  ;;  %v4205_v55 = vsub.f32 %v8438_v14, %v8469_v49  ;;  %v9164_v48 = vld [vmem:[#allocation51_spill] sm:$0xff] }
 0x45f   : > { %6503 = vmatprep.mubr.f32.mxu0 %v3497_v21  ;;  %6584 = vmatprep.subr.mxu1 %v4157_v26  ;;  %v8492_v21 = vsub.f32 %v4013_v28, %v8463_v20  ;;  %v4192_v16 = vand.u32 4294901760, %v4191_v25  ;;  %v4115_v28 = vsub.f32 %v8448_v47, %v9012_v2  ;;  %v1219_v61 = vmax.f32 %v9164_v48, 0.0 }
 0x460   : > { %6504 = vmatmul.mubr.f32.gmra.mxu0 %v3507_v19  ;;  %6528 = vmatmul.mubr.f32.gmra.mxu1 %v3505_v24  ;;  %v8453_v24 = vand.u32 4294901760, %v8425_v39  ;;  %v8494_v19 = vand.u32 4294901760, %v4011_v6  ;;  %v4206_v25 = vand.u32 4294901760, %v4205_v55 }
 0x461   : > { %6516 = vmatprep.mubr.f32.mxu0 %v3474_v30  ;;  %6540 = vmatprep.mubr.f32.mxu1 %v8320_v35  ;;  %v4177_v30 = vsub.f32 %v8384_v33, %v8406_v41  ;;  %v4116_v2 = vand.u32 4294901760, %v4115_v28 }
 0x462   : > { %v4198_v50 = vsub.f32 %v8425_v39, %v8453_v24 }
 0x464   : > { %6517 = vmatmul.mubr.f32.vlgmr.msra.gmra.mxu0 %v8323_v12  ;;  %6541 = vmatmul.mubr.f32.vlgmr.msra.gmra.mxu1 %v8314_v5  ;;  %v4012_v12 = vld [vmem:[%s8891_s5 + $0x20] sm:$0xff] }
 0x465   : > { %6585 = vmatpush3.msra.mxu1 %v4157_v26  ;;  %6519 = vmatprep.mubr.f32.mxu0 %v3494_v31  ;;  %v4178_v31 = vand.u32 4294901760, %v4177_v30  ;;  %v8478_v23 = vand.u32 4294901760, %v4012_v12  ;;  %v4185_v26 = vand.u32 4294901760, %v4184_v51  ;;  %v4199_v30 = vand.u32 4294901760, %v4198_v50 }
 0x466   : > { %6531 = vmatpush3.msra.mxu0 %v8012_v45  ;;  %6543 = vmatprep.mubr.f32.mxu1 %v8344_v0  ;;  %v8522_v51 = vand.u32 4294901760, %v8492_v21  ;;  %v9163_v45 = vld [vmem:[#allocation50_spill] sm:$0xff] }
 0x467   : > { %6586 = vmatprep.subr.mxu1 %v4164_v17  ;;  %6546 = vmatprep.subr.mxu0 %v8308_v42  ;;  %v8507_v46 = vsub.f32 %v4012_v12, %v8478_v23  ;;  %v8525_v12 = vsub.f32 %v4011_v6, %v8494_v19  ;;  %v1217_v59 = vmax.f32 %v9163_v45, 0.0 }
 0x468   : > { %6587 = vmatpush3.msra.mxu1 %v4164_v17  ;;  %6520 = vmatmul.mubr.f32.gmra.mxu0 %v8348_v11  ;;  %v8489_v11 = vand.u32 4294901760, %v8461_v7  ;;  %v8509_v17 = vand.u32 4294901760, %v4010_v57 }
 0x469   : > { %6588 = vmatprep.subr.mxu1 %v4171_v62  ;;  %6544 = vmatmul.mubr.f32.gmra.mxu1 %v8335_v58  ;;  %v8546_v4 = vand.u32 4294901760, %v8525_v12 }
 0x46a   : > { %6589 = vmatpush3.msra.mxu1 %v4171_v62  ;;  %6532 = vmatprep.mubr.f32.mxu0 %v8320_v35  ;;  %v8504_v35 = vand.u32 4294901760, %v8476_v60  ;;  %v4212_v62 = vsub.f32 %v8461_v7, %v8489_v11  ;;  %v8537_v50 = vsub.f32 %v4010_v57, %v8509_v17 }
 0x46b   : > { %6590 = vmatprep.subr.mxu1 %v4178_v31  ;;  %6616 = vmatprep.mubr.f32.mxu1 %v8416_v29  ;;  %9159 = vst [vmem:[#allocation16_spill] sm:$0xff] %v8546_v4 }
 0x46c   : > { %6591 = vmatpush3.msra.mxu1 %v4178_v31  ;;  %6533 = vmatmul.mubr.f32.vlgmr.msra.gmra.mxu0 %v8314_v5  ;;  %v4008_v5 = vld [vmem:[%s8891_s5] sm:$0xff]  ;;  %v8527_v31 = vand.u32 4294901760, %v4009_v3  ;;  %v4213_v55 = vand.u32 4294901760, %v4212_v62 }
 0x46d   : > { %6592 = vmatprep.subr.mxu1 %v4185_v26  ;;  %6547 = vmatpush3.msra.mxu0 %v8308_v42  ;;  %v8539_v6 = vand.u32 4294901760, %v4008_v5 }
 0x46e   : > { %6593 = vmatpush3.msra.mxu1 %v4185_v26  ;;  %6535 = vmatprep.mubr.f32.mxu0 %v8344_v0  ;;  %v4219_v0 = vsub.f32 %v8476_v60, %v8504_v35  ;;  %v8534_v26 = vand.u32 4294901760, %v8507_v46  ;;  %v8549_v44 = vsub.f32 %v4009_v3, %v8527_v31  ;;  %v4240_v3 = vsub.f32 %v8525_v12, %v8546_v4 }
 0x46f   : > { %6548 = vmatprep.subr.mxu0 %v8329_v63  ;;  %6594 = vmatprep.subr.mxu1 %v4192_v16  ;;  %v8559_v28 = vsub.f32 %v4008_v5, %v8539_v6 }
 0x470   : > { %6549 = vmatpush3.msra.mxu0 %v8329_v63  ;;  %6595 = vmatpush3.msra.mxu1 %v4192_v16  ;;  %v4226_v16 = vsub.f32 %v8492_v21, %v8522_v51  ;;  %v4220_v57 = vand.u32 4294901760, %v4219_v0  ;;  %v8566_v62 = vand.u32 4294901760, %v8549_v44 }
 0x471   : > { %6550 = vmatprep.subr.mxu0 %v8350_v22  ;;  %6596 = vmatprep.subr.mxu1 %v4199_v30  ;;  %v8573_v0 = vand.u32 4294901760, %v8559_v28 }
 0x472   : > { %6536 = vmatmul.mubr.f32.gmra.mxu0 %v8335_v58  ;;  %6597 = vmatpush3.msra.mxu1 %v4199_v30  ;;  %v4233_v58 = vsub.f32 %v8507_v46, %v8534_v26  ;;  %v8556_v30 = vand.u32 4294901760, %v8537_v50 }
 0x473   : > { %6551 = vmatpush3.msra.mxu0 %v8350_v22  ;;  %6578 = vmatprep.mubr.f32.mxu0 %v4116_v2  ;;  %v4227_v2 = vand.u32 4294901760, %v4226_v16  ;;  %v9161_v16 = vld [vmem:[#allocation48_spill] sm:$0xff]  ;;  %v4261_v45 = vsub.f32 %v8559_v28, %v8573_v0 }
 0x474   : > { %6552 = vmatprep.subr.mxu0 %v8365_v53  ;;  %6598 = vmatprep.subr.mxu1 %v4206_v25  ;;  %9160 = vst [vmem:[#allocation17_spill] sm:$0xff] %v8556_v30  ;;  %v4234_v5 = vand.u32 4294901760, %v4233_v58  ;;  %v1103_v54 = vadd.f32 %v9162_v13, %v9161_v16  ;;  %v4254_v58 = vsub.f32 %v8549_v44, %v8566_v62 }
 0x475   : > { %6553 = vmatpush3.msra.mxu0 %v8365_v53  ;;  %6599 = vmatpush3.msra.mxu1 %v4206_v25  ;;  %v4247_v25 = vsub.f32 %v8537_v50, %v8556_v30  ;;  %v9165_v30 = vld [vmem:[#allocation53_spill] sm:$0xff] }
 0x476   : > { %6554 = vmatprep.subr.mxu0 %v8374_v37  ;;  %6600 = vmatprep.subr.mxu1 %v4213_v55  ;;  %v1212_v4 = vadd.f32 %v9165_v30, %v1103_v54  ;;  %v4255_v48 = vand.u32 4294901760, %v4254_v58  ;;  %v8592_v54 = vand.u32 4294901760, %v1219_v61 }
 0x477   : > { %6555 = vmatpush3.msra.mxu0 %v8374_v37  ;;  %6601 = vmatpush3.msra.mxu1 %v4213_v55  ;;  %v4241_v55 = vand.u32 4294901760, %v4240_v3  ;;  %v4248_v13 = vand.u32 4294901760, %v4247_v25 }
 0x478   : > { %6556 = vmatprep.subr.mxu0 %v8386_v40  ;;  %6602 = vmatprep.subr.mxu1 %v4220_v57  ;;  %v1221_v30 = vmax.f32 %v1212_v4, 0.0 }
 0x479   : > { %6557 = vmatpush3.msra.mxu0 %v8386_v40  ;;  %6603 = vmatpush3.msra.mxu1 %v4220_v57  ;;  %v8589_v57 = vand.u32 4294901760, %v1217_v59 }
 0x47a   : > { %6558 = vmatprep.subr.mxu0 %v8399_v38  ;;  %6604 = vmatprep.subr.mxu1 %v4227_v2  ;;  %v8604_v4 = vand.u32 4294901760, %v1221_v30 }
 0x47b   : > { %6559 = vmatpush3.msra.mxu0 %v8399_v38  ;;  %6605 = vmatpush3.msra.mxu1 %v4227_v2  ;;  %v4262_v2 = vand.u32 4294901760, %v4261_v45  ;;  %v8598_v3 = vsub.f32 %v1217_v59, %v8589_v57 }
 0x47c   : > { %6560 = vmatprep.subr.mxu0 %v8411_v9  ;;  %6606 = vmatprep.subr.mxu1 %v4234_v5 }
 0x47d   : > { %6561 = vmatpush3.msra.mxu0 %v8411_v9  ;;  %6607 = vmatpush3.msra.mxu1 %v4234_v5  ;;  %v8602_v5 = vsub.f32 %v1219_v61, %v8592_v54  ;;  %v4124_v59 = vand.u32 4294901760, %v8598_v3  ;;  %v8613_v61 = vsub.f32 %v1221_v30, %v8604_v4 }
 0x47e   : > { %6562 = vmatprep.subr.mxu0 %v8430_v10  ;;  %6608 = vmatprep.subr.mxu1 %v4241_v55 }
 0x47f   : > { %6563 = vmatpush3.msra.mxu0 %v8430_v10  ;;  %6609 = vmatpush3.msra.mxu1 %v4241_v55  ;;  %v4134_v25 = vand.u32 4294901760, %v8602_v5  ;;  %v4125_v16 = vsub.f32 %v8598_v3, %v4124_v59  ;;  %v4144_v58 = vand.u32 4294901760, %v8613_v61 }
 0x480   : > { %6564 = vmatprep.subr.mxu0 %v8445_v56  ;;  %6610 = vmatprep.subr.mxu1 %v4248_v13 }
 0x481   : > { %6565 = vmatpush3.msra.mxu0 %v8445_v56  ;;  %6611 = vmatpush3.msra.mxu1 %v4248_v13  ;;  %v4135_v55 = vsub.f32 %v8602_v5, %v4134_v25  ;;  %v9166_v13 = vand.u32 4294901760, %v8448_v47  ;;  %v4126_v45 = vand.u32 4294901760, %v4125_v16  ;;  %v4145_v30 = vsub.f32 %v8613_v61, %v4144_v58 }
 0x482   : > { %6566 = vmatprep.subr.mxu0 %v8463_v20  ;;  %6612 = vmatprep.subr.mxu1 %v4255_v48 }
 0x483   : > { %6567 = vmatpush3.msra.mxu0 %v8463_v20  ;;  %6613 = vmatpush3.msra.mxu1 %v4255_v48  ;;  %v4136_v48 = vand.u32 4294901760, %v4135_v55 }
 0x484   : > { %6568 = vmatprep.subr.mxu0 %v8478_v23  ;;  %6614 = vmatprep.subr.mxu1 %v4262_v2 }
 0x485   : > { %6569 = vmatpush3.msra.mxu0 %v8478_v23  ;;  %6615 = vmatpush3.msra.mxu1 %v4262_v2  ;;  %v4146_v2 = vand.u32 4294901760, %v4145_v30 }
 0x486   : > { %6570 = vmatprep.subr.mxu0 %v8494_v19  ;;  %6617 = vmatmul.mubr.f32.vlgmr.msra.gmra.mxu1 %v8589_v57 }
 0x487   : > { %6660 = vmatprep.subr.mxu1 %v8308_v42  ;;  %6571 = vmatpush3.msra.mxu0 %v8494_v19 }
 0x488   : > { %6619 = vmatprep.mubr.f32.mxu1 %v8592_v54  ;;  %6661 = vmatpush3.msra.mxu1 %v8308_v42 }
 0x489   : > { %6572 = vmatprep.subr.mxu0 %v8509_v17  ;;  %6662 = vmatprep.subr.mxu1 %v8329_v63 }
 0x48a   : > { %6573 = vmatpush3.msra.mxu0 %v8509_v17  ;;  %6663 = vmatpush3.msra.mxu1 %v8329_v63 }
 0x48b   : > { %6574 = vmatprep.subr.mxu0 %v8527_v31  ;;  %6620 = vmatmul.mubr.f32.gmra.mxu1 %v8604_v4 }
 0x48c   : > { %6664 = vmatprep.subr.mxu1 %v8350_v22  ;;  %6575 = vmatpush3.msra.mxu0 %v8527_v31 }
 0x48d   : > { %6665 = vmatpush3.msra.mxu1 %v8350_v22  ;;  %6692 = vmatprep.mubr.f32.mxu1 %v9166_v13 }
 0x48e   : > { %6576 = vmatprep.subr.mxu0 %v8539_v6  ;;  %6666 = vmatprep.subr.mxu1 %v8365_v53 }
 0x48f   : > { %6577 = vmatpush3.msra.mxu0 %v8539_v6  ;;  %6667 = vmatpush3.msra.mxu1 %v8365_v53 }
 0x490   : > { %6579 = vmatmul.mubr.f32.vlgmr.msra.gmra.mxu0 %v4126_v45  ;;  %6622 = vmatprep.subr.mxu0 %v8312_v36 }
 0x491   : > { %6668 = vmatprep.subr.mxu1 %v8374_v37  ;;  %6581 = vmatprep.mubr.f32.mxu0 %v4136_v48 }
 0x492   : > { %6623 = vmatpush3.msra.mxu0 %v8312_v36  ;;  %6669 = vmatpush3.msra.mxu1 %v8374_v37  ;;  %v9169_v36 = vld [vmem:[#allocation52_spill] sm:$0xff] }
 0x493   : > { %6624 = vmatprep.subr.mxu0 %v8357_v52  ;;  %6670 = vmatprep.subr.mxu1 %v8386_v40 }
 0x494   : > { %6625 = vmatpush3.msra.mxu0 %v8357_v52  ;;  %6671 = vmatpush3.msra.mxu1 %v8386_v40 }
 0x495   : > { %6582 = vmatmul.mubr.f32.gmra.mxu0 %v4146_v2  ;;  %6626 = vmatprep.subr.mxu0 %v8372_v32 }
 0x496   : > { %6672 = vmatprep.subr.mxu1 %v8399_v38  ;;  %6627 = vmatpush3.msra.mxu0 %v8372_v32 }
 0x497   : > { %6654 = vmatprep.mubr.f32.mxu0 %v8448_v47  ;;  %6673 = vmatpush3.msra.mxu1 %v8399_v38 }
 0x498   : > { %6628 = vmatprep.subr.mxu0 %v8384_v33  ;;  %6674 = vmatprep.subr.mxu1 %v8411_v9 }
 0x499   : > { %6629 = vmatpush3.msra.mxu0 %v8384_v33  ;;  %6675 = vmatpush3.msra.mxu1 %v8411_v9 }
 0x49a   : > { %6630 = vmatprep.subr.mxu0 %v8397_v27  ;;  %6676 = vmatprep.subr.mxu1 %v8430_v10 }
 0x49b   : > { %6631 = vmatpush3.msra.mxu0 %v8397_v27  ;;  %6677 = vmatpush3.msra.mxu1 %v8430_v10 }
 0x49c   : > { %6632 = vmatprep.subr.mxu0 %v8409_v43  ;;  %6678 = vmatprep.subr.mxu1 %v8445_v56 }
 0x49d   : > { %6633 = vmatpush3.msra.mxu0 %v8409_v43  ;;  %6679 = vmatpush3.msra.mxu1 %v8445_v56 }
 0x49e   : > { %6634 = vmatprep.subr.mxu0 %v8425_v39  ;;  %6680 = vmatprep.subr.mxu1 %v8463_v20 }
 0x49f   : > { %6635 = vmatpush3.msra.mxu0 %v8425_v39  ;;  %6681 = vmatpush3.msra.mxu1 %v8463_v20 }
 0x4a0   : > { %6636 = vmatprep.subr.mxu0 %v8438_v14  ;;  %6682 = vmatprep.subr.mxu1 %v8478_v23 }
 0x4a1   : > { %6637 = vmatpush3.msra.mxu0 %v8438_v14  ;;  %6683 = vmatpush3.msra.mxu1 %v8478_v23 }
 0x4a2   : > { %6638 = vmatprep.subr.mxu0 %v8461_v7  ;;  %6684 = vmatprep.subr.mxu1 %v8494_v19 }
 0x4a3   : > { %6639 = vmatpush3.msra.mxu0 %v8461_v7  ;;  %6685 = vmatpush3.msra.mxu1 %v8494_v19 }
 0x4a4   : > { %6640 = vmatprep.subr.mxu0 %v8476_v60  ;;  %6686 = vmatprep.subr.mxu1 %v8509_v17 }
 0x4a5   : > { %6641 = vmatpush3.msra.mxu0 %v8476_v60  ;;  %6687 = vmatpush3.msra.mxu1 %v8509_v17 }
 0x4a6   : > { %6642 = vmatprep.subr.mxu0 %v8492_v21  ;;  %6688 = vmatprep.subr.mxu1 %v8527_v31 }
 0x4a7   : > { %6643 = vmatpush3.msra.mxu0 %v8492_v21  ;;  %6689 = vmatpush3.msra.mxu1 %v8527_v31 }
 0x4a8   : > { %6644 = vmatprep.subr.mxu0 %v8507_v46  ;;  %6690 = vmatprep.subr.mxu1 %v8539_v6 }
 0x4a9   : > { %6645 = vmatpush3.msra.mxu0 %v8507_v46  ;;  %6691 = vmatpush3.msra.mxu1 %v8539_v6 }
 0x4aa   : > { %6646 = vmatprep.subr.mxu0 %v8525_v12  ;;  %6693 = vmatmul.mubr.f32.vlgmr.msra.gmra.mxu1 %v4124_v59 }
 0x4ab   : > { %6736 = vmatprep.subr.mxu1 %v8308_v42  ;;  %6647 = vmatpush3.msra.mxu0 %v8525_v12 }
 0x4ac   : > { %6695 = vmatprep.mubr.f32.mxu1 %v4134_v25  ;;  %6737 = vmatpush3.msra.mxu1 %v8308_v42  ;;  %v9168_v42 = vld [vmem:[#allocation17_spill] sm:$0xff] }
 0x4ad   : > { %6648 = vmatprep.subr.mxu0 %v8537_v50  ;;  %6738 = vmatprep.subr.mxu1 %v8329_v63 }
 0x4ae   : > { %6649 = vmatpush3.msra.mxu0 %v8537_v50  ;;  %6739 = vmatpush3.msra.mxu1 %v8329_v63  ;;  %v9171_v63 = vld [vmem:[#allocation36_spill] sm:$0xff] }
 0x4af   : > { %6650 = vmatprep.subr.mxu0 %v8549_v44  ;;  %6696 = vmatmul.mubr.f32.gmra.mxu1 %v4144_v58  ;;  %v5537_v58 = vld [vmem:[%s8892_s6] ss:$0 sm:$0xff] }
 0x4b0   : > { %6740 = vmatprep.subr.mxu1 %v8350_v22  ;;  %6651 = vmatpush3.msra.mxu0 %v8549_v44  ;;  %v9167_v44 = vld [vmem:[#allocation16_spill] sm:$0xff] }
 0x4b1   : > { %6741 = vmatpush3.msra.mxu1 %v8350_v22  ;;  %6768 = vmatprep.mubr.f32.mxu1 %v8416_v29 }
 0x4b2   : > { %6652 = vmatprep.subr.mxu0 %v8559_v28  ;;  %6742 = vmatprep.subr.mxu1 %v8365_v53 }
 0x4b3   : > { %6653 = vmatpush3.msra.mxu0 %v8559_v28  ;;  %6743 = vmatpush3.msra.mxu1 %v8365_v53 }
 0x4b4   : > { %6655 = vmatmul.mubr.f32.vlgmr.msra.gmra.mxu0 %v8598_v3  ;;  %6698 = vmatprep.subr.mxu0 %v8327_v18 }
 0x4b5   : > { %6744 = vmatprep.subr.mxu1 %v8374_v37  ;;  %6657 = vmatprep.mubr.f32.mxu0 %v8602_v5 }
 0x4b6   : > { %6699 = vmatpush3.msra.mxu0 %v8327_v18  ;;  %6745 = vmatpush3.msra.mxu1 %v8374_v37  ;;  %v9170_v18 = vld [vmem:[#allocation31_spill] sm:$0xff] }
 0x4b7   : > { %6700 = vmatprep.subr.mxu0 %v8378_v15  ;;  %6746 = vmatprep.subr.mxu1 %v8386_v40 }
 0x4b8   : > { %6701 = vmatpush3.msra.mxu0 %v8378_v15  ;;  %6747 = vmatpush3.msra.mxu1 %v8386_v40 }
 0x4b9   : > { %6658 = vmatmul.mubr.f32.gmra.mxu0 %v8613_v61  ;;  %6702 = vmatprep.subr.mxu0 %v8394_v1 }
 0x4ba   : > { %6748 = vmatprep.subr.mxu1 %v8399_v38  ;;  %6703 = vmatpush3.msra.mxu0 %v8394_v1 }
 0x4bb   : > { %6730 = vmatprep.mubr.f32.mxu0 %v8416_v29  ;;  %6749 = vmatpush3.msra.mxu1 %v8399_v38 }
 0x4bc   : > { %6704 = vmatprep.subr.mxu0 %v8406_v41  ;;  %6750 = vmatprep.subr.mxu1 %v8411_v9 }
 0x4bd   : > { %6705 = vmatpush3.msra.mxu0 %v8406_v41  ;;  %6751 = vmatpush3.msra.mxu1 %v8411_v9 }
 0x4be   : > { %6706 = vmatprep.subr.mxu0 %v8422_v34  ;;  %6752 = vmatprep.subr.mxu1 %v8430_v10 }
 0x4bf   : > { %6707 = vmatpush3.msra.mxu0 %v8422_v34  ;;  %6753 = vmatpush3.msra.mxu1 %v8430_v10 }
 0x4c0   : > { %6708 = vmatprep.subr.mxu0 %v8435_v8  ;;  %6754 = vmatprep.subr.mxu1 %v8445_v56 }
 0x4c1   : > { %6709 = vmatpush3.msra.mxu0 %v8435_v8  ;;  %6755 = vmatpush3.msra.mxu1 %v8445_v56 }
 0x4c2   : > { %6710 = vmatprep.subr.mxu0 %v8453_v24  ;;  %6756 = vmatprep.subr.mxu1 %v8463_v20 }
 0x4c3   : > { %6711 = vmatpush3.msra.mxu0 %v8453_v24  ;;  %6757 = vmatpush3.msra.mxu1 %v8463_v20 }
 0x4c4   : > { %6712 = vmatprep.subr.mxu0 %v8469_v49  ;;  %6758 = vmatprep.subr.mxu1 %v8478_v23 }
 0x4c5   : > { %6713 = vmatpush3.msra.mxu0 %v8469_v49  ;;  %6759 = vmatpush3.msra.mxu1 %v8478_v23 }
 0x4c6   : > { %6714 = vmatprep.subr.mxu0 %v8489_v11  ;;  %6760 = vmatprep.subr.mxu1 %v8494_v19 }
 0x4c7   : > { %6715 = vmatpush3.msra.mxu0 %v8489_v11  ;;  %6761 = vmatpush3.msra.mxu1 %v8494_v19 }
 0x4c8   : > { %6716 = vmatprep.subr.mxu0 %v8504_v35  ;;  %6762 = vmatprep.subr.mxu1 %v8509_v17 }
 0x4c9   : > { %6717 = vmatpush3.msra.mxu0 %v8504_v35  ;;  %6763 = vmatpush3.msra.mxu1 %v8509_v17 }
 0x4ca   : > { %6718 = vmatprep.subr.mxu0 %v8522_v51  ;;  %6764 = vmatprep.subr.mxu1 %v8527_v31 }
 0x4cb   : > { %6719 = vmatpush3.msra.mxu0 %v8522_v51  ;;  %6765 = vmatpush3.msra.mxu1 %v8527_v31 }
 0x4cc   : > { %6720 = vmatprep.subr.mxu0 %v8534_v26  ;;  %6766 = vmatprep.subr.mxu1 %v8539_v6 }
 0x4cd   : > { %6721 = vmatpush3.msra.mxu0 %v8534_v26  ;;  %6767 = vmatpush3.msra.mxu1 %v8539_v6 }
 0x4ce   : > { %6722 = vmatprep.subr.mxu0 %v9167_v44  ;;  %6769 = vmatmul.mubr.f32.vlgmr.msra.gmra.mxu1 %v8589_v57 }
 0x4cf   : > { %6723 = vmatpush3.msra.mxu0 %v9167_v44  ;;  %6771 = vmatprep.mubr.f32.mxu1 %v8592_v54 }
 0x4d0   : > { %6724 = vmatprep.subr.mxu0 %v9168_v42  ;;  %6782 = vmatprep.subr.mxu1 %v9169_v36 }
 0x4d1   : > { %6725 = vmatpush3.msra.mxu0 %v9168_v42  ;;  %6783 = vmatpush3.msra.mxu1 %v9169_v36 }
 0x4d2   : > { %6726 = vmatprep.subr.mxu0 %v8566_v62  ;;  %6772 = vmatmul.mubr.f32.gmra.mxu1 %v8604_v4 }
 0x4d3   : > { %6727 = vmatpush3.msra.mxu0 %v8566_v62  ;;  %6798 = vmatprep.subr.mxu1 %v9170_v18 }
 0x4d4   : > { %6728 = vmatprep.subr.mxu0 %v8573_v0 }
 0x4d5   : > { %6729 = vmatpush3.msra.mxu0 %v8573_v0 }
 0x4d6   : > { %6731 = vmatmul.mubr.f32.vlgmr.msra.gmra.mxu0 %v8589_v57  ;;  %6774 = vmatprep.subr.mxu0 %v9170_v18 }
 0x4d7   : > { %6733 = vmatprep.mubr.f32.mxu0 %v8592_v54  ;;  %6775 = vmatpush3.msra.mxu0 %v9170_v18 }
 0x4d8   : > { %6790 = vmatprep.subr.mxu0 %v9171_v63 }
 0x4da   : > { %6734 = vmatmul.mubr.f32.gmra.mxu0 %v8604_v4 }
 0x514   : > { %v6510_v22 = vpop.f32.mrf.mxu1 }
 0x516   : > { %v3585_v52 = vpop.f32.mrf.mxu1 }
 0x518   : > { %v6513_v53 = vpop.f32.mrf.mxu1 }
 0x51a   : > { %v3597_v32 = vpop.f32.mrf.mxu1 }
 0x51c   : > { %v6502_v37 = vpop.f32.mrf.mxu0  ;;  %v6526_v15 = vpop.f32.mrf.mxu1 }
 0x51d   : > { %v3592_v33 = vadd.f32 %v6510_v22, %v6502_v37 }
 0x51e   : > { %v3479_v40 = vpop.f32.mrf.mxu0  ;;  %v3772_v1 = vpop.f32.mrf.mxu1 }
 0x51f   : > { %v3586_v27 = vadd.f32 %v3585_v52, %v3479_v40 }
 0x520   : > { %v6505_v38 = vpop.f32.mrf.mxu0  ;;  %v6529_v43 = vpop.f32.mrf.mxu1 }
 0x521   : > { %v3604_v41 = vadd.f32 %v6513_v53, %v6505_v38 }
 0x522   : > { %v3499_v9 = vpop.f32.mrf.mxu0  ;;  %v3788_v10 = vpop.f32.mrf.mxu1 }
 0x523   : > { %v3598_v29 = vadd.f32 %v3597_v32, %v3499_v9 }
 0x524   : > { %v6518_v34 = vpop.f32.mrf.mxu0  ;;  %v6542_v20 = vpop.f32.mrf.mxu1 }
 0x525   : > { %v3685_v39 = vadd.f32 %v6518_v34, %v3592_v33 }
 0x526   : > { %v3677_v8 = vpop.f32.mrf.mxu0  ;;  %v3960_v35 = vpop.f32.mrf.mxu1 }
 0x527   : > { %v3678_v14 = vadd.f32 %v3677_v8, %v3586_v27  ;;  %v3781_v56 = vadd.f32 %v6526_v15, %v3685_v39 }
 0x528   : > { %v6521_v47 = vpop.f32.mrf.mxu0 }
 0x529   : > { %v3699_v24 = vadd.f32 %v6521_v47, %v3604_v41  ;;  %v3773_v7 = vadd.f32 %v3772_v1, %v3678_v14  ;;  %v6545_v31 = vpop.f32.mrf.mxu1 }
 0x52a   : > { %v3691_v49 = vpop.f32.mrf.mxu0 }
 0x52b   : > { %v3692_v60 = vadd.f32 %v3691_v49, %v3598_v29  ;;  %v3797_v23 = vadd.f32 %v6529_v43, %v3699_v24  ;;  %v3972_v0 = vpop.f32.mrf.mxu1 }
 0x52c   : > { %v6534_v11 = vpop.f32.mrf.mxu0 }
 0x52d   : > { %v3877_v21 = vadd.f32 %v6534_v11, %v3781_v56  ;;  %v3789_v19 = vadd.f32 %v3788_v10, %v3692_v60 }
 0x52e   : > { %v3870_v46 = vpop.f32.mrf.mxu0 }
 0x52f   : > { %v8789_v17 = vadd.f32 %v6542_v20, %v3877_v21  ;;  %v3871_v51 = vadd.f32 %v3870_v46, %v3773_v7 }
 0x531   : > { %v8791_v12 = vadd.f32 %v3960_v35, %v3871_v51 }
 0x532   : > { %v6537_v26 = vpop.f32.mrf.mxu0 }
 0x533   : > { %v3889_v50 = vadd.f32 %v6537_v26, %v3797_v23 }
 0x534   : > { %v3882_v6 = vpop.f32.mrf.mxu0 }
 0x535   : > { %v8793_v28 = vadd.f32 %v6545_v31, %v3889_v50  ;;  %v3883_v62 = vadd.f32 %v3882_v6, %v3789_v19 }
 0x537   : > { %v8795_v57 = vadd.f32 %v3972_v0, %v3883_v62 }
 0x546   : > { %v6618_v54 = vpop.f32.mrf.mxu1 }
 0x548   : > { %v4299_v3 = vpop.f32.mrf.mxu1 }
 0x54b   : > { %v6621_v4 = vpop.f32.mrf.mxu1 }
 0x54d   : > { %v4311_v61 = vpop.f32.mrf.mxu1 }
 0x550   : > { %v6580_v5 = vpop.f32.mrf.mxu0 }
 0x551   : > { %v4129_v48 = vadd.f32 %v6580_v5, %v5537_v58 }
 0x552   : > { %v4118_v59 = vpop.f32.mrf.mxu0 }
 0x553   : > { %v4119_v44 = vadd.f32 %v5537_v58, %v4118_v59  ;;  %v4306_v36 = vadd.f32 %v6618_v54, %v4129_v48 }
 0x555   : > { %v6583_v25 = vpop.f32.mrf.mxu0  ;;  %v4300_v37 = vadd.f32 %v4299_v3, %v4119_v44 }
 0x556   : > { %v4149_v42 = vadd.f32 %v6583_v25, %v5537_v58 }
 0x557   : > { %v4138_v55 = vpop.f32.mrf.mxu0 }
 0x558   : > { %v4139_v53 = vadd.f32 %v5537_v58, %v4138_v55  ;;  %v4318_v40 = vadd.f32 %v6621_v4, %v4149_v42 }
 0x55a   : > { %v4312_v38 = vadd.f32 %v4311_v61, %v4139_v53 }
 0x56a   : > { %v6694_v16 = vpop.f32.mrf.mxu1 }
 0x56c   : > { %v4531_v13 = vpop.f32.mrf.mxu1 }
 0x56f   : > { %v6697_v30 = vpop.f32.mrf.mxu1 }
 0x571   : > { %v4547_v22 = vpop.f32.mrf.mxu1 }
 0x574   : > { %v6656_v45 = vpop.f32.mrf.mxu0 }
 0x575   : > { %v4429_v32 = vadd.f32 %v6656_v45, %v4306_v36 }
 0x576   : > { %v4421_v2 = vpop.f32.mrf.mxu0 }
 0x577   : > { %v4422_v33 = vadd.f32 %v4421_v2, %v4300_v37  ;;  %v4540_v41 = vadd.f32 %v6694_v16, %v4429_v32 }
 0x579   : > { %v6659_v52 = vpop.f32.mrf.mxu0  ;;  %v4532_v39 = vadd.f32 %v4531_v13, %v4422_v33 }
 0x57a   : > { %v4443_v27 = vadd.f32 %v6659_v52, %v4318_v40 }
 0x57b   : > { %v4435_v1 = vpop.f32.mrf.mxu0 }
 0x57c   : > { %v4436_v29 = vadd.f32 %v4435_v1, %v4312_v38  ;;  %v4556_v56 = vadd.f32 %v6697_v30, %v4443_v27 }
 0x57e   : > { %v4548_v60 = vadd.f32 %v4547_v22, %v4436_v29 }
 0x58e   : > { %v6770_v15 = vpop.f32.mrf.mxu1 }
 0x590   : > { %v4779_v43 = vpop.f32.mrf.mxu1 }
 0x592   : > { %v6773_v47 = vpop.f32.mrf.mxu1 }
 0x594   : > { %v4791_v35 = vpop.f32.mrf.mxu1 }
 0x596   : > { %v6732_v9 = vpop.f32.mrf.mxu0 }
 0x597   : > { %v4681_v34 = vadd.f32 %v6732_v9, %v4540_v41  ;;  %v9172_v9 = vld [vmem:[#allocation39_spill] sm:$0xff] }
 0x598   : > { %v4674_v10 = vpop.f32.mrf.mxu0 }
 0x599   : > { %v4786_v8 = vadd.f32 %v6770_v15, %v4681_v34  ;;  %v4675_v14 = vadd.f32 %v4674_v10, %v4532_v39 }
 0x59a   : > { %v6735_v24 = vpop.f32.mrf.mxu0 }
 0x59b   : > { %v4802_v7 = vmul.f32 0.5, %v4786_v8  ;;  %v4780_v20 = vadd.f32 %v4779_v43, %v4675_v14  ;;  %v4693_v49 = vadd.f32 %v6735_v24, %v4556_v56 }
 0x59c   : > { %v4686_v23 = vpop.f32.mrf.mxu0 }
 0x59d   : > { %6872 = vtanh.f32 %v4802_v7  ;;  %v4801_v11 = vmul.f32 0.5, %v4780_v20  ;;  %v4798_v21 = vadd.f32 %v6773_v47, %v4693_v49  ;;  %v4687_v19 = vadd.f32 %v4686_v23, %v4548_v60  ;;  %v9173_v60 = vld [vmem:[#allocation7_spill] sm:$0xff] }
 0x59e   : > { %v3983_v23 = vmul.f32 %v8789_v17, %v9173_v60 }
 0x59f   : > { %6874 = vtanh.f32 %v4801_v11  ;;  %v4804_v46 = vmul.f32 0.5, %v4798_v21  ;;  %v4792_v51 = vadd.f32 %v4791_v35, %v4687_v19  ;;  %v5535_v21 = vld [vmem:[%s8893_s7] ss:$0 sm:$0xff] }
 0x5a1   : > { %6876 = vtanh.f32 %v4804_v46  ;;  %v4803_v31 = vmul.f32 0.5, %v4792_v51  ;;  %v9174_v46 = vld [vmem:[#allocation9_spill] sm:$0xff] }
 0x5a2   : > { %v3982_v51 = vmul.f32 %v8791_v12, %v9174_v46  ;;  %v9176_v12 = vld [vmem:[#allocation13_spill] sm:$0xff] }
 0x5a3   : > { %6878 = vtanh.f32 %v4803_v31 }
 0x5aa   : > { %v6873_v26 = vpop.eup %6872 }
 0x5ab   : > { %v4810_v50 = vadd.f32 1.0, %v6873_v26 }
 0x5ac   : > { %v6875_v6 = vpop.eup %6874 }
 0x5ad   : > { %v4814_v62 = vmul.f32 0.5, %v4810_v50  ;;  %v4809_v0 = vadd.f32 1.0, %v6875_v6 }
 0x5ae   : > { %v6877_v54 = vpop.eup %6876 }
 0x5af   : > { %v4821_v3 = vsel %vm2013_vm2, %v4814_v62, 0  ;;  %v4813_v5 = vmul.f32 0.5, %v4809_v0  ;;  %v4812_v4 = vadd.f32 1.0, %v6877_v54  ;;  %5413 = vst.msk [vmem:[%s373_s12 + $0x8] sm:$0xff] %vm2013_vm2, %v4814_v62  ;;  %v3994_v62 = vmul.f32 %v5535_v21, %v3983_v23  ;;  %v9175_v54 = vld [vmem:[#allocation11_spill] sm:$0xff] }
 0x5b0   : > { %v6879_v59 = vpop.eup %6878  ;;  %v4905_v61 = vand.u32 4294901760, %v4821_v3  ;;  %v3985_v17 = vmul.f32 %v8793_v28, %v9175_v54 }
 0x5b1   : > { %5412 = vst.msk [vmem:[%s373_s12] sm:$0xff] %vm2013_vm2, %v4813_v5  ;;  %v4816_v25 = vmul.f32 0.5, %v4812_v4  ;;  %v4811_v16 = vadd.f32 1.0, %v6879_v59  ;;  %v4818_v55 = vsel %vm2013_vm2, %v4813_v5, 0  ;;  %v5536_v4 = vld [vmem:[%s8894_s8] ss:$0 sm:$0xff] }
 0x5b2   : > { %v4906_v58 = vsub.f32 %v4821_v3, %v4905_v61  ;;  %v4895_v13 = vand.u32 4294901760, %v4818_v55 }
 0x5b3   : > { %v4815_v45 = vmul.f32 0.5, %v4811_v16  ;;  %v4827_v48 = vsel %vm2013_vm2, %v4816_v25, 0  ;;  %5415 = vst.msk [vmem:[%s373_s12 + $0x18] sm:$0xff] %vm2013_vm2, %v4816_v25  ;;  %v3984_v25 = vmul.f32 %v8795_v57, %v9176_v12 }
 0x5b4   : > { %6784 = vmatprep.mubr.f32.mxu1 %v4895_v13  ;;  %v4925_v30 = vand.u32 4294901760, %v4827_v48  ;;  %v4896_v2 = vsub.f32 %v4818_v55, %v4895_v13  ;;  %v4907_v44 = vand.u32 4294901760, %v4906_v58 }
 0x5b5   : > { %5414 = vst.msk [vmem:[%s373_s12 + $0x10] sm:$0xff] %vm2013_vm2, %v4815_v45  ;;  %6785 = vmatmul.mubr.f32.vlgmr.msra.gmra.mxu1 %v4905_v61  ;;  %v4824_v42 = vsel %vm2013_vm2, %v4815_v45, 0 }
 0x5b6   : > { %v4915_v36 = vand.u32 4294901760, %v4824_v42  ;;  %v4897_v22 = vand.u32 4294901760, %v4896_v2  ;;  %6799 = vmatpush3.msra.mxu1 %v9170_v18  ;;  %v4926_v52 = vsub.f32 %v4827_v48, %v4925_v30  ;;  %v4908_v53 = vsub.f32 %v4906_v58, %v4907_v44 }
 0x5b7   : > { %6814 = vmatprep.subr.mxu1 %v9170_v18  ;;  %v4005_v48 = vadd.f32 %v5536_v4, %v3994_v62 }
 0x5b8   : > { %6787 = vmatprep.mubr.f32.mxu1 %v4915_v36  ;;  %v4898_v32 = vsub.f32 %v4896_v2, %v4897_v22  ;;  %v4916_v37 = vsub.f32 %v4824_v42, %v4915_v36  ;;  %v4927_v15 = vand.u32 4294901760, %v4926_v52  ;;  %v4909_v1 = vand.u32 4294901760, %v4908_v53 }
 0x5b9   : > { %6788 = vmatmul.mubr.f32.gmra.mxu1 %v4925_v30 }
 0x5ba   : > { %6800 = vmatprep.mubr.f32.mxu1 %v4897_v22  ;;  %v4899_v33 = vand.u32 4294901760, %v4898_v32  ;;  %v4917_v40 = vand.u32 4294901760, %v4916_v37  ;;  %v4928_v27 = vsub.f32 %v4926_v52, %v4927_v15 }
 0x5bc   : > { %6776 = vmatprep.mubr.f32.mxu0 %v4899_v33  ;;  %v4918_v38 = vsub.f32 %v4916_v37, %v4917_v40  ;;  %v4929_v43 = vand.u32 4294901760, %v4928_v27 }
 0x5bd   : > { %6777 = vmatmul.mubr.f32.vlgmr.msra.gmra.mxu0 %v4909_v1  ;;  %6801 = vmatmul.mubr.f32.vlgmr.msra.gmra.mxu1 %v4907_v44 }
 0x5be   : > { %6791 = vmatpush3.msra.mxu0 %v9171_v63  ;;  %6803 = vmatprep.mubr.f32.mxu1 %v4917_v40  ;;  %v4919_v41 = vand.u32 4294901760, %v4918_v38 }
 0x5bf   : > { %6815 = vmatpush3.msra.mxu1 %v9170_v18  ;;  %6806 = vmatprep.subr.mxu0 %v9172_v9 }
 0x5c0   : > { %6779 = vmatprep.mubr.f32.mxu0 %v4919_v41 }
 0x5c1   : > { %6780 = vmatmul.mubr.f32.gmra.mxu0 %v4929_v43  ;;  %6804 = vmatmul.mubr.f32.gmra.mxu1 %v4927_v15 }
 0x5c2   : > { %6792 = vmatprep.mubr.f32.mxu0 %v4896_v2  ;;  %6816 = vmatprep.mubr.f32.mxu1 %v4895_v13 }
 0x5c5   : > { %6793 = vmatmul.mubr.f32.vlgmr.msra.gmra.mxu0 %v4906_v58  ;;  %6817 = vmatmul.mubr.f32.vlgmr.msra.gmra.mxu1 %v4905_v61 }
 0x5c6   : > { %6795 = vmatprep.mubr.f32.mxu0 %v4916_v37  ;;  %6807 = vmatpush3.msra.mxu0 %v9172_v9 }
 0x5c7   : > { %6819 = vmatprep.mubr.f32.mxu1 %v4915_v36 }
 0x5c9   : > { %6796 = vmatmul.mubr.f32.gmra.mxu0 %v4926_v52  ;;  %6820 = vmatmul.mubr.f32.gmra.mxu1 %v4925_v30 }
 0x5ca   : > { %6808 = vmatprep.mubr.f32.mxu0 %v4895_v13 }
 0x5cd   : > { %6809 = vmatmul.mubr.f32.vlgmr.msra.gmra.mxu0 %v4905_v61  ;;  %v3993_v61 = vmul.f32 %v5535_v21, %v3982_v51 }
 0x5ce   : > { %6811 = vmatprep.mubr.f32.mxu0 %v4915_v36  ;;  %v3995_v36 = vmul.f32 %v5535_v21, %v3984_v25 }
 0x5cf   : > { %v4004_v52 = vadd.f32 %v5536_v4, %v3993_v61 }
 0x5d0   : > { %v4006_v9 = vadd.f32 %v5536_v4, %v3995_v36 }
 0x5d1   : > { %6812 = vmatmul.mubr.f32.gmra.mxu0 %v4925_v30  ;;  %v3996_v30 = vmul.f32 %v5535_v21, %v3985_v17 }
 0x5d3   : > { %v4007_v1 = vadd.f32 %v5536_v4, %v3996_v30 }
 0x675   : > { %v6786_v18 = vpop.f32.mrf.mxu1 }
 0x677   : > { %v5007_v63 = vpop.f32.mrf.mxu1 }
 0x679   : > { %v6789_v29 = vpop.f32.mrf.mxu1 }
 0x67b   : > { %v5019_v34 = vpop.f32.mrf.mxu1 }
 0x67d   : > { %v6778_v39 = vpop.f32.mrf.mxu0  ;;  %v6802_v10 = vpop.f32.mrf.mxu1 }
 0x67e   : > { %v5014_v49 = vadd.f32 %v6786_v18, %v6778_v39 }
 0x67f   : > { %v4901_v8 = vpop.f32.mrf.mxu0  ;;  %v5194_v14 = vpop.f32.mrf.mxu1 }
 0x680   : > { %v5008_v19 = vadd.f32 %v5007_v63, %v4901_v8 }
 0x681   : > { %v6781_v56 = vpop.f32.mrf.mxu0  ;;  %v6805_v47 = vpop.f32.mrf.mxu1 }
 0x682   : > { %v5026_v50 = vadd.f32 %v6789_v29, %v6781_v56 }
 0x683   : > { %v4921_v24 = vpop.f32.mrf.mxu0  ;;  %v5210_v7 = vpop.f32.mrf.mxu1 }
 0x684   : > { %v5020_v3 = vadd.f32 %v5019_v34, %v4921_v24 }
 0x685   : > { %v6794_v20 = vpop.f32.mrf.mxu0  ;;  %v6818_v31 = vpop.f32.mrf.mxu1 }
 0x686   : > { %v5107_v35 = vadd.f32 %v6794_v20, %v5014_v49 }
 0x687   : > { %v5099_v11 = vpop.f32.mrf.mxu0  ;;  %v5382_v16 = vpop.f32.mrf.mxu1 }
 0x688   : > { %v5100_v6 = vadd.f32 %v5099_v11, %v5008_v19  ;;  %v5203_v59 = vadd.f32 %v6802_v10, %v5107_v35 }
 0x689   : > { %v6797_v26 = vpop.f32.mrf.mxu0  ;;  %v6821_v22 = vpop.f32.mrf.mxu1 }
 0x68a   : > { %v5121_v5 = vadd.f32 %v6797_v26, %v5026_v50  ;;  %v5195_v45 = vadd.f32 %v5194_v14, %v5100_v6 }
 0x68b   : > { %v5113_v0 = vpop.f32.mrf.mxu0  ;;  %v5394_v41 = vpop.f32.mrf.mxu1 }
 0x68c   : > { %v5114_v58 = vadd.f32 %v5113_v0, %v5020_v3  ;;  %v5219_v42 = vadd.f32 %v6805_v47, %v5121_v5 }
 0x68d   : > { %v6810_v55 = vpop.f32.mrf.mxu0 }
 0x68e   : > { %v5299_v13 = vadd.f32 %v6810_v55, %v5203_v59  ;;  %v5211_v15 = vadd.f32 %v5210_v7, %v5114_v58 }
 0x68f   : > { %v5292_v28 = vpop.f32.mrf.mxu0 }
 0x690   : > { %v5389_v2 = vadd.f32 %v6818_v31, %v5299_v13  ;;  %v5293_v44 = vadd.f32 %v5292_v28, %v5195_v45 }
 0x691   : > { %v6813_v53 = vpop.f32.mrf.mxu0 }
 0x692   : > { %v5405_v32 = vmul.f32 %v5389_v2, %v4005_v48  ;;  %v5383_v57 = vadd.f32 %v5382_v16, %v5293_v44  ;;  %v5311_v37 = vadd.f32 %v6813_v53, %v5219_v42 }
 0x693   : > { %v5304_v33 = vpop.f32.mrf.mxu0 }
 0x694   : > { %5409 = vst [vmem:[%s354_s26 + $0x8] sm:$0xff] %v5405_v32  ;;  %v5404_v40 = vmul.f32 %v5383_v57, %v4004_v52  ;;  %v5401_v27 = vadd.f32 %v6821_v22, %v5311_v37  ;;  %v5305_v38 = vadd.f32 %v5304_v33, %v5211_v15 }
 0x696   : > { %5408 = vst [vmem:[%s354_s26] sm:$0xff] %v5404_v40  ;;  %v5407_v43 = vmul.f32 %v5401_v27, %v4007_v1  ;;  %v5395_v18 = vadd.f32 %v5394_v41, %v5305_v38 }
 0x698   : > { %5411 = vst [vmem:[%s354_s26 + $0x18] sm:$0xff] %v5407_v43  ;;  %v5406_v63 = vmul.f32 %v5395_v18, %v4006_v9 }
 0x69a   : > { %5410 = vst [vmem:[%s354_s26 + $0x10] sm:$0xff] %v5406_v63 }
 0x69b   : > { %6893 = shalt.err (!%p6890_p3)
}
 0x69c   : > { %s6894_s18 = scalar_lea.hbm %s8842_s11, 512  ;;  %s6898_s30 = scalar_lea.hbm %s8895_s9, 1024 }
 0x69d   : > { %p6895_p4 = scmp.ne.s32.totalorder %s8842_s11, %s6894_s18  ;;  %p6899_p9 = scmp.lt.s32.totalorder %s8842_s11, %s8895_s9 }
 0x69e   : > { %p6900_p10 = scmp.lt.s32.totalorder %s6898_s30, %s6894_s18 }
 0x69f   : > { %p6896_p7 = pnand %p6895_p4, %p7039_p5 }
 0x6a0   : > { %p6901_p11 = por %p6900_p10, %p6899_p9 }
 0x6a1   : > { %p6897_p8 = pneg %p6896_p7 }
 0x6a3   : > { %p6902_p12 = pnand %p6901_p11, %p6897_p8 }
 0x6a5   : > { %6905 = shalt.err (!%p6902_p12)
}
 0x6a6   : > { %s6944_s17 = smov 128   ;;  %s6945_s21 = smov 8  }
 0x6a7   : > { %6822 = dma.vmem_to_hbm [thread:$0]  (%p7039_p5), %s8837_s28, 512, %s8842_s11, %s8846_s27, %s6944_s17, %s6944_s17, %s6945_s21  }
 0x6a8 PF: > { %p6828_p13 = scmp.ge.s32.totalorder %s6940_s16, 2  ;;  %s5454_s25 = sand.u32 1, %s6928_s13  }
 0x6a9   : > { %s5455_s18 = scalar_lea.sflag [#allocation3], %s5454_s25 }
 0x6aa   : > { %p6825_p0 = pnand %p6828_p13, %p7043_p6 }
 0x6ac   : > { %p6826_p1 = pneg %p6825_p0 }
 0x6ae   : > { %6923 = dma.done.wait (%p6826_p1), %s5455_s18, 512  }
 0x6af   : > { %6925 = vsyncadd (%p6826_p1), %s5455_s18, 4294966784  ;;  %p21_p2 = scmp.ge.s32.totalorder %s7026_s19, 4   ;;  %s9177_s13 = smov %s6932_s14 }
 0x6b0   : > { %s9178_s14 = smov %s6936_s15  ;;  %s9179_s15 = smov %s7037_s22 }
 0x6b1   : > { %s9180_s16 = smov %s7026_s19  ;;  %23 = sbr.rel (!%p21_p2) target bundleno = 3 (0x3), region = 103 }
 0x6b6   :  { %5468 = vsyncpa [#allocation3], 1 }
 0x6b7   :  { %5470 = vsyncpa [#allocation3 + $0x1], 1 }

</bundles_post_ra>
